<compile_context>
chip_gen: v5e
topology: v5e:2x2
jax: 0.10.0
libtpu: 0.0.40
codegen_flags: <defaults>
</compile_context>

<pallas_src>
import jax
import jax.numpy as jnp
from jax.experimental import pallas as pl
from jax.experimental.pallas import tpu as pltpu

n_code = 64
n_feats = 28 * 28   # 784
n_hidden = 256

# Lane-dense padded dims: 784 -> 896 (= 7*128), 64 -> 128.
F_PAD = 896
CODE_PAD = 128

_LAYER_DIMS = [
    (n_feats, n_hidden), (n_hidden, n_hidden), (n_hidden, n_code),   # encoder
    (n_code, n_hidden), (n_hidden, n_hidden), (n_hidden, n_feats),   # decoder
]
_PADDED_DIMS = [
    (F_PAD, n_hidden), (n_hidden, n_hidden), (n_hidden, CODE_PAD),
    (CODE_PAD, n_hidden), (n_hidden, n_hidden), (n_hidden, F_PAD),
]
_RELUS = (True, True, False, True, True, False)
_NUM_LAYERS = len(_LAYER_DIMS)


# ---------------------------------------------------------------------------
# Chip-dependent defaults
# ---------------------------------------------------------------------------
def _device_kind():
    try:
        return jax.devices()[0].device_kind.lower()
    except Exception:
        return ""


def _default_compute_dtype():
    """int8 (integer MXU) on v5*/v6*, bf16 elsewhere (v7x has fp8-only MXU)."""
    kind = _device_kind()
    if "v5" in kind or "v6" in kind:
        return jnp.int8
    return jnp.bfloat16


def _default_m_tile():
    return 128 if "v5" in _device_kind() else 256


def _round_up(x, m):
    return (x + m - 1) // m * m


# ---------------------------------------------------------------------------
# Kernel
# ---------------------------------------------------------------------------
def _bitlinear_act(h, w_q, bias, w_scale, apply_relu):
    """One BitLinear on an in-VMEM activation.

    h: (M, Fin) f32; w_q: (Fin, Fout) ternary (int8 or bf16);
    bias: (1, Fout) f32; w_scale: scalar f32 (= 1 / max(mean|W|, 1e-5)).
    """
    # Activation int8-grid quantization in f32 on the VPU (v5e-safe).
    x_absmax = jnp.max(jnp.abs(h), axis=-1, keepdims=True)            # (M, 1)
    x_scale = 127.0 / jnp.maximum(x_absmax, 1e-5)
    x_q = jnp.clip(jnp.round(h * x_scale), -128.0, 127.0)             # saturating

    if w_q.dtype == jnp.int8:
        # Native integer MXU path (v5e / v6e): s8 x s8 -> s32 accumulate.
        acc = jnp.dot(x_q.astype(jnp.int8), w_q,
                      preferred_element_type=jnp.int32).astype(jnp.float32)
    else:
        # bf16 MXU path (v7x / other): exact for small-integer operands.
        acc = jnp.dot(x_q.astype(jnp.bfloat16), w_q,
                      preferred_element_type=jnp.float32)

    # Exact dequant on the tiny (M, 1) scale, then broadcast-multiply.
    y = acc * (1.0 / (x_scale * w_scale)) + bias
    if apply_relu:
        y = jnp.maximum(y, 0.0)
    return y


def bit_ae_fused_kernel(wscale_ref, x_ref, bias_ref, *refs):
    """refs = (w0, ..., w5, o_ref).  Weights/biases are VMEM-resident (block
    index constant across the batch grid); activations never touch HBM."""
    o_ref = refs[-1]
    w_refs = refs[:-1]

    h = x_ref[...]                                    # (m_tile, F_PAD) f32
    for i in range(_NUM_LAYERS):
        fout = _PADDED_DIMS[i][1]
        h = _bitlinear_act(h, w_refs[i][...],
                           bias_ref[i:i + 1, :fout],  # (1, fout) slice of pack
                           wscale_ref[i], _RELUS[i])
    o_ref[...] = h.astype(o_ref.dtype)


# ---------------------------------------------------------------------------
# Offline quantization (done once, not per forward call)
# ---------------------------------------------------------------------------
def quantize_bit_ae_params(params, compute_dtype=None):
    """BitNet b1.58 weight quantization + layout prep:
    ternary W_q transposed to (Fin, Fout), zero-padded to lane-dense dims,
    stored as int8 (v5e/v6e) or bf16 (v7x/other); biases packed into one
    (8, F_PAD) f32 buffer; one scalar w_scale per layer (SMEM)."""
    if compute_dtype is None:
        compute_dtype = _default_compute_dtype()

    w_qs, w_scales, bias_rows = [], [], []
    for i, (w, b) in enumerate(params):               # w: (Fout, Fin) f32
        w_scale = 1.0 / jnp.maximum(jnp.mean(jnp.abs(w)), 1e-5)
        w_q = jnp.clip(jnp.round(w * w_scale), -1.0, 1.0)             # ternary
        w_q = jnp.transpose(w_q)                                       # (Fin, Fout)
        fin_p, fout_p = _PADDED_DIMS[i]
        w_q = jnp.pad(w_q, ((0, fin_p - w_q.shape[0]),
                            (0, fout_p - w_q.shape[1])))
        w_qs.append(w_q.astype(compute_dtype))
        bias_rows.append(jnp.pad(b.astype(jnp.float32),
                                 (0, F_PAD - b.shape[0])))
        w_scales.append(w_scale)

    bias_pack = jnp.stack(bias_rows
                          + [jnp.zeros((F_PAD,), jnp.float32)] * 2)    # (8, F_PAD)
    return w_qs, bias_pack, jnp.stack(w_scales).astype(jnp.float32)    # (6,)


# ---------------------------------------------------------------------------
# Forward wrapper
# ---------------------------------------------------------------------------
def bit_ae_forward(qparams, x, *, m_tile=None):
    """Fused BitAE forward.  x: (B, n_feats) float."""
    w_qs, bias_pack, w_scales = qparams
    B = x.shape[0]

    if m_tile is None:
        m_tile = min(_default_m_tile(), _round_up(B, 32))
    b_pad = _round_up(B, m_tile)

    # Zero-pad batch to the tile and features to the lane-dense width.
    x_pad = jnp.pad(x.astype(jnp.float32),
                    ((0, b_pad - B), (0, F_PAD - x.shape[1])))
    grid = (b_pad // m_tile,)

    in_specs = [
        pl.BlockSpec(memory_space=pltpu.MemorySpace.SMEM),          # w_scales (6,)
        pl.BlockSpec((m_tile, F_PAD), lambda i: (i, 0)),            # x batch tile
        pl.BlockSpec(bias_pack.shape, lambda i: (0, 0)),            # packed biases
    ]
    for w_q in w_qs:                                                # resident weights
        in_specs.append(pl.BlockSpec(w_q.shape, lambda i: (0, 0)))

    w_bytes = sum(w.size * w.dtype.itemsize for w in w_qs)
    flops = 2 * b_pad * sum(fi * fo for fi, fo in _PADDED_DIMS)
    bytes_accessed = (w_bytes + bias_pack.size * 4 + w_scales.size * 4
                      + 2 * b_pad * F_PAD * 4)

    out = pl.pallas_call(
        bit_ae_fused_kernel,
        out_shape=jax.ShapeDtypeStruct((b_pad, F_PAD), jnp.float32),
        grid=grid,
        in_specs=in_specs,
        out_specs=pl.BlockSpec((m_tile, F_PAD), lambda i: (i, 0)),
        compiler_params=pltpu.CompilerParams(
            dimension_semantics=("parallel",)),                     # megacore on v7x
        cost_estimate=pl.CostEstimate(
            flops=flops, transcendentals=0, bytes_accessed=bytes_accessed),
    )(w_scales, x_pad, bias_pack, *w_qs)

    return out[:B, :n_feats]


# ---------------------------------------------------------------------------
# Deterministic init (nn.Linear-style)
# ---------------------------------------------------------------------------
def init_linear(key, fan_in, fan_out):
    kw, kb = jax.random.split(key)
    bound = 1.0 / (fan_in ** 0.5)
    w = jax.random.uniform(kw, (fan_out, fan_in), jnp.float32, -bound, bound)
    b = jax.random.uniform(kb, (fan_out,), jnp.float32, -bound, bound)
    return w, b


def init_bit_ae(key):
    keys = jax.random.split(key, len(_LAYER_DIMS))
    return [init_linear(k, fi, fo) for k, (fi, fo) in zip(keys, _LAYER_DIMS)]


if __name__ == "__main__":
    key = jax.random.PRNGKey(0)
    k_params, k_x = jax.random.split(key)

    params = init_bit_ae(k_params)
    qparams = quantize_bit_ae_params(params)          # done once, offline

    batch = 2
    x = jax.random.normal(k_x, (batch, n_feats), dtype=jnp.float32)

    fwd = jax.jit(bit_ae_forward)
    out = jax.block_until_ready(fwd(qparams, x))

    assert out.shape == (batch, n_feats), out.shape
    assert out.dtype == jnp.float32
    assert bool(jnp.all(jnp.isfinite(out)))
    print("KERNEL_OK")
</pallas_src>

<mosaic_0001>
module attributes {stable_mosaic.version = 11 : i64} {
  func.func @bit_ae_fused_kernel(%arg0: i32, %arg1: memref<6xf32, #tpu.memory_space<smem>>, %arg2: memref<32x896xf32, #tpu.memory_space<vmem>>, %arg3: memref<8x896xf32, #tpu.memory_space<vmem>>, %arg4: memref<896x256xbf16, #tpu.memory_space<vmem>>, %arg5: memref<256x256xbf16, #tpu.memory_space<vmem>>, %arg6: memref<256x128xbf16, #tpu.memory_space<vmem>>, %arg7: memref<128x256xbf16, #tpu.memory_space<vmem>>, %arg8: memref<256x256xbf16, #tpu.memory_space<vmem>>, %arg9: memref<256x896xbf16, #tpu.memory_space<vmem>>, %arg10: memref<32x896xf32, #tpu.memory_space<vmem>>) attributes {dimension_semantics = [#tpu.dimension_semantics<parallel>], iteration_bounds = array<i64: 1>, scalar_prefetch = 0 : i64, scratch_operands = 0 : i64, tpu.core_type = #tpu.core_type<tc>, window_params = [{transform_indices = @transform_0, window_bounds = array<i64: 6>}, {transform_indices = @transform_1, window_bounds = array<i64: 32, 896>}, {pipeline_mode = #tpu.pipeline_mode<synchronous>, transform_indices = @transform_2, window_bounds = array<i64: 8, 896>}, {pipeline_mode = #tpu.pipeline_mode<synchronous>, transform_indices = @transform_3, window_bounds = array<i64: 896, 256>}, {pipeline_mode = #tpu.pipeline_mode<synchronous>, transform_indices = @transform_4, window_bounds = array<i64: 256, 256>}, {pipeline_mode = #tpu.pipeline_mode<synchronous>, transform_indices = @transform_5, window_bounds = array<i64: 256, 128>}, {pipeline_mode = #tpu.pipeline_mode<synchronous>, transform_indices = @transform_6, window_bounds = array<i64: 128, 256>}, {pipeline_mode = #tpu.pipeline_mode<synchronous>, transform_indices = @transform_7, window_bounds = array<i64: 256, 256>}, {pipeline_mode = #tpu.pipeline_mode<synchronous>, transform_indices = @transform_8, window_bounds = array<i64: 256, 896>}, {transform_indices = @transform_9, window_bounds = array<i64: 32, 896>}]} {
    %c0 = arith.constant 0 : index
    %c0_0 = arith.constant 0 : index
    %0 = vector.load %arg2[%c0, %c0_0] : memref<32x896xf32, #tpu.memory_space<vmem>>, vector<32x896xf32>
    %c0_1 = arith.constant 0 : index
    %c0_2 = arith.constant 0 : index
    %1 = vector.load %arg4[%c0_1, %c0_2] : memref<896x256xbf16, #tpu.memory_space<vmem>>, vector<896x256xbf16>
    %c0_3 = arith.constant 0 : index
    %c0_4 = arith.constant 0 : index
    %2 = vector.load %arg3[%c0_3, %c0_4] : memref<8x896xf32, #tpu.memory_space<vmem>>, vector<1x256xf32>
    %c0_5 = arith.constant 0 : index
    %3 = memref.load %arg1[%c0_5] : memref<6xf32, #tpu.memory_space<smem>>
    %4 = math.absf %0 : vector<32x896xf32>
    %cst = arith.constant dense<0xFF800000> : vector<32xf32>
    %5 = vector.multi_reduction <maximumf>, %4, %cst [1] : vector<32x896xf32> to vector<32xf32>
    %6 = vector.shape_cast %5 : vector<32xf32> to vector<32x1xf32>
    %cst_6 = arith.constant 9.99999974E-6 : f32
    %7 = vector.broadcast %cst_6 : f32 to vector<32x1xf32>
    %8 = arith.maximumf %6, %7 : vector<32x1xf32>
    %cst_7 = arith.constant 1.270000e+02 : f32
    %9 = vector.broadcast %cst_7 : f32 to vector<32x1xf32>
    %10 = arith.divf %9, %8 : vector<32x1xf32>
    %11 = vector.broadcast %10 : vector<32x1xf32> to vector<32x896xf32>
    %12 = arith.mulf %0, %11 : vector<32x896xf32>
    %13 = math.roundeven %12 : vector<32x896xf32>
    %cst_8 = arith.constant -1.280000e+02 : f32
    %cst_9 = arith.constant 1.270000e+02 : f32
    %14 = vector.broadcast %cst_8 : f32 to vector<32x896xf32>
    %15 = arith.maximumf %14, %13 : vector<32x896xf32>
    %16 = vector.broadcast %cst_9 : f32 to vector<32x896xf32>
    %17 = arith.minimumf %16, %15 : vector<32x896xf32>
    %18 = arith.truncf %17 : vector<32x896xf32> to vector<32x896xbf16>
    %cst_10 = arith.constant dense<0.000000e+00> : vector<32x256xf32>
    %19 = tpu.matmul %18, %1, %cst_10 {dimension_numbers = #tpu.dot_dimension_numbers<[1], [0], [0], [1], [0, 0, 1, 1], [], []>} : vector<32x896xbf16>, vector<896x256xbf16>, vector<32x256xf32> -> vector<32x256xf32>
    %20 = vector.broadcast %3 : f32 to vector<32x1xf32>
    %21 = arith.mulf %10, %20 : vector<32x1xf32>
    %cst_11 = arith.constant 1.000000e+00 : f32
    %22 = vector.broadcast %cst_11 : f32 to vector<32x1xf32>
    %23 = arith.divf %22, %21 : vector<32x1xf32>
    %24 = vector.broadcast %23 : vector<32x1xf32> to vector<32x256xf32>
    %25 = arith.mulf %19, %24 : vector<32x256xf32>
    %26 = vector.broadcast %2 : vector<1x256xf32> to vector<32x256xf32>
    %27 = arith.addf %25, %26 : vector<32x256xf32>
    %cst_12 = arith.constant 0.000000e+00 : f32
    %28 = vector.broadcast %cst_12 : f32 to vector<32x256xf32>
    %29 = arith.maximumf %27, %28 : vector<32x256xf32>
    %c0_13 = arith.constant 0 : index
    %c0_14 = arith.constant 0 : index
    %30 = vector.load %arg5[%c0_13, %c0_14] : memref<256x256xbf16, #tpu.memory_space<vmem>>, vector<256x256xbf16>
    %c1 = arith.constant 1 : index
    %c0_15 = arith.constant 0 : index
    %31 = vector.load %arg3[%c1, %c0_15] : memref<8x896xf32, #tpu.memory_space<vmem>>, vector<1x256xf32>
    %c1_16 = arith.constant 1 : index
    %32 = memref.load %arg1[%c1_16] : memref<6xf32, #tpu.memory_space<smem>>
    %33 = math.absf %29 : vector<32x256xf32>
    %cst_17 = arith.constant dense<0xFF800000> : vector<32xf32>
    %34 = vector.multi_reduction <maximumf>, %33, %cst_17 [1] : vector<32x256xf32> to vector<32xf32>
    %35 = vector.shape_cast %34 : vector<32xf32> to vector<32x1xf32>
    %cst_18 = arith.constant 9.99999974E-6 : f32
    %36 = vector.broadcast %cst_18 : f32 to vector<32x1xf32>
    %37 = arith.maximumf %35, %36 : vector<32x1xf32>
    %cst_19 = arith.constant 1.270000e+02 : f32
    %38 = vector.broadcast %cst_19 : f32 to vector<32x1xf32>
    %39 = arith.divf %38, %37 : vector<32x1xf32>
    %40 = vector.broadcast %39 : vector<32x1xf32> to vector<32x256xf32>
    %41 = arith.mulf %29, %40 : vector<32x256xf32>
    %42 = math.roundeven %41 : vector<32x256xf32>
    %cst_20 = arith.constant -1.280000e+02 : f32
    %cst_21 = arith.constant 1.270000e+02 : f32
    %43 = vector.broadcast %cst_20 : f32 to vector<32x256xf32>
    %44 = arith.maximumf %43, %42 : vector<32x256xf32>
    %45 = vector.broadcast %cst_21 : f32 to vector<32x256xf32>
    %46 = arith.minimumf %45, %44 : vector<32x256xf32>
    %47 = arith.truncf %46 : vector<32x256xf32> to vector<32x256xbf16>
    %cst_22 = arith.constant dense<0.000000e+00> : vector<32x256xf32>
    %48 = tpu.matmul %47, %30, %cst_22 {dimension_numbers = #tpu.dot_dimension_numbers<[1], [0], [0], [1], [0, 0, 1, 1], [], []>} : vector<32x256xbf16>, vector<256x256xbf16>, vector<32x256xf32> -> vector<32x256xf32>
    %49 = vector.broadcast %32 : f32 to vector<32x1xf32>
    %50 = arith.mulf %39, %49 : vector<32x1xf32>
    %cst_23 = arith.constant 1.000000e+00 : f32
    %51 = vector.broadcast %cst_23 : f32 to vector<32x1xf32>
    %52 = arith.divf %51, %50 : vector<32x1xf32>
    %53 = vector.broadcast %52 : vector<32x1xf32> to vector<32x256xf32>
    %54 = arith.mulf %48, %53 : vector<32x256xf32>
    %55 = vector.broadcast %31 : vector<1x256xf32> to vector<32x256xf32>
    %56 = arith.addf %54, %55 : vector<32x256xf32>
    %cst_24 = arith.constant 0.000000e+00 : f32
    %57 = vector.broadcast %cst_24 : f32 to vector<32x256xf32>
    %58 = arith.maximumf %56, %57 : vector<32x256xf32>
    %c0_25 = arith.constant 0 : index
    %c0_26 = arith.constant 0 : index
    %59 = vector.load %arg6[%c0_25, %c0_26] : memref<256x128xbf16, #tpu.memory_space<vmem>>, vector<256x128xbf16>
    %c2 = arith.constant 2 : index
    %c0_27 = arith.constant 0 : index
    %60 = vector.load %arg3[%c2, %c0_27] : memref<8x896xf32, #tpu.memory_space<vmem>>, vector<1x128xf32>
    %c2_28 = arith.constant 2 : index
    %61 = memref.load %arg1[%c2_28] : memref<6xf32, #tpu.memory_space<smem>>
    %62 = math.absf %58 : vector<32x256xf32>
    %cst_29 = arith.constant dense<0xFF800000> : vector<32xf32>
    %63 = vector.multi_reduction <maximumf>, %62, %cst_29 [1] : vector<32x256xf32> to vector<32xf32>
    %64 = vector.shape_cast %63 : vector<32xf32> to vector<32x1xf32>
    %cst_30 = arith.constant 9.99999974E-6 : f32
    %65 = vector.broadcast %cst_30 : f32 to vector<32x1xf32>
    %66 = arith.maximumf %64, %65 : vector<32x1xf32>
    %cst_31 = arith.constant 1.270000e+02 : f32
    %67 = vector.broadcast %cst_31 : f32 to vector<32x1xf32>
    %68 = arith.divf %67, %66 : vector<32x1xf32>
    %69 = vector.broadcast %68 : vector<32x1xf32> to vector<32x256xf32>
    %70 = arith.mulf %58, %69 : vector<32x256xf32>
    %71 = math.roundeven %70 : vector<32x256xf32>
    %cst_32 = arith.constant -1.280000e+02 : f32
    %cst_33 = arith.constant 1.270000e+02 : f32
    %72 = vector.broadcast %cst_32 : f32 to vector<32x256xf32>
    %73 = arith.maximumf %72, %71 : vector<32x256xf32>
    %74 = vector.broadcast %cst_33 : f32 to vector<32x256xf32>
    %75 = arith.minimumf %74, %73 : vector<32x256xf32>
    %76 = arith.truncf %75 : vector<32x256xf32> to vector<32x256xbf16>
    %cst_34 = arith.constant dense<0.000000e+00> : vector<32x128xf32>
    %77 = tpu.matmul %76, %59, %cst_34 {dimension_numbers = #tpu.dot_dimension_numbers<[1], [0], [0], [1], [0, 0, 1, 1], [], []>} : vector<32x256xbf16>, vector<256x128xbf16>, vector<32x128xf32> -> vector<32x128xf32>
    %78 = vector.broadcast %61 : f32 to vector<32x1xf32>
    %79 = arith.mulf %68, %78 : vector<32x1xf32>
    %cst_35 = arith.constant 1.000000e+00 : f32
    %80 = vector.broadcast %cst_35 : f32 to vector<32x1xf32>
    %81 = arith.divf %80, %79 : vector<32x1xf32>
    %82 = vector.broadcast %81 : vector<32x1xf32> to vector<32x128xf32>
    %83 = arith.mulf %77, %82 : vector<32x128xf32>
    %84 = vector.broadcast %60 : vector<1x128xf32> to vector<32x128xf32>
    %85 = arith.addf %83, %84 : vector<32x128xf32>
    %c0_36 = arith.constant 0 : index
    %c0_37 = arith.constant 0 : index
    %86 = vector.load %arg7[%c0_36, %c0_37] : memref<128x256xbf16, #tpu.memory_space<vmem>>, vector<128x256xbf16>
    %c3 = arith.constant 3 : index
    %c0_38 = arith.constant 0 : index
    %87 = vector.load %arg3[%c3, %c0_38] : memref<8x896xf32, #tpu.memory_space<vmem>>, vector<1x256xf32>
    %c3_39 = arith.constant 3 : index
    %88 = memref.load %arg1[%c3_39] : memref<6xf32, #tpu.memory_space<smem>>
    %89 = math.absf %85 : vector<32x128xf32>
    %cst_40 = arith.constant dense<0xFF800000> : vector<32xf32>
    %90 = vector.multi_reduction <maximumf>, %89, %cst_40 [1] : vector<32x128xf32> to vector<32xf32>
    %91 = vector.shape_cast %90 : vector<32xf32> to vector<32x1xf32>
    %cst_41 = arith.constant 9.99999974E-6 : f32
    %92 = vector.broadcast %cst_41 : f32 to vector<32x1xf32>
    %93 = arith.maximumf %91, %92 : vector<32x1xf32>
    %cst_42 = arith.constant 1.270000e+02 : f32
    %94 = vector.broadcast %cst_42 : f32 to vector<32x1xf32>
    %95 = arith.divf %94, %93 : vector<32x1xf32>
    %96 = vector.broadcast %95 : vector<32x1xf32> to vector<32x128xf32>
    %97 = arith.mulf %85, %96 : vector<32x128xf32>
    %98 = math.roundeven %97 : vector<32x128xf32>
    %cst_43 = arith.constant -1.280000e+02 : f32
    %cst_44 = arith.constant 1.270000e+02 : f32
    %99 = vector.broadcast %cst_43 : f32 to vector<32x128xf32>
    %100 = arith.maximumf %99, %98 : vector<32x128xf32>
    %101 = vector.broadcast %cst_44 : f32 to vector<32x128xf32>
    %102 = arith.minimumf %101, %100 : vector<32x128xf32>
    %103 = arith.truncf %102 : vector<32x128xf32> to vector<32x128xbf16>
    %cst_45 = arith.constant dense<0.000000e+00> : vector<32x256xf32>
    %104 = tpu.matmul %103, %86, %cst_45 {dimension_numbers = #tpu.dot_dimension_numbers<[1], [0], [0], [1], [0, 0, 1, 1], [], []>} : vector<32x128xbf16>, vector<128x256xbf16>, vector<32x256xf32> -> vector<32x256xf32>
    %105 = vector.broadcast %88 : f32 to vector<32x1xf32>
    %106 = arith.mulf %95, %105 : vector<32x1xf32>
    %cst_46 = arith.constant 1.000000e+00 : f32
    %107 = vector.broadcast %cst_46 : f32 to vector<32x1xf32>
    %108 = arith.divf %107, %106 : vector<32x1xf32>
    %109 = vector.broadcast %108 : vector<32x1xf32> to vector<32x256xf32>
    %110 = arith.mulf %104, %109 : vector<32x256xf32>
    %111 = vector.broadcast %87 : vector<1x256xf32> to vector<32x256xf32>
    %112 = arith.addf %110, %111 : vector<32x256xf32>
    %cst_47 = arith.constant 0.000000e+00 : f32
    %113 = vector.broadcast %cst_47 : f32 to vector<32x256xf32>
    %114 = arith.maximumf %112, %113 : vector<32x256xf32>
    %c0_48 = arith.constant 0 : index
    %c0_49 = arith.constant 0 : index
    %115 = vector.load %arg8[%c0_48, %c0_49] : memref<256x256xbf16, #tpu.memory_space<vmem>>, vector<256x256xbf16>
    %c4 = arith.constant 4 : index
    %c0_50 = arith.constant 0 : index
    %116 = vector.load %arg3[%c4, %c0_50] : memref<8x896xf32, #tpu.memory_space<vmem>>, vector<1x256xf32>
    %c4_51 = arith.constant 4 : index
    %117 = memref.load %arg1[%c4_51] : memref<6xf32, #tpu.memory_space<smem>>
    %118 = math.absf %114 : vector<32x256xf32>
    %cst_52 = arith.constant dense<0xFF800000> : vector<32xf32>
    %119 = vector.multi_reduction <maximumf>, %118, %cst_52 [1] : vector<32x256xf32> to vector<32xf32>
    %120 = vector.shape_cast %119 : vector<32xf32> to vector<32x1xf32>
    %cst_53 = arith.constant 9.99999974E-6 : f32
    %121 = vector.broadcast %cst_53 : f32 to vector<32x1xf32>
    %122 = arith.maximumf %120, %121 : vector<32x1xf32>
    %cst_54 = arith.constant 1.270000e+02 : f32
    %123 = vector.broadcast %cst_54 : f32 to vector<32x1xf32>
    %124 = arith.divf %123, %122 : vector<32x1xf32>
    %125 = vector.broadcast %124 : vector<32x1xf32> to vector<32x256xf32>
    %126 = arith.mulf %114, %125 : vector<32x256xf32>
    %127 = math.roundeven %126 : vector<32x256xf32>
    %cst_55 = arith.constant -1.280000e+02 : f32
    %cst_56 = arith.constant 1.270000e+02 : f32
    %128 = vector.broadcast %cst_55 : f32 to vector<32x256xf32>
    %129 = arith.maximumf %128, %127 : vector<32x256xf32>
    %130 = vector.broadcast %cst_56 : f32 to vector<32x256xf32>
    %131 = arith.minimumf %130, %129 : vector<32x256xf32>
    %132 = arith.truncf %131 : vector<32x256xf32> to vector<32x256xbf16>
    %cst_57 = arith.constant dense<0.000000e+00> : vector<32x256xf32>
    %133 = tpu.matmul %132, %115, %cst_57 {dimension_numbers = #tpu.dot_dimension_numbers<[1], [0], [0], [1], [0, 0, 1, 1], [], []>} : vector<32x256xbf16>, vector<256x256xbf16>, vector<32x256xf32> -> vector<32x256xf32>
    %134 = vector.broadcast %117 : f32 to vector<32x1xf32>
    %135 = arith.mulf %124, %134 : vector<32x1xf32>
    %cst_58 = arith.constant 1.000000e+00 : f32
    %136 = vector.broadcast %cst_58 : f32 to vector<32x1xf32>
    %137 = arith.divf %136, %135 : vector<32x1xf32>
    %138 = vector.broadcast %137 : vector<32x1xf32> to vector<32x256xf32>
    %139 = arith.mulf %133, %138 : vector<32x256xf32>
    %140 = vector.broadcast %116 : vector<1x256xf32> to vector<32x256xf32>
    %141 = arith.addf %139, %140 : vector<32x256xf32>
    %cst_59 = arith.constant 0.000000e+00 : f32
    %142 = vector.broadcast %cst_59 : f32 to vector<32x256xf32>
    %143 = arith.maximumf %141, %142 : vector<32x256xf32>
    %c0_60 = arith.constant 0 : index
    %c0_61 = arith.constant 0 : index
    %144 = vector.load %arg9[%c0_60, %c0_61] : memref<256x896xbf16, #tpu.memory_space<vmem>>, vector<256x896xbf16>
    %c5 = arith.constant 5 : index
    %c0_62 = arith.constant 0 : index
    %145 = vector.load %arg3[%c5, %c0_62] : memref<8x896xf32, #tpu.memory_space<vmem>>, vector<1x896xf32>
    %c5_63 = arith.constant 5 : index
    %146 = memref.load %arg1[%c5_63] : memref<6xf32, #tpu.memory_space<smem>>
    %147 = math.absf %143 : vector<32x256xf32>
    %cst_64 = arith.constant dense<0xFF800000> : vector<32xf32>
    %148 = vector.multi_reduction <maximumf>, %147, %cst_64 [1] : vector<32x256xf32> to vector<32xf32>
    %149 = vector.shape_cast %148 : vector<32xf32> to vector<32x1xf32>
    %cst_65 = arith.constant 9.99999974E-6 : f32
    %150 = vector.broadcast %cst_65 : f32 to vector<32x1xf32>
    %151 = arith.maximumf %149, %150 : vector<32x1xf32>
    %cst_66 = arith.constant 1.270000e+02 : f32
    %152 = vector.broadcast %cst_66 : f32 to vector<32x1xf32>
    %153 = arith.divf %152, %151 : vector<32x1xf32>
    %154 = vector.broadcast %153 : vector<32x1xf32> to vector<32x256xf32>
    %155 = arith.mulf %143, %154 : vector<32x256xf32>
    %156 = math.roundeven %155 : vector<32x256xf32>
    %cst_67 = arith.constant -1.280000e+02 : f32
    %cst_68 = arith.constant 1.270000e+02 : f32
    %157 = vector.broadcast %cst_67 : f32 to vector<32x256xf32>
    %158 = arith.maximumf %157, %156 : vector<32x256xf32>
    %159 = vector.broadcast %cst_68 : f32 to vector<32x256xf32>
    %160 = arith.minimumf %159, %158 : vector<32x256xf32>
    %161 = arith.truncf %160 : vector<32x256xf32> to vector<32x256xbf16>
    %cst_69 = arith.constant dense<0.000000e+00> : vector<32x896xf32>
    %162 = tpu.matmul %161, %144, %cst_69 {dimension_numbers = #tpu.dot_dimension_numbers<[1], [0], [0], [1], [0, 0, 1, 1], [], []>} : vector<32x256xbf16>, vector<256x896xbf16>, vector<32x896xf32> -> vector<32x896xf32>
    %163 = vector.broadcast %146 : f32 to vector<32x1xf32>
    %164 = arith.mulf %153, %163 : vector<32x1xf32>
    %cst_70 = arith.constant 1.000000e+00 : f32
    %165 = vector.broadcast %cst_70 : f32 to vector<32x1xf32>
    %166 = arith.divf %165, %164 : vector<32x1xf32>
    %167 = vector.broadcast %166 : vector<32x1xf32> to vector<32x896xf32>
    %168 = arith.mulf %162, %167 : vector<32x896xf32>
    %169 = vector.broadcast %145 : vector<1x896xf32> to vector<32x896xf32>
    %170 = arith.addf %168, %169 : vector<32x896xf32>
    %c0_71 = arith.constant 0 : index
    %c0_72 = arith.constant 0 : index
    %171 = vector.load %arg10[%c0_71, %c0_72] : memref<32x896xf32, #tpu.memory_space<vmem>>, vector<32x896xf32>
    tpu.vector_store %arg10[%c0_71, %c0_72], %170 {strides = array<i32>} : memref<32x896xf32, #tpu.memory_space<vmem>>, vector<32x896xf32>,
    return
  }
  func.func @transform_0(%arg0: i32) -> i32 {
    %c0_i32 = arith.constant 0 : i32
    %c0_i32_0 = arith.constant 0 : i32
    return %c0_i32 : i32
  }
  func.func @transform_1(%arg0: i32) -> (i32, i32) {
    %c0_i32 = arith.constant 0 : i32
    %c0_i32_0 = arith.constant 0 : i32
    return %arg0, %c0_i32 : i32, i32
  }
  func.func @transform_2(%arg0: i32) -> (i32, i32) {
    %c0_i32 = arith.constant 0 : i32
    %c0_i32_0 = arith.constant 0 : i32
    %c0_i32_1 = arith.constant 0 : i32
    return %c0_i32, %c0_i32_0 : i32, i32
  }
  func.func @transform_3(%arg0: i32) -> (i32, i32) {
    %c0_i32 = arith.constant 0 : i32
    %c0_i32_0 = arith.constant 0 : i32
    %c0_i32_1 = arith.constant 0 : i32
    return %c0_i32, %c0_i32_0 : i32, i32
  }
  func.func @transform_4(%arg0: i32) -> (i32, i32) {
    %c0_i32 = arith.constant 0 : i32
    %c0_i32_0 = arith.constant 0 : i32
    %c0_i32_1 = arith.constant 0 : i32
    return %c0_i32, %c0_i32_0 : i32, i32
  }
  func.func @transform_5(%arg0: i32) -> (i32, i32) {
    %c0_i32 = arith.constant 0 : i32
    %c0_i32_0 = arith.constant 0 : i32
    %c0_i32_1 = arith.constant 0 : i32
    return %c0_i32, %c0_i32_0 : i32, i32
  }
  func.func @transform_6(%arg0: i32) -> (i32, i32) {
    %c0_i32 = arith.constant 0 : i32
    %c0_i32_0 = arith.constant 0 : i32
    %c0_i32_1 = arith.constant 0 : i32
    return %c0_i32, %c0_i32_0 : i32, i32
  }
  func.func @transform_7(%arg0: i32) -> (i32, i32) {
    %c0_i32 = arith.constant 0 : i32
    %c0_i32_0 = arith.constant 0 : i32
    %c0_i32_1 = arith.constant 0 : i32
    return %c0_i32, %c0_i32_0 : i32, i32
  }
  func.func @transform_8(%arg0: i32) -> (i32, i32) {
    %c0_i32 = arith.constant 0 : i32
    %c0_i32_0 = arith.constant 0 : i32
    %c0_i32_1 = arith.constant 0 : i32
    return %c0_i32, %c0_i32_0 : i32, i32
  }
  func.func @transform_9(%arg0: i32) -> (i32, i32) {
    %c0_i32 = arith.constant 0 : i32
    %c0_i32_0 = arith.constant 0 : i32
    return %arg0, %c0_i32 : i32, i32
  }
}

</mosaic_0001>

<bundles_post_ra>
// kernel: bit_ae_forward.1
= control target key start
LH: loop header
LB: loop body
LE: loop exit
PB: predicated region body
PF: predicated region fallthrough
CT: control target
= control target key end

     0   :  { %14 = vsyncpa [#allocation4], 0  ;;  %s8954_s0 = inlined_call_operand.vmem [shape: f32[6], index: 0, kind: input, shape index: {}]   ;;  %s8955_s1 = inlined_call_operand.vmem [shape: f32[32,896], index: 1, kind: input, shape index: {}]   ;;  %s8956_s2 = inlined_call_operand.vmem [shape: f32[8,896], index: 2, kind: input, shape index: {}]   ;;  %s8957_s3 = inlined_call_operand.hbm [shape: bf16[896,256], index: 3, kind: input, shape index: {}]   ;;  %s8958_s4 = inlined_call_operand.hbm [shape: bf16[256,256], index: 4, kind: input, shape index: {}]   ;;  %s8959_s5 = inlined_call_operand.vmem [shape: bf16[256,128], index: 5, kind: input, shape index: {}]   ;;  %s8960_s6 = inlined_call_operand.hbm [shape: bf16[128,256], index: 6, kind: input, shape index: {}]   ;;  %s8961_s7 = inlined_call_operand.hbm [shape: bf16[256,256], index: 7, kind: input, shape index: {}]   ;;  %s8962_s8 = inlined_call_operand.hbm [shape: bf16[256,896], index: 8, kind: input, shape index: {}]   ;;  %s8963_s9 = inlined_call_operand.vmem [shape: f32[32,896], index: 9, kind: output, shape index: {}]  }
   0x1   :  { %15 = vsyncpa [#allocation3], 0 }
   0x2   :  { %16 = vsyncpa [#allocation7], 0 }
   0x3   :  { %17 = vsyncpa [#allocation10], 0  ;;  %s48_s11 = sshll.u32 %s8958_s4, 4  ;;  %s6738_s12 = smov [#allocation6]   ;;  %s49_s11 = int_to_ptr.hbm [resolvable:$true] %s48_s11 }
   0x4   :  { %s50_s13 = sshll.u32 %s6738_s12, 4  ;;  %s76_s16 = sshll.u32 %s8961_s7, 4  ;;  %s51_s13 = int_to_ptr.vmem [resolvable:$true] %s50_s13  ;;  %s77_s16 = int_to_ptr.hbm [resolvable:$true] %s76_s16 }
   0x5   :  { %s6739_s17 = smov 128   ;;  %s6740_s18 = smov 8  }
   0x6   :  { %56 = dma.hbm_to_vmem [thread:$0]  %s49_s11, 4096, %s51_s13, [#allocation7], %s6739_s17, %s6739_s17, %s6740_s18  }
   0x7   :  { %s6741_s19 = smov [#allocation9]   ;;  %s23_s23 = sshll.u32 %s8954_s0, 4  ;;  %s24_s23 = int_to_ptr.vmem [resolvable:$true] %s23_s23 }
   0x8   :  { %s78_s20 = sshll.u32 %s6741_s19, 4  ;;  %s35_s25 = sshll.u32 %s8957_s3, 4  ;;  %s79_s20 = int_to_ptr.vmem [resolvable:$true] %s78_s20  ;;  %s36_s25 = int_to_ptr.hbm [resolvable:$true] %s35_s25 }
   0x9   :  { %84 = dma.hbm_to_vmem [thread:$0]  %s77_s16, 4096, %s79_s20, [#allocation10], %s6739_s17, %s6739_s17, %s6740_s18  }
   0xa   :  { %s6742_s26 = smov [#allocation2]   ;;  %s6743_s7 = smov [#allocation5]  }
   0xb   :  { %26 = dma.vmem_to_smem %s24_s23, 16, %s6742_s26, [#allocation4]  }
   0xc   :  { %s37_s27 = sshll.u32 %s6743_s7, 4  ;;  %s63_s30 = sshll.u32 %s8960_s6, 4  ;;  %s38_s27 = int_to_ptr.vmem [resolvable:$true] %s37_s27  ;;  %s64_s30 = int_to_ptr.hbm [resolvable:$true] %s63_s30 }
   0xd   :  { %43 = dma.hbm_to_vmem [thread:$0]  %s36_s25, 14336, %s38_s27, [#allocation3], %s6739_s17, %s6739_s17, %s6740_s18  }
   0xe   :  { %s89_s11 = sshll.u32 %s8962_s8, 4  ;;  %s6744_s12 = smov [#allocation8]   ;;  %s90_s11 = int_to_ptr.hbm [resolvable:$true] %s89_s11 }
   0xf   :  { %s65_s13 = sshll.u32 %s6744_s12, 4  ;;  %s6745_s3 = smov [#allocation11]   ;;  %s66_s13 = int_to_ptr.vmem [resolvable:$true] %s65_s13 }
  0x10   :  { %71 = dma.hbm_to_vmem [thread:$0]  %s64_s30, 2048, %s66_s13, [#allocation7], %s6739_s17, %s6739_s17, %s6740_s18  }
  0x11   :  { %s91_s14 = sshll.u32 %s6745_s3, 4  ;;  %s6746_s15 = smov 448   ;;  %s92_s14 = int_to_ptr.vmem [resolvable:$true] %s91_s14 }
  0x12   :  { %s6747_s16 = smov 28  }
  0x13   :  { %97 = dma.hbm_to_vmem [thread:$0]  %s90_s11, 14336, %s92_s14, [#allocation10], %s6746_s15, %s6746_s15, %s6747_s16  }
  0x14   :  { %6730 = dma.done.wait [#allocation4], 16  }
  0x15   :  { %6731 = vsyncadd [#allocation4], 4294967280 }
  0x16   :  { %6732 = dma.done.wait [#allocation3], 14336  }
  0x17   :  { %6733 = vsyncadd [#allocation3], 4294952960 }
  0x18   :  { %6734 = dma.done.wait [#allocation7], 6144  }
  0x19   :  { %6735 = vsyncadd [#allocation7], 4294961152 }
  0x1a   :  { %6736 = dma.done.wait [#allocation10], 18432  }
  0x1b   :  { %6737 = vsyncadd [#allocation10], 4294948864 }
  0x1c   :  { %122 = sfence }
  0x1d   :  { %v6819_v0 = vld [vmem:[%s8955_s1 + $0x70] sm:$0xff]  ;;  %v6824_v1 = vld [vmem:[%s8955_s1 + $0x78] sm:$0xff]  ;;  %v6829_v2 = vld [vmem:[%s8955_s1 + $0x80] sm:$0xff]  ;;  %s4807_s8 = sld [smem:[#allocation2 + $0x1]] }
  0x1e   :  { %v6834_v3 = vld [vmem:[%s8955_s1 + $0x88] sm:$0xff]  ;;  %v279_v4 = vand.u32 2147483647, %v6819_v0  ;;  %v141_v5 = vld [vmem:[%s8955_s1 + $0x90] sm:$0xff]  ;;  %v280_v6 = vand.u32 2147483647, %v6824_v1 }
  0x1f   :  { %v281_v7 = vand.u32 2147483647, %v6829_v2  ;;  %v6845_v8 = vld [vmem:[%s8955_s1] sm:$0xff]  ;;  %v142_v9 = vld [vmem:[%s8955_s1 + $0x98] sm:$0xff]  ;;  %v282_v11 = vand.u32 2147483647, %v6834_v3 }
  0x20   :  { %v143_v10 = vld [vmem:[%s8955_s1 + $0xa0] sm:$0xff]  ;;  %v309_v12 = vmax.f32 %v279_v4, %v280_v6  ;;  %v6857_v13 = vld [vmem:[%s8955_s1 + $0x8] sm:$0xff]  ;;  %v6862_v14 = vld [vmem:[%s8955_s1 + $0x10] sm:$0xff]  ;;  %v283_v15 = vand.u32 2147483647, %v141_v5  ;;  %s5002_s24 = sld [smem:[#allocation2 + $0x3]] }
  0x21   :  { %v6867_v16 = vld [vmem:[%s8955_s1 + $0x18] sm:$0xff]  ;;  %v265_v17 = vand.u32 2147483647, %v6845_v8  ;;  %v127_v19 = vld [vmem:[%s8955_s1 + $0x20] sm:$0xff]  ;;  %v266_v20 = vand.u32 2147483647, %v6857_v13 }
  0x22   :  { %v310_v18 = vmax.f32 %v309_v12, %v281_v7  ;;  %v267_v21 = vand.u32 2147483647, %v6862_v14  ;;  %v284_v22 = vand.u32 2147483647, %v142_v9  ;;  %v285_v23 = vand.u32 2147483647, %v143_v10 }
  0x23   :  { %v128_v24 = vld [vmem:[%s8955_s1 + $0x28] sm:$0xff]  ;;  %v129_v25 = vld [vmem:[%s8955_s1 + $0x30] sm:$0xff]  ;;  %v268_v27 = vand.u32 2147483647, %v6867_v16  ;;  %v293_v28 = vmax.f32 %v265_v17, %v266_v20  ;;  %v6895_v31 = vld [vmem:[%s8955_s1 + $0xb8] sm:$0xff]  ;;  %s5068_s7 = sld [smem:[#allocation2 + $0x4]] }
  0x24   :  { %v311_v26 = vmax.f32 %v310_v18, %v282_v11  ;;  %v6885_v29 = vld [vmem:[%s8955_s1 + $0xa8] sm:$0xff]  ;;  %v6890_v30 = vld [vmem:[%s8955_s1 + $0xb0] sm:$0xff]  ;;  %v269_v32 = vand.u32 2147483647, %v127_v19  ;;  %v6900_v33 = vld [vmem:[%s8955_s1 + $0xc0] sm:$0xff]  ;;  %s5199_s29 = sld [smem:[#allocation2 + $0x5]] }
  0x25   :  { %v286_v34 = vand.u32 2147483647, %v6885_v29  ;;  %v294_v36 = vmax.f32 %v293_v28, %v267_v21  ;;  %v148_v37 = vld [vmem:[%s8955_s1 + $0xc8] sm:$0xff]  ;;  %v287_v38 = vand.u32 2147483647, %v6890_v30  ;;  %v6911_v40 = vld [vmem:[%s8955_s1 + $0x38] sm:$0xff] }
  0x26   :  { %v312_v35 = vmax.f32 %v311_v26, %v283_v15  ;;  %v288_v39 = vand.u32 2147483647, %v6895_v31  ;;  %v270_v41 = vand.u32 2147483647, %v128_v24  ;;  %v271_v42 = vand.u32 2147483647, %v129_v25 }
  0x27   :  { %v295_v44 = vmax.f32 %v294_v36, %v268_v27  ;;  %v289_v45 = vand.u32 2147483647, %v6900_v33  ;;  %v317_v46 = vmax.f32 %v286_v34, %v287_v38  ;;  %v6917_v47 = vld [vmem:[%s8955_s1 + $0x40] sm:$0xff]  ;;  %v6922_v48 = vld [vmem:[%s8955_s1 + $0x48] sm:$0xff]  ;;  %v149_v49 = vld [vmem:[%s8955_s1 + $0xd0] sm:$0xff] }
  0x28   :  { %v313_v43 = vmax.f32 %v312_v35, %v284_v22  ;;  %v290_v50 = vand.u32 2147483647, %v148_v37  ;;  %v272_v51 = vand.u32 2147483647, %v6911_v40  ;;  %v6931_v55 = vld [vmem:[%s8955_s1 + $0x50] sm:$0xff]  ;;  %v150_v57 = vld [vmem:[%s8955_s1 + $0xd8] sm:$0xff] }
  0x29   :  { %v296_v53 = vmax.f32 %v295_v44, %v269_v32  ;;  %v318_v54 = vmax.f32 %v317_v46, %v288_v39  ;;  %v273_v56 = vand.u32 2147483647, %v6917_v47  ;;  %v274_v58 = vand.u32 2147483647, %v6922_v48  ;;  %v134_v62 = vld [vmem:[%s8955_s1 + $0x58] sm:$0xff]  ;;  %v135_v9 = vld [vmem:[%s8955_s1 + $0x60] sm:$0xff] }
  0x2a   :  { %v314_v52 = vmax.f32 %v313_v43, %v285_v23  ;;  %v291_v60 = vand.u32 2147483647, %v149_v49  ;;  %v275_v63 = vand.u32 2147483647, %v6931_v55  ;;  %v292_v6 = vand.u32 2147483647, %v150_v57 }
  0x2b   :  { %v297_v59 = vmax.f32 %v296_v53, %v270_v41  ;;  %v319_v61 = vmax.f32 %v318_v54, %v289_v45  ;;  %v301_v4 = vmax.f32 %v272_v51, %v273_v56  ;;  %v276_v10 = vand.u32 2147483647, %v134_v62  ;;  %v136_v15 = vld [vmem:[%s8955_s1 + $0x68] sm:$0xff]  ;;  %v4416_v24 = vld [vmem:[#allocation5 + $0x70] sm:$0xf] }
  0x2c   :  { %315 = vmax.xlane.f32.xlu1 %v314_v52  ;;  %v277_v17 = vand.u32 2147483647, %v135_v9  ;;  %v278_v20 = vand.u32 2147483647, %v136_v15  ;;  %v5663_v25 = vld [vmem:[#allocation5 + $0x74] sm:$0xf0] }
  0x2d   :  { %v298_v5 = vmax.f32 %v297_v59, %v271_v42  ;;  %v320_v7 = vmax.f32 %v319_v61, %v290_v50  ;;  %v302_v11 = vmax.f32 %v301_v4, %v274_v58  ;;  %v4480_v26 = vld [vmem:[#allocation5 + $0xf0] sm:$0xf]  ;;  %v4417_v27 = vor.u32 %v5663_v25, %v4416_v24  ;;  %v5679_v28 = vld [vmem:[#allocation5 + $0xf4] sm:$0xf0]  ;;  %v4408_v41 = vld [vmem:[#allocation5 + $0x60] sm:$0xf] }
  0x2e   :  { %v4544_v32 = vld [vmem:[#allocation5 + $0x170] sm:$0xf]  ;;  %v5695_v34 = vld [vmem:[#allocation5 + $0x174] sm:$0xf0]  ;;  %v4481_v35 = vor.u32 %v5679_v28, %v4480_v26  ;;  %v5661_v42 = vld [vmem:[#allocation5 + $0x64] sm:$0xf0] }
  0x2f   :  { %299 = vmax.xlane.f32.xlu0 %v298_v5  ;;  %v321_v12 = vmax.f32 %v320_v7, %v291_v60  ;;  %v303_v18 = vmax.f32 %v302_v11, %v275_v63  ;;  %v4545_v36 = vor.u32 %v5695_v34, %v4544_v32  ;;  %v4608_v37 = vld [vmem:[#allocation5 + $0x1f0] sm:$0xf]  ;;  %v5711_v38 = vld [vmem:[#allocation5 + $0x1f4] sm:$0xf0]  ;;  %1075 = vmatpush.bf16.msra.mxu0 %v4417_v27  ;;  %v4472_v43 = vld [vmem:[#allocation5 + $0xe0] sm:$0xf] }
  0x30   :  { %v4609_v39 = vor.u32 %v5711_v38, %v4608_v37  ;;  %1094 = vmatpush.bf16.msra.mxu1 %v4481_v35  ;;  %v4409_v44 = vor.u32 %v5661_v42, %v4408_v41  ;;  %v5677_v45 = vld [vmem:[#allocation5 + $0xe4] sm:$0xf0]  ;;  %v4536_v46 = vld [vmem:[#allocation5 + $0x160] sm:$0xf]  ;;  %v4400_v56 = vld [vmem:[#allocation5 + $0x50] sm:$0xf] }
  0x31   :  { %v322_v19 = vmax.f32 %v321_v12, %v292_v6  ;;  %v304_v21 = vmax.f32 %v303_v18, %v276_v10  ;;  %1113 = vmatpush.bf16.msra.mxu2 %v4545_v36  ;;  %v5693_v49 = vld [vmem:[#allocation5 + $0x164] sm:$0xf0]  ;;  %v4473_v50 = vor.u32 %v5677_v45, %v4472_v43  ;;  %v4600_v52 = vld [vmem:[#allocation5 + $0x1e0] sm:$0xf]  ;;  %v5659_v57 = vld [vmem:[#allocation5 + $0x54] sm:$0xf0] }
  0x32   :  { %1132 = vmatpush.bf16.msra.mxu3 %v4609_v39  ;;  %v4537_v51 = vor.u32 %v5693_v49, %v4536_v46  ;;  %v5709_v53 = vld [vmem:[#allocation5 + $0x1e4] sm:$0xf0]  ;;  %v4464_v58 = vld [vmem:[#allocation5 + $0xd0] sm:$0xf]  ;;  %v4401_v59 = vor.u32 %v5659_v57, %v4400_v56  ;;  %v5675_v60 = vld [vmem:[#allocation5 + $0xd4] sm:$0xf0] }
  0x33   :  { %v305_v22 = vmax.f32 %v304_v21, %v277_v17  ;;  %1076 = vmatpush.bf16.msra.mxu0 %v4409_v44  ;;  %v4601_v54 = vor.u32 %v5709_v53, %v4600_v52  ;;  %v4528_v61 = vld [vmem:[#allocation5 + $0x150] sm:$0xf]  ;;  %v5691_v62 = vld [vmem:[#allocation5 + $0x154] sm:$0xf0]  ;;  %v4465_v63 = vor.u32 %v5675_v60, %v4464_v58  ;;  %v4392_v9 = vld [vmem:[#allocation5 + $0x40] sm:$0xf] }
  0x34   :  { %323 = vmax.xlane.f32.xlu1 %v322_v19  ;;  %1095 = vmatpush.bf16.msra.mxu1 %v4473_v50  ;;  %v4529_v4 = vor.u32 %v5691_v62, %v4528_v61  ;;  %v4592_v5 = vld [vmem:[#allocation5 + $0x1d0] sm:$0xf]  ;;  %v5707_v6 = vld [vmem:[#allocation5 + $0x1d4] sm:$0xf0]  ;;  %v5657_v10 = vld [vmem:[#allocation5 + $0x44] sm:$0xf0] }
  0x35   :  { %v306_v23 = vmax.f32 %v305_v22, %v278_v20  ;;  %1114 = vmatpush.bf16.msra.mxu2 %v4537_v51  ;;  %v4593_v7 = vor.u32 %v5707_v6, %v4592_v5  ;;  %v4456_v11 = vld [vmem:[#allocation5 + $0xc0] sm:$0xf]  ;;  %v4393_v15 = vor.u32 %v5657_v10, %v4392_v9  ;;  %v5673_v17 = vld [vmem:[#allocation5 + $0xc4] sm:$0xf0]  ;;  %v4384_v26 = vld [vmem:[#allocation5 + $0x30] sm:$0xf] }
  0x36   :  { %1133 = vmatpush.bf16.msra.mxu3 %v4601_v54  ;;  %v4520_v18 = vld [vmem:[#allocation5 + $0x140] sm:$0xf]  ;;  %v5689_v19 = vld [vmem:[#allocation5 + $0x144] sm:$0xf0]  ;;  %v4457_v21 = vor.u32 %v5673_v17, %v4456_v11  ;;  %v5655_v27 = vld [vmem:[#allocation5 + $0x34] sm:$0xf0] }
  0x37   :  { %307 = vmax.xlane.f32.xlu0 %v306_v23  ;;  %1077 = vmatpush.bf16.msra.mxu0 %v4401_v59  ;;  %v4521_v22 = vor.u32 %v5689_v19, %v4520_v18  ;;  %v4584_v23 = vld [vmem:[#allocation5 + $0x1c0] sm:$0xf]  ;;  %v5705_v24 = vld [vmem:[#allocation5 + $0x1c4] sm:$0xf0]  ;;  %v4448_v28 = vld [vmem:[#allocation5 + $0xb0] sm:$0xf]  ;;  %v4385_v35 = vor.u32 %v5655_v27, %v4384_v26 }
  0x38   :  { %1096 = vmatpush.bf16.msra.mxu1 %v4465_v63  ;;  %v4585_v25 = vor.u32 %v5705_v24, %v4584_v23  ;;  %v5671_v32 = vld [vmem:[#allocation5 + $0xb4] sm:$0xf0]  ;;  %v4512_v37 = vld [vmem:[#allocation5 + $0x130] sm:$0xf]  ;;  %v4376_v45 = vld [vmem:[#allocation5 + $0x20] sm:$0xf] }
  0x39   :  { %1115 = vmatpush.bf16.msra.mxu2 %v4529_v4  ;;  %v4449_v36 = vor.u32 %v5671_v32, %v4448_v28  ;;  %v5687_v38 = vld [vmem:[#allocation5 + $0x134] sm:$0xf0]  ;;  %v4576_v39 = vld [vmem:[#allocation5 + $0x1b0] sm:$0xf]  ;;  %v5653_v46 = vld [vmem:[#allocation5 + $0x24] sm:$0xf0] }
  0x3a   :  { %1134 = vmatpush.bf16.msra.mxu3 %v4593_v7  ;;  %v4513_v42 = vor.u32 %v5687_v38, %v4512_v37  ;;  %v5703_v43 = vld [vmem:[#allocation5 + $0x1b4] sm:$0xf0]  ;;  %v4440_v49 = vld [vmem:[#allocation5 + $0xa0] sm:$0xf]  ;;  %v5669_v51 = vld [vmem:[#allocation5 + $0xa4] sm:$0xf0]  ;;  %v4377_v53 = vor.u32 %v5653_v46, %v4376_v45 }
  0x3b   :  { %1078 = vmatpush.bf16.msra.mxu0 %v4393_v15  ;;  %v4577_v44 = vor.u32 %v5703_v43, %v4576_v39  ;;  %v4441_v54 = vor.u32 %v5669_v51, %v4440_v49  ;;  %v4504_v56 = vld [vmem:[#allocation5 + $0x120] sm:$0xf]  ;;  %v5685_v57 = vld [vmem:[#allocation5 + $0x124] sm:$0xf0]  ;;  %v4368_v6 = vld [vmem:[#allocation5 + $0x10] sm:$0xf] }
  0x3c   :  { %1097 = vmatpush.bf16.msra.mxu1 %v4457_v21  ;;  %v4568_v58 = vld [vmem:[#allocation5 + $0x1a0] sm:$0xf]  ;;  %v4505_v62 = vor.u32 %v5685_v57, %v4504_v56  ;;  %v5701_v63 = vld [vmem:[#allocation5 + $0x1a4] sm:$0xf0]  ;;  %v5651_v7 = vld [vmem:[#allocation5 + $0x14] sm:$0xf0] }
  0x3d   :  { %1116 = vmatpush.bf16.msra.mxu2 %v4521_v22  ;;  %v4569_v5 = vor.u32 %v5701_v63, %v4568_v58  ;;  %v4432_v9 = vld [vmem:[#allocation5 + $0x90] sm:$0xf]  ;;  %v4369_v17 = vor.u32 %v5651_v7, %v4368_v6  ;;  %v5683_v21 = vld [vmem:[#allocation5 + $0x114] sm:$0xf0]  ;;  %v5649_v37 = vld [vmem:[#allocation5 + $0x4] sm:$0xf0] }
  0x3e   :  { %1135 = vmatpush.bf16.msra.mxu3 %v4585_v25  ;;  %v4496_v19 = vld [vmem:[#allocation5 + $0x110] sm:$0xf]  ;;  %v5699_v28 = vld [vmem:[#allocation5 + $0x194] sm:$0xf0]  ;;  %v5665_v45 = vld [vmem:[#allocation5 + $0x84] sm:$0xf0] }
  0x3f   :  { %1079 = vmatpush.bf16.msra.mxu0 %v4385_v35  ;;  %v4497_v26 = vor.u32 %v5683_v21, %v4496_v19  ;;  %v4560_v27 = vld [vmem:[#allocation5 + $0x190] sm:$0xf]  ;;  %v5681_v51 = vld [vmem:[#allocation5 + $0x104] sm:$0xf0]  ;;  %v4552_v57 = vld [vmem:[#allocation5 + $0x180] sm:$0xf] }
  0x40   :  { %1098 = vmatpush.bf16.msra.mxu1 %v4449_v36  ;;  %v4360_v36 = vld [vmem:[#allocation5] sm:$0xf] }
  0x41   :  { %1117 = vmatpush.bf16.msra.mxu2 %v4513_v42  ;;  %v4561_v42 = vor.u32 %v5699_v28, %v4560_v27  ;;  %v4361_v43 = vor.u32 %v5649_v37, %v4360_v36  ;;  %v5755_v36 = vld [vmem:[#allocation5 + $0x354] sm:$0xf0] }
  0x42   :  { %1136 = vmatpush.bf16.msra.mxu3 %v4577_v44  ;;  %v4424_v44 = vld [vmem:[#allocation5 + $0x80] sm:$0xf] }
  0x43   :  { %1080 = vmatpush.bf16.msra.mxu0 %v4377_v53 }
  0x44   :  { %1099 = vmatpush.bf16.msra.mxu1 %v4441_v54  ;;  %v4425_v54 = vor.u32 %v5665_v45, %v4424_v44 }
  0x45   :  { %1118 = vmatpush.bf16.msra.mxu2 %v4505_v62 }
  0x46   :  { %1137 = vmatpush.bf16.msra.mxu3 %v4569_v5 }
  0x47   :  { %1081 = vmatpush.bf16.msra.mxu0 %v4369_v17 }
  0x49   :  { %1119 = vmatpush.bf16.msra.mxu2 %v4497_v26 }
  0x4a   :  { %1138 = vmatpush.bf16.msra.mxu3 %v4561_v42  ;;  %v4672_v42 = vld [vmem:[#allocation5 + $0x270] sm:$0xf] }
  0x4b   :  { %1082 = vmatpush.bf16.msra.mxu0 %v4361_v43  ;;  %v5727_v43 = vld [vmem:[#allocation5 + $0x274] sm:$0xf0] }
  0x9f   :  { %v316_v12 = vpop.xlane.xlu1 %315 }
  0xa0   :  { %v6948_v20 = vmax.f32 %v316_v12, 1e-05  ;;  %v5667_v12 = vld [vmem:[#allocation5 + $0x94] sm:$0xf0] }
  0xa1   :  { %v4433_v18 = vor.u32 %v5667_v12, %v4432_v9 }
  0xa2   :  { %6490 = vrcp.f32 %v6948_v20  ;;  %v300_v34 = vpop.xlane.xlu0 %299  ;;  %v368_v50 = vand.u32 2147483647, %v6948_v20  ;;  %v370_v60 = vand.u32 2147483648, %v6948_v20  ;;  %vm364_vm0 = vweird.f32 %v6948_v20 }
  0xa3   :  { %v6951_v41 = vmax.f32 %v300_v34, 1e-05  ;;  %1100 = vmatpush.bf16.msra.mxu1 %v4433_v18 }
  0xa4   :  { %vm6963_vm1 = vcmp.eq.f32.partialorder %v368_v50, 8.507059e+37  ;;  %v371_v23 = vor.u32 1.1754944e-38, %v370_v60 }
  0xa5   :  { %6492 = vrcp.f32 %v6951_v41  ;;  %v338_v11 = vand.u32 2147483647, %v6951_v41  ;;  %v340_v24 = vand.u32 2147483648, %v6951_v41  ;;  %vm334_vm4 = vweird.f32 %v6951_v41 }
  0xa7   :  { %v324_v52 = vpop.xlane.xlu1 %323  ;;  %vm6989_vm5 = vcmp.eq.f32.partialorder %v338_v11, 8.507059e+37  ;;  %1101 = vmatpush.bf16.msra.mxu1 %v4425_v54  ;;  %v341_v10 = vor.u32 1.1754944e-38, %v340_v24 }
  0xa8   :  { %v6955_v59 = vpop.eup %6490  ;;  %v6958_v61 = vmax.f32 %v324_v52, 1e-05 }
  0xa9   :  { %v360_v4 = vmul.f32 %v6955_v59, %v6948_v20  ;;  %vm365_vm2 = vweird.f32 %v6955_v59  ;;  %v4488_v20 = vld [vmem:[#allocation5 + $0x100] sm:$0xf] }
  0xaa   :  { %6494 = vrcp.f32 %v6958_v61  ;;  %v308_v25 = vpop.xlane.xlu0 %307  ;;  %vm6982_vm3 = vmor %vm364_vm0, %vm365_vm2  ;;  %v383_v39 = vand.u32 2147483647, %v6958_v61  ;;  %v385_v53 = vand.u32 2147483648, %v6958_v61  ;;  %v4489_v56 = vor.u32 %v5681_v51, %v4488_v20 }
  0xab   :  { %v361_v15 = vsub.f32 1.0, %v360_v4  ;;  %v6970_v22 = vpop.eup %6492  ;;  %v6976_v35 = vmax.f32 %v308_v25, 1e-05  ;;  %v5697_v4 = vld [vmem:[#allocation5 + $0x184] sm:$0xf0]  ;;  %vm379_vm7 = vweird.f32 %v6958_v61 }
  0xac   :  { %v330_v34 = vmul.f32 %v6970_v22, %v6951_v41  ;;  %vm335_vm6 = vweird.f32 %v6970_v22  ;;  %1120 = vmatpush.bf16.msra.mxu2 %v4489_v56  ;;  %v4553_v7 = vor.u32 %v5697_v4, %v4552_v57  ;;  %vm7013_vm10 = vcmp.eq.f32.partialorder %v383_v39, 8.507059e+37  ;;  %v4736_v4 = vld [vmem:[#allocation5 + $0x2f0] sm:$0xf] }
  0xad   :  { %v362_v32 = vmul.f32 %v6955_v59, %v361_v15  ;;  %6496 = vrcp.f32 %v6976_v35  ;;  %v355_v63 = vand.u32 2147483648, %v6976_v35  ;;  %v353_v6 = vand.u32 2147483647, %v6976_v35  ;;  %vm336_vm9 = vmor %vm334_vm4, %vm335_vm6 }
  0xae   :  { %v331_v49 = vsub.f32 1.0, %v330_v34  ;;  %v386_v15 = vor.u32 1.1754944e-38, %v385_v53  ;;  %vm349_vm11 = vweird.f32 %v6976_v35  ;;  %1139 = vmatpush.bf16.msra.mxu3 %v4553_v7 }
  0xaf   :  { %v363_v46 = vadd.f32 %v6955_v59, %v362_v32  ;;  %v356_v21 = vor.u32 1.1754944e-38, %v355_v63  ;;  %vm7032_vm14 = vcmp.eq.f32.partialorder %v353_v6, 8.507059e+37 }
  0xb0   :  { %v6495_v52 = vpop.eup %6494  ;;  %v332_v60 = vmul.f32 %v6970_v22, %v331_v49 }
  0xb1   :  { %v367_v58 = vsel %vm6982_vm3, %v6955_v59, %v363_v46  ;;  %v375_v62 = vmul.f32 %v6495_v52, %v6958_v61  ;;  %vm380_vm8 = vweird.f32 %v6495_v52  ;;  %v4673_v46 = vor.u32 %v5727_v43, %v4672_v42 }
  0xb2   :  { %v372_v5 = vsel %vm6963_vm1, %v371_v23, %v367_v58  ;;  %v333_v59 = vadd.f32 %v6970_v22, %v332_v60  ;;  %vm7027_vm12 = vmor %vm379_vm7, %vm380_vm8 }
  0xb3   :  { %v7006_v9 = vmul.f32 127.0, %v372_v5  ;;  %v376_v11 = vsub.f32 1.0, %v375_v62  ;;  %v6497_v17 = vpop.eup %6496  ;;  %1151 = vmatpush.bf16.msrb.mxu0 %v4673_v46  ;;  %v5743_v5 = vld [vmem:[#allocation5 + $0x2f4] sm:$0xf0]  ;;  %v4800_v62 = vld [vmem:[#allocation5 + $0x370] sm:$0xf] }
  0xb4   :  { %v337_v18 = vsel %vm336_vm9, %v6970_v22, %v333_v59  ;;  %v345_v25 = vmul.f32 %v6497_v17, %v6976_v35  ;;  %vm350_vm13 = vweird.f32 %v6497_v17 }
  0xb5   :  { %v377_v19 = vmul.f32 %v6495_v52, %v376_v11  ;;  %v7021_v23 = vmul.f32 %v7006_v9, %v6819_v0  ;;  %v342_v41 = vsel %vm6989_vm5, %v341_v10, %v337_v18  ;;  %v7038_v0 = vmul.f32 %v7006_v9, %v6824_v1  ;;  %vm351_vm15 = vmor %vm349_vm11, %vm350_vm13 }
  0xb6   :  { %v7040_v26 = vmul.f32 127.0, %v342_v41  ;;  %v7045_v28 = vmul.f32 %v7006_v9, %v6829_v2  ;;  %v346_v32 = vsub.f32 1.0, %v345_v25  ;;  %v4737_v41 = vor.u32 %v5743_v5, %v4736_v4 }
  0xb7   :  { %v378_v27 = vadd.f32 %v6495_v52, %v377_v19  ;;  %v6080_v61 = vand.u32 2147483647, %v7021_v23  ;;  %v6082_v34 = vcvt.f32.s32 %v7021_v23  ;;  %v6088_v37 = vand.u32 2147483647, %v7038_v0 }
  0xb8   :  { %v389_v38 = vmul.f32 %v7040_v26, %v6845_v8  ;;  %v390_v39 = vmul.f32 %v7040_v26, %v6857_v13  ;;  %v7058_v2 = vmul.f32 %v7040_v26, %v6862_v14  ;;  %v347_v45 = vmul.f32 %v6497_v17, %v346_v32  ;;  %1170 = vmatpush.bf16.msrb.mxu1 %v4737_v41 }
  0xb9   :  { %v382_v1 = vsel %vm7027_vm12, %v6495_v52, %v378_v27  ;;  %v7067_v13 = vmul.f32 %v7040_v26, %v6867_v16  ;;  %v5759_v16 = vld [vmem:[#allocation5 + $0x374] sm:$0xf0]  ;;  %vm7179_vm8 = vcmp.lt.f32.partialorder %v6080_v61, 8388608.0  ;;  %vm7195_vm9 = vcmp.lt.f32.partialorder %v6088_v37, 8388608.0 }
  0xba   :  { %v387_v44 = vsel %vm7013_vm10, %v386_v15, %v382_v1  ;;  %v5968_v20 = vand.u32 2147483647, %v389_v38  ;;  %v5970_v8 = vcvt.f32.s32 %v389_v38  ;;  %v348_v51 = vadd.f32 %v6497_v17, %v347_v45 }
  0xbb   :  { %v7063_v50 = vmul.f32 127.0, %v387_v44  ;;  %v5973_v14 = vand.u32 2147483648, %v389_v38  ;;  %v5976_v52 = vand.u32 2147483647, %v390_v39  ;;  %v5978_v53 = vcvt.f32.s32 %v390_v39 }
  0xbc   :  { %v5971_v54 = vcvt.s32.f32 %v5970_v8  ;;  %v5981_v56 = vand.u32 2147483648, %v390_v39  ;;  %v5984_v57 = vand.u32 2147483647, %v7058_v2  ;;  %v5986_v58 = vcvt.f32.s32 %v7058_v2 }
  0xbd   :  { %v352_v60 = vsel %vm351_vm15, %v6497_v17, %v348_v51  ;;  %vm7074_vm0 = vcmp.lt.f32.partialorder %v5968_v20, 8388608.0  ;;  %vm7078_vm1 = vcmp.lt.f32.partialorder %v5976_v52, 8388608.0  ;;  %v5979_v63 = vcvt.s32.f32 %v5978_v53  ;;  %v5723_v20 = vld [vmem:[#allocation5 + $0x254] sm:$0xf0] }
  0xbe   :  { %v357_v35 = vsel %vm7032_vm14, %v356_v21, %v352_v60  ;;  %v5972_v6 = vand.u32 2147483647, %v5971_v54  ;;  %v5987_v7 = vcvt.s32.f32 %v5986_v58  ;;  %v5989_v59 = vand.u32 2147483648, %v7058_v2 }
  0xbf   :  { %v7085_v11 = vmul.f32 127.0, %v357_v35  ;;  %v5980_v10 = vand.u32 2147483647, %v5979_v63  ;;  %vm7087_vm2 = vcmp.lt.f32.partialorder %v5984_v57, 8388608.0  ;;  %v5992_v15 = vand.u32 2147483647, %v7067_v13 }
  0xc0   :  { %v5974_v17 = vor.u32 %v5973_v14, %v5972_v6  ;;  %v5988_v18 = vand.u32 2147483647, %v5987_v7  ;;  %v5994_v19 = vcvt.f32.s32 %v7067_v13  ;;  %v5997_v22 = vand.u32 2147483648, %v7067_v13  ;;  %v4418_v6 = vld [vmem:[#allocation5 + $0x78] sm:$0xf0] }
  0xc1   :  { %v396_v21 = vmul.f32 %v7085_v11, %v6911_v40  ;;  %v7097_v24 = vmul.f32 %v7085_v11, %v6917_v47  ;;  %v5982_v25 = vor.u32 %v5981_v56, %v5980_v10  ;;  %v7104_v32 = vmul.f32 %v7085_v11, %v6922_v48 }
  0xc2   :  { %v5975_v27 = vsel %vm7074_vm0, %v5974_v17, %v389_v38  ;;  %v5990_v1 = vor.u32 %v5989_v59, %v5988_v18  ;;  %v7108_v42 = vmul.f32 %v7085_v11, %v6931_v55  ;;  %vm7124_vm4 = vcmp.lt.f32.partialorder %v5992_v15, 8388608.0  ;;  %v4664_v15 = vld [vmem:[#allocation5 + $0x260] sm:$0xf]  ;;  %v5725_v17 = vld [vmem:[#allocation5 + $0x264] sm:$0xf0] }
  0xc3   :  { %v6024_v40 = vand.u32 2147483647, %v396_v21  ;;  %v6026_v43 = vcvt.f32.s32 %v396_v21  ;;  %v6029_v47 = vand.u32 2147483648, %v396_v21  ;;  %v7110_v44 = vmax.f32 %v5975_v27, -128.0  ;;  %v4728_v18 = vld [vmem:[#allocation5 + $0x2e0] sm:$0xf] }
  0xc4   :  { %v5983_v45 = vsel %vm7078_vm1, %v5982_v25, %v390_v39  ;;  %v6032_v38 = vand.u32 2147483647, %v7097_v24  ;;  %v6034_v46 = vcvt.f32.s32 %v7097_v24  ;;  %v6037_v48 = vand.u32 2147483648, %v7097_v24 }
  0xc5   :  { %vm7117_vm3 = vcmp.lt.f32.partialorder %v6024_v40, 8388608.0  ;;  %v6027_v55 = vcvt.s32.f32 %v6026_v43  ;;  %v473_v8 = vmin.f32 %v7110_v44, 127.0  ;;  %v7122_v51 = vmax.f32 %v5983_v45, -128.0  ;;  %v5741_v40 = vld [vmem:[#allocation5 + $0x2e4] sm:$0xf0] }
  0xc6   :  { %vm7128_vm5 = vcmp.lt.f32.partialorder %v6032_v38, 8388608.0  ;;  %v6035_v52 = vcvt.s32.f32 %v6034_v46  ;;  %v5991_v53 = vsel %vm7087_vm2, %v5990_v1, %v7058_v2  ;;  %v6040_v54 = vand.u32 2147483647, %v7104_v32  ;;  %v5662_v2 = vld [vmem:[#allocation5 + $0x74] sm:$0xf] }
  0xc7   :  { %v6028_v56 = vand.u32 2147483647, %v6027_v55  ;;  %v474_v57 = vmin.f32 %v7122_v51, 127.0  ;;  %v6042_v58 = vcvt.f32.s32 %v7104_v32  ;;  %v6045_v60 = vand.u32 2147483648, %v7104_v32  ;;  %v4792_v38 = vld [vmem:[#allocation5 + $0x360] sm:$0xf] }
  0xc8   :  { %v6036_v63 = vand.u32 2147483647, %v6035_v52  ;;  %vm7139_vm6 = vcmp.lt.f32.partialorder %v6040_v54, 8388608.0  ;;  %v7143_v5 = vmax.f32 %v5991_v53, -128.0  ;;  %v5995_v35 = vcvt.s32.f32 %v5994_v19  ;;  %v5757_v46 = vld [vmem:[#allocation5 + $0x364] sm:$0xf0] }
  0xc9   :  { %v6030_v7 = vor.u32 %v6029_v47, %v6028_v56  ;;  %v6043_v59 = vcvt.s32.f32 %v6042_v58  ;;  %v6048_v10 = vand.u32 2147483647, %v7108_v42  ;;  %v6050_v12 = vcvt.f32.s32 %v7108_v42  ;;  %v5660_v55 = vld [vmem:[#allocation5 + $0x64] sm:$0xf]  ;;  %v4410_v52 = vld [vmem:[#allocation5 + $0x68] sm:$0xf0] }
  0xca   :  { %v6038_v41 = vor.u32 %v6037_v48, %v6036_v63  ;;  %v475_v25 = vmin.f32 %v7143_v5, 127.0  ;;  %v5996_v27 = vand.u32 2147483647, %v5995_v35  ;;  %v6053_v1 = vand.u32 2147483648, %v7108_v42  ;;  %v4656_v58 = vld [vmem:[#allocation5 + $0x250] sm:$0xf] }
  0xcb   :  { %v6031_v19 = vsel %vm7117_vm3, %v6030_v7, %v396_v21  ;;  %v6044_v43 = vand.u32 2147483647, %v6043_v59  ;;  %vm7151_vm7 = vcmp.lt.f32.partialorder %v6048_v10, 8388608.0  ;;  %v6051_v45 = vcvt.s32.f32 %v6050_v12  ;;  %v4720_v59 = vld [vmem:[#allocation5 + $0x2d0] sm:$0xf] }
  0xcc   :  { %v452_v48 = vmax.f32 %v6031_v19, -128.0  ;;  %v6039_v53 = vsel %vm7128_vm5, %v6038_v41, %v7097_v24  ;;  %v5998_v54 = vor.u32 %v5997_v22, %v5996_v27  ;;  %v4801_v56 = vor.u32 %v5759_v16, %v4800_v62  ;;  %v5739_v10 = vld [vmem:[#allocation5 + $0x2d4] sm:$0xf0]  ;;  %v4784_v12 = vld [vmem:[#allocation5 + $0x350] sm:$0xf] }
  0xcd   :  { %v453_v21 = vmax.f32 %v6039_v53, -128.0  ;;  %v6046_v63 = vor.u32 %v6045_v60, %v6044_v43  ;;  %v6052_v35 = vand.u32 2147483647, %v6051_v45  ;;  %v4421_v7 = vor.u32 %v5662_v2, %v4418_v6  ;;  %v5658_v22 = vld [vmem:[#allocation5 + $0x54] sm:$0xf] }
  0xce   :  { %v480_v49 = vmin.f32 %v452_v48, 127.0  ;;  %v5999_v19 = vsel %vm7124_vm4, %v5998_v54, %v7067_v13  ;;  %1189 = vmatpush.bf16.msrb.mxu2 %v4801_v56  ;;  %v4665_v39 = vor.u32 %v5725_v17, %v4664_v15  ;;  %v4729_v24 = vor.u32 %v5741_v40, %v4728_v18  ;;  %v4402_v62 = vld [vmem:[#allocation5 + $0x58] sm:$0xf0]  ;;  %v4648_v16 = vld [vmem:[#allocation5 + $0x240] sm:$0xf] }
  0xcf   :  { %v5721_v41 = vld [vmem:[#allocation5 + $0x244] sm:$0xf0]  ;;  %v481_v27 = vmin.f32 %v453_v21, 127.0  ;;  %v6047_v60 = vsel %vm7139_vm6, %v6046_v63, %v7104_v32  ;;  %v6054_v2 = vor.u32 %v6053_v1, %v6052_v35  ;;  %v448_v6 = vmax.f32 %v5999_v19, -128.0  ;;  %1208 = vmatpush.bf16.msrb.mxu3 %v4421_v7  ;;  %v4712_v43 = vld [vmem:[#allocation5 + $0x2c0] sm:$0xf] }
  0xd0   :  { %v5737_v45 = vld [vmem:[#allocation5 + $0x2c4] sm:$0xf0]  ;;  %v7166_v13 = vpack.c.bf16 %v480_v49, %v473_v8  ;;  %v454_v14 = vmax.f32 %v6047_v60, -128.0  ;;  %1152 = vmatpush.bf16.msrb.mxu0 %v4665_v39  ;;  %1171 = vmatpush.bf16.msrb.mxu1 %v4729_v24  ;;  %v4793_v15 = vor.u32 %v5757_v46, %v4792_v38  ;;  %v4413_v17 = vor.u32 %v5660_v55, %v4410_v52  ;;  %v4776_v18 = vld [vmem:[#allocation5 + $0x340] sm:$0xf] }
  0xd1   :  { %v5753_v40 = vld [vmem:[#allocation5 + $0x344] sm:$0xf0]  ;;  %v7170_v4 = vpack.c.bf16 %v481_v27, %v474_v57  ;;  %v6055_v32 = vsel %vm7151_vm7, %v6054_v2, %v7108_v42  ;;  %v476_v1 = vmin.f32 %v448_v6, 127.0  ;;  %v4657_v48 = vor.u32 %v5723_v20, %v4656_v58  ;;  %v5656_v44 = vld [vmem:[#allocation5 + $0x44] sm:$0xf] }
  0xd2   :  { %v4394_v49 = vld [vmem:[#allocation5 + $0x48] sm:$0xf0]  ;;  %1083 = vmatmul.bf16.vlgmr.msra.gmra.mxu0 %v7166_v13  ;;  %v482_v8 = vmin.f32 %v454_v14, 127.0  ;;  %v455_v53 = vmax.f32 %v6055_v32, -128.0  ;;  %1190 = vmatpush.bf16.msrb.mxu2 %v4793_v15  ;;  %v4721_v38 = vor.u32 %v5739_v10, %v4720_v59  ;;  %v4785_v46 = vor.u32 %v5755_v36, %v4784_v12  ;;  %v7275_v6 = vld [vmem:[#allocation5 + $0x214] sm:$0xf0] }
  0xd3   :  { %1102 = vmatmul.bf16.vlgmr.msra.gmra.mxu1 %v7170_v4  ;;  %1209 = vmatpush.bf16.msrb.mxu3 %v4413_v17  ;;  %v4405_v51 = vor.u32 %v5658_v22, %v4402_v62  ;;  %v4649_v57 = vor.u32 %v5721_v41, %v4648_v16  ;;  %v4713_v55 = vor.u32 %v5737_v45, %v4712_v43  ;;  %v6083_v58 = vcvt.s32.f32 %v6082_v34  ;;  %v4760_v16 = vld [vmem:[#allocation5 + $0x320] sm:$0xf] }
  0xd4   :  { %v7185_v47 = vpack.c.bf16 %v482_v8, %v475_v25  ;;  %v483_v52 = vmin.f32 %v455_v53, 127.0  ;;  %1153 = vmatpush.bf16.msrb.mxu0 %v4657_v48  ;;  %1172 = vmatpush.bf16.msrb.mxu1 %v4721_v38  ;;  %v4777_v36 = vor.u32 %v5753_v40, %v4776_v18  ;;  %v4397_v54 = vor.u32 %v5656_v44, %v4394_v49  ;;  %v5719_v53 = vld [vmem:[#allocation5 + $0x234] sm:$0xf0] }
  0xd5   :  { %v410_v56 = vmul.f32 %v7063_v50, %v6885_v29  ;;  %v411_v61 = vmul.f32 %v7063_v50, %v6890_v30  ;;  %v8996_v20 = vcvt.f32.s32 %v7038_v0  ;;  %v6093_v29 = vand.u32 2147483648, %v7038_v0 }
  0xd6   :  { %1121 = vmatmul.bf16.vlgmr.msra.gmra.mxu2 %v7185_v47  ;;  %v7200_v25 = vpack.c.bf16 %v483_v52, %v476_v1  ;;  %v7207_v34 = vmul.f32 %v7063_v50, %v6895_v31  ;;  %v6084_v30 = vand.u32 2147483647, %v6083_v58  ;;  %v8997_v19 = vand.u32 2147483648, %v7021_v23  ;;  %v4640_v1 = vld [vmem:[#allocation5 + $0x230] sm:$0xf] }
  0xd7   :  { %v6091_v21 = vcvt.s32.f32 %v8996_v20  ;;  %1191 = vmatpush.bf16.msrb.mxu2 %v4785_v46  ;;  %1210 = vmatpush.bf16.msrb.mxu3 %v4405_v51  ;;  %v6136_v37 = vand.u32 2147483647, %v410_v56  ;;  %v6138_v63 = vcvt.f32.s32 %v410_v56  ;;  %v6141_v35 = vand.u32 2147483648, %v410_v56 }
  0xd8   :  { %1140 = vmatmul.bf16.vlgmr.msra.gmra.mxu3 %v7200_v25  ;;  %1154 = vmatpush.bf16.msrb.mxu0 %v4649_v57  ;;  %v6144_v59 = vand.u32 2147483647, %v411_v61  ;;  %v6146_v10 = vcvt.f32.s32 %v411_v61  ;;  %v6149_v12 = vand.u32 2147483648, %v411_v61  ;;  %v6086_v39 = vor.u32 %v8997_v19, %v6084_v30  ;;  %v5735_v30 = vld [vmem:[#allocation5 + $0x2b4] sm:$0xf0] }
  0xd9   :  { %v6092_v7 = vand.u32 2147483647, %v6091_v21  ;;  %1173 = vmatpush.bf16.msrb.mxu1 %v4713_v55  ;;  %vm7212_vm10 = vcmp.lt.f32.partialorder %v6136_v37, 8388608.0  ;;  %v6139_v24 = vcvt.s32.f32 %v6138_v63  ;;  %v6096_v22 = vand.u32 2147483647, %v7045_v28 }
  0xda   :  { %vm7217_vm11 = vcmp.lt.f32.partialorder %v6144_v59, 8388608.0  ;;  %v6147_v41 = vcvt.s32.f32 %v6146_v10  ;;  %v6098_v27 = vcvt.f32.s32 %v7045_v28  ;;  %v6087_v60 = vsel %vm7179_vm8, %v6086_v39, %v7021_v23  ;;  %v5751_v37 = vld [vmem:[#allocation5 + $0x334] sm:$0xf0]  ;;  %v5654_v63 = vld [vmem:[#allocation5 + $0x34] sm:$0xf] }
  0xdb   :  { %v6094_v62 = vor.u32 %v6093_v29, %v6092_v7  ;;  %1192 = vmatpush.bf16.msrb.mxu2 %v4777_v36  ;;  %1211 = vmatpush.bf16.msrb.mxu3 %v4397_v54  ;;  %v6140_v2 = vand.u32 2147483647, %v6139_v24  ;;  %vm7225_vm12 = vcmp.lt.f32.partialorder %v6096_v22, 8388608.0  ;;  %v6101_v43 = vand.u32 2147483648, %v7045_v28  ;;  %v4704_v29 = vld [vmem:[#allocation5 + $0x2b0] sm:$0xf] }
  0xdc   :  { %v459_v45 = vmax.f32 %v6087_v60, -128.0  ;;  %v6148_v15 = vand.u32 2147483647, %v6147_v41  ;;  %v6099_v17 = vcvt.s32.f32 %v6098_v27  ;;  %v6152_v32 = vand.u32 2147483647, %v7207_v34 }
  0xdd   :  { %v6095_v14 = vsel %vm7195_vm9, %v6094_v62, %v7038_v0  ;;  %v6142_v18 = vor.u32 %v6141_v35, %v6140_v2  ;;  %v6154_v23 = vcvt.f32.s32 %v7207_v34  ;;  %v6157_v8 = vand.u32 2147483648, %v7207_v34  ;;  %v4386_v35 = vld [vmem:[#allocation5 + $0x38] sm:$0xf0]  ;;  %v5717_v19 = vld [vmem:[#allocation5 + $0x224] sm:$0xf0] }
  0xde   :  { %v460_v40 = vmax.f32 %v6095_v14, -128.0  ;;  %v487_v48 = vmin.f32 %v459_v45, 127.0  ;;  %v6150_v44 = vor.u32 %v6149_v12, %v6148_v15  ;;  %v6100_v49 = vand.u32 2147483647, %v6099_v17  ;;  %v4632_v12 = vld [vmem:[#allocation5 + $0x220] sm:$0xf] }
  0xdf   :  { %v6143_v38 = vsel %vm7212_vm10, %v6142_v18, %v410_v56  ;;  %vm7238_vm13 = vcmp.lt.f32.partialorder %v6152_v32, 8388608.0  ;;  %v6155_v51 = vcvt.s32.f32 %v6154_v23  ;;  %v7246_v52 = vmul.f32 %v7006_v9, %v6834_v3  ;;  %v4768_v3 = vld [vmem:[#allocation5 + $0x330] sm:$0xf]  ;;  %v7258_v39 = vld [vmem:[#allocation5 + $0x2a0] sm:$0xf] }
  0xe0   :  { %v488_v46 = vmin.f32 %v460_v40, 127.0  ;;  %v466_v57 = vmax.f32 %v6143_v38, -128.0  ;;  %v6151_v55 = vsel %vm7217_vm11, %v6150_v44, %v411_v61  ;;  %v6102_v42 = vor.u32 %v6101_v43, %v6100_v49  ;;  %v5749_v41 = vld [vmem:[#allocation5 + $0x324] sm:$0xf0]  ;;  %v7269_v27 = vld [vmem:[#allocation5 + $0x24] sm:$0xf] }
  0xe1   :  { %v467_v36 = vmax.f32 %v6151_v55, -128.0  ;;  %v6156_v54 = vand.u32 2147483647, %v6155_v51  ;;  %v7250_v56 = vmul.f32 %v7063_v50, %v6900_v33  ;;  %v4641_v58 = vor.u32 %v5719_v53, %v4640_v1  ;;  %v7271_v60 = vld [vmem:[#allocation5 + $0x28] sm:$0xf0] }
  0xe2   :  { %v494_v5 = vmin.f32 %v466_v57, 127.0  ;;  %v6103_v20 = vsel %vm7225_vm12, %v6102_v42, %v7045_v28  ;;  %v6104_v21 = vand.u32 2147483647, %v7246_v52  ;;  %v6106_v61 = vcvt.f32.s32 %v7246_v52  ;;  %v7260_v28 = vld [vmem:[#allocation5 + $0x2a4] sm:$0xf0] }
  0xe3   :  { %v495_v7 = vmin.f32 %v467_v36, 127.0  ;;  %v6158_v59 = vor.u32 %v6157_v8, %v6156_v54  ;;  %v461_v33 = vmax.f32 %v6103_v20, -128.0  ;;  %v6109_v10 = vand.u32 2147483648, %v7246_v52  ;;  %1155 = vmatpush.bf16.msrb.mxu0 %v4641_v58  ;;  %v7273_v2 = vld [vmem:[#allocation5 + $0x210] sm:$0xf] }
  0xe4   :  { %v7262_v31 = vpack.c.bf16 %v494_v5, %v487_v48  ;;  %vm7264_vm14 = vcmp.lt.f32.partialorder %v6104_v21, 8388608.0  ;;  %v6107_v22 = vcvt.s32.f32 %v6106_v61  ;;  %v6160_v62 = vand.u32 2147483647, %v7250_v56  ;;  %v7283_v17 = vld [vmem:[#allocation5 + $0x290] sm:$0xf] }
  0xe5   :  { %v7277_v43 = vpack.c.bf16 %v495_v7, %v488_v46  ;;  %v6159_v45 = vsel %vm7238_vm13, %v6158_v59, %v7207_v34  ;;  %v489_v14 = vmin.f32 %v461_v33, 127.0  ;;  %v6162_v15 = vcvt.f32.s32 %v7250_v56  ;;  %v7285_v18 = vld [vmem:[#allocation5 + $0x294] sm:$0xf0]  ;;  %v7289_v1 = vld [vmem:[#allocation5 + $0x310] sm:$0xf] }
  0xe6   :  { %1088 = vmatmul.bf16.gmra.mxu0 %v7262_v31  ;;  %v468_v40 = vmax.f32 %v6159_v45, -128.0  ;;  %v6108_v32 = vand.u32 2147483647, %v6107_v22  ;;  %v6165_v23 = vand.u32 2147483648, %v7250_v56  ;;  %v7291_v48 = vld [vmem:[#allocation5 + $0x314] sm:$0xf0]  ;;  %v4705_v49 = vor.u32 %v5735_v30, %v4704_v29 }
  0xe7   :  { %v7293_v44 = vld [vmem:[#allocation5 + $0x14] sm:$0xf]  ;;  %1107 = vmatmul.bf16.gmra.mxu1 %v7277_v43  ;;  %v6163_v34 = vcvt.s32.f32 %v6162_v15  ;;  %v4769_v8 = vor.u32 %v5751_v37, %v4768_v3  ;;  %v4389_v53 = vor.u32 %v5654_v63, %v4386_v35  ;;  %v7296_v38 = vld [vmem:[#allocation5 + $0x18] sm:$0xf0]  ;;  %v7298_v46 = vld [vmem:[#allocation5 + $0x200] sm:$0xf]  ;;  %v4633_v55 = vor.u32 %v5717_v19, %v4632_v12 }
  0xe8   :  { %v7300_v0 = vld [vmem:[#allocation5 + $0x204] sm:$0xf0]  ;;  %v496_v51 = vmin.f32 %v468_v40, 127.0  ;;  %v6110_v57 = vor.u32 %v6109_v10, %v6108_v32  ;;  %v4697_v42 = vor.u32 %v7260_v28, %v7258_v39  ;;  %v7304_v36 = vld [vmem:[#allocation5 + $0x280] sm:$0xf]  ;;  %1174 = vmatpush.bf16.msrb.mxu1 %v4705_v49  ;;  %v4761_v5 = vor.u32 %v5749_v41, %v4760_v16  ;;  %v6587_v16 = vld [vmem:[%s8955_s1 + $0x58] sm:$0xff] }
  0xe9   :  { %v7306_v54 = vld [vmem:[#allocation5 + $0x284] sm:$0xf0]  ;;  %v6164_v58 = vand.u32 2147483647, %v6163_v34  ;;  %1193 = vmatpush.bf16.msrb.mxu2 %v4769_v8  ;;  %v4381_v20 = vor.u32 %v7269_v27, %v7271_v60  ;;  %v4625_v21 = vor.u32 %v7275_v6, %v7273_v2  ;;  %v7312_v61 = vld [vmem:[#allocation5 + $0x300] sm:$0xf]  ;;  %1212 = vmatpush.bf16.msrb.mxu3 %v4389_v53  ;;  %v4689_v63 = vor.u32 %v7285_v18, %v7283_v17 }
  0xea   :  { %v7314_v29 = vld [vmem:[#allocation5 + $0x304] sm:$0xf0]  ;;  %v7316_v30 = vpack.c.bf16 %v496_v51, %v489_v14  ;;  %v6111_v3 = vsel %vm7264_vm14, %v6110_v57, %v7246_v52  ;;  %vm7321_vm15 = vcmp.lt.f32.partialorder %v6160_v62, 8388608.0  ;;  %1156 = vmatpush.bf16.msrb.mxu0 %v4633_v55  ;;  %v7327_v35 = vld [vmem:[#allocation5 + $0x4] sm:$0xf]  ;;  %v4753_v10 = vor.u32 %v7291_v48, %v7289_v1  ;;  %v6590_v18 = vld [vmem:[%s8955_s1 + $0x30] sm:$0xff] }
  0xeb   :  { %v4362_v7 = vld [vmem:[#allocation5 + $0x8] sm:$0xf0]  ;;  %v6166_v59 = vor.u32 %v6165_v23, %v6164_v58  ;;  %v462_v33 = vmax.f32 %v6111_v3, -128.0  ;;  %v4373_v52 = vor.u32 %v7293_v44, %v7296_v38  ;;  %v4617_v12 = vor.u32 %v7300_v0, %v7298_v46  ;;  %v6586_v22 = vld [vmem:[%s8955_s1 + $0x20] sm:$0xff] }
  0xec   :  { %1126 = vmatmul.bf16.gmra.mxu2 %v7316_v30  ;;  %v4681_v19 = vor.u32 %v7306_v54, %v7304_v36  ;;  %v4745_v39 = vor.u32 %v7314_v29, %v7312_v61  ;;  %v4365_v28 = vor.u32 %v7327_v35, %v4362_v7  ;;  %1175 = vmatpush.bf16.msrb.mxu1 %v4697_v42  ;;  %v6589_v6 = vld [vmem:[%s8955_s1 + $0x60] sm:$0xff]  ;;  %v6591_v58 = vld [vmem:[%s8955_s1 + $0x68] sm:$0xff] }
  0xed   :  { %v6167_v24 = vsel %vm7321_vm15, %v6166_v59, %v7250_v56  ;;  %1194 = vmatpush.bf16.msrb.mxu2 %v4761_v5  ;;  %v393_v62 = vmul.f32 %v6586_v22, %v7040_v26  ;;  %v7352_v41 = vmul.f32 %v6587_v16, %v7085_v11  ;;  %v490_v60 = vmin.f32 %v462_v33, 127.0  ;;  %1213 = vmatpush.bf16.msrb.mxu3 %v4381_v20  ;;  %v6588_v56 = vld [vmem:[%s8955_s1 + $0x28] sm:$0xff]  ;;  %v5678_v59 = vld [vmem:[#allocation5 + $0xf4] sm:$0xf] }
  0xee   :  { %v469_v27 = vmax.f32 %v6167_v24, -128.0  ;;  %1157 = vmatpush.bf16.msrb.mxu0 %v4625_v21  ;;  %v7358_v2 = vmul.f32 %v6588_v56, %v7040_v26  ;;  %v7364_v45 = vmul.f32 %v6589_v6, %v7085_v11  ;;  %v7371_v40 = vmul.f32 %v6590_v18, %v7040_v26  ;;  %v5694_v16 = vld [vmem:[#allocation5 + $0x174] sm:$0xf]  ;;  %v4610_v56 = vld [vmem:[#allocation5 + $0x1f8] sm:$0xf0] }
  0xef   :  { %v6000_v14 = vand.u32 2147483647, %v393_v62  ;;  %v6002_v15 = vcvt.f32.s32 %v393_v62  ;;  %v6056_v17 = vand.u32 2147483647, %v7352_v41  ;;  %v6005_v23 = vand.u32 2147483648, %v393_v62 }
  0xf0   :  { %v497_v32 = vmin.f32 %v469_v27, 127.0  ;;  %v6058_v1 = vcvt.f32.s32 %v7352_v41  ;;  %v6008_v48 = vand.u32 2147483647, %v7358_v2  ;;  %1176 = vmatpush.bf16.msrb.mxu1 %v4689_v63  ;;  %v6061_v49 = vand.u32 2147483648, %v7352_v41  ;;  %v4546_v27 = vld [vmem:[#allocation5 + $0x178] sm:$0xf0] }
  0xf1   :  { %1195 = vmatpush.bf16.msrb.mxu2 %v4753_v10  ;;  %vm7375_vm0 = vcmp.lt.f32.partialorder %v6000_v14, 8388608.0  ;;  %v6003_v34 = vcvt.s32.f32 %v6002_v15  ;;  %v6010_v8 = vcvt.f32.s32 %v7358_v2  ;;  %1214 = vmatpush.bf16.msrb.mxu3 %v4373_v52  ;;  %vm7383_vm1 = vcmp.lt.f32.partialorder %v6056_v17, 8388608.0  ;;  %v5726_v6 = vld [vmem:[#allocation5 + $0x274] sm:$0xf]  ;;  %v4674_v14 = vld [vmem:[#allocation5 + $0x278] sm:$0xf0] }
  0xf2   :  { %v7381_v53 = vpack.c.bf16 %v497_v32, %v490_v60  ;;  %1158 = vmatpush.bf16.msrb.mxu0 %v4617_v12  ;;  %v6059_v46 = vcvt.s32.f32 %v6058_v1  ;;  %vm7387_vm2 = vcmp.lt.f32.partialorder %v6008_v48, 8388608.0  ;;  %v6064_v55 = vand.u32 2147483647, %v7364_v45  ;;  %v5710_v60 = vld [vmem:[#allocation5 + $0x1f4] sm:$0xf] }
  0xf3   :  { %v6004_v51 = vand.u32 2147483647, %v6003_v34  ;;  %v6011_v57 = vcvt.s32.f32 %v6010_v8  ;;  %v6066_v42 = vcvt.f32.s32 %v7364_v45  ;;  %v6013_v54 = vand.u32 2147483648, %v7358_v2  ;;  %v5676_v32 = vld [vmem:[#allocation5 + $0xe4] sm:$0xf] }
  0xf4   :  { %1145 = vmatmul.bf16.gmra.mxu3 %v7381_v53  ;;  %v6060_v36 = vand.u32 2147483647, %v6059_v46  ;;  %v7399_v5 = vmul.f32 %v6591_v58, %v7085_v11  ;;  %v6016_v20 = vand.u32 2147483647, %v7371_v40  ;;  %1177 = vmatpush.bf16.msrb.mxu1 %v4681_v19  ;;  %v6069_v3 = vand.u32 2147483648, %v7364_v45 }
  0xf5   :  { %1196 = vmatpush.bf16.msrb.mxu2 %v4745_v39  ;;  %v6006_v21 = vor.u32 %v6005_v23, %v6004_v51  ;;  %v6012_v61 = vand.u32 2147483647, %v6011_v57  ;;  %v6067_v29 = vcvt.s32.f32 %v6066_v42  ;;  %1215 = vmatpush.bf16.msrb.mxu3 %v4365_v28  ;;  %vm7403_vm3 = vcmp.lt.f32.partialorder %v6064_v55, 8388608.0  ;;  %v4482_v19 = vld [vmem:[#allocation5 + $0xf8] sm:$0xf0] }
  0xf6   :  { %v6062_v37 = vor.u32 %v6061_v49, %v6060_v36  ;;  %vm7407_vm4 = vcmp.lt.f32.partialorder %v6016_v20, 8388608.0  ;;  %v6018_v7 = vcvt.f32.s32 %v7371_v40  ;;  %v6021_v12 = vand.u32 2147483648, %v7371_v40  ;;  %v5692_v34 = vld [vmem:[#allocation5 + $0x164] sm:$0xf]  ;;  %v4538_v49 = vld [vmem:[#allocation5 + $0x168] sm:$0xf0] }
  0xf7   :  { %v6007_v33 = vsel %vm7375_vm0, %v6006_v21, %v393_v62  ;;  %v6014_v10 = vor.u32 %v6013_v54, %v6012_v61  ;;  %v6068_v52 = vand.u32 2147483647, %v6067_v29  ;;  %v6074_v22 = vcvt.f32.s32 %v7399_v5  ;;  %v4602_v51 = vld [vmem:[#allocation5 + $0x1e8] sm:$0xf0]  ;;  %v5724_v54 = vld [vmem:[#allocation5 + $0x264] sm:$0xf] }
  0xf8   :  { %v6063_v39 = vsel %vm7383_vm1, %v6062_v37, %v7352_v41  ;;  %v449_v28 = vmax.f32 %v6007_v33, -128.0  ;;  %v6019_v24 = vcvt.s32.f32 %v6018_v7  ;;  %v6072_v18 = vand.u32 2147483647, %v7399_v5  ;;  %v4474_v41 = vld [vmem:[#allocation5 + $0xe8] sm:$0xf0] }
  0xf9   :  { %v456_v62 = vmax.f32 %v6063_v39, -128.0  ;;  %v6015_v15 = vsel %vm7387_vm2, %v6014_v10, %v7358_v2  ;;  %v6070_v17 = vor.u32 %v6069_v3, %v6068_v52  ;;  %v6075_v44 = vcvt.s32.f32 %v6074_v22  ;;  %v5708_v2 = vld [vmem:[#allocation5 + $0x1e4] sm:$0xf]  ;;  %v4666_v58 = vld [vmem:[#allocation5 + $0x268] sm:$0xf0] }
  0xfa   :  { %v477_v23 = vmin.f32 %v449_v28, 127.0  ;;  %v450_v1 = vmax.f32 %v6015_v15, -128.0  ;;  %v6020_v48 = vand.u32 2147483647, %v6019_v24  ;;  %v6077_v46 = vand.u32 2147483648, %v7399_v5 }
  0xfb   :  { %v484_v8 = vmin.f32 %v456_v62, 127.0  ;;  %v6071_v38 = vsel %vm7403_vm3, %v6070_v17, %v7364_v45  ;;  %v4485_v0 = vor.u32 %v5678_v59, %v4482_v19  ;;  %v6076_v36 = vand.u32 2147483647, %v6075_v44  ;;  %v5674_v20 = vld [vmem:[#allocation5 + $0xd4] sm:$0xf] }
  0xfc   :  { %v457_v57 = vmax.f32 %v6071_v38, -128.0  ;;  %v478_v55 = vmin.f32 %v450_v1, 127.0  ;;  %v6022_v42 = vor.u32 %v6021_v12, %v6020_v48  ;;  %v4466_v21 = vld [vmem:[#allocation5 + $0xd8] sm:$0xf0]  ;;  %v4549_v29 = vor.u32 %v5694_v16, %v4546_v27  ;;  %v7429_v45 = vld [vmem:[#allocation5 + $0x154] sm:$0xf] }
  0xfd   :  { %v7427_v61 = vpack.c.bf16 %v484_v8, %v477_v23  ;;  %1227 = vmatpush.bf16.msra.mxu0 %v4485_v0  ;;  %v4613_v3 = vor.u32 %v5710_v60, %v4610_v56  ;;  %v4677_v37 = vor.u32 %v5726_v6, %v4674_v14  ;;  %v7431_v63 = vld [vmem:[#allocation5 + $0x158] sm:$0xf0]  ;;  %v7433_v7 = vld [vmem:[#allocation5 + $0x1d4] sm:$0xf]  ;;  %v6078_v12 = vor.u32 %v6077_v46, %v6076_v36  ;;  %v7444_v28 = vld [vmem:[#allocation5 + $0xc4] sm:$0xf] }
  0xfe   :  { %v7435_v59 = vld [vmem:[#allocation5 + $0x1d8] sm:$0xf0]  ;;  %v7437_v33 = vld [vmem:[#allocation5 + $0x254] sm:$0xf]  ;;  %v485_v10 = vmin.f32 %v457_v57, 127.0  ;;  %v6023_v52 = vsel %vm7407_vm4, %v6022_v42, %v7371_v40  ;;  %v4477_v19 = vor.u32 %v5676_v32, %v4474_v41  ;;  %vm6073_vm5 = vcmp.lt.f32.partialorder %v6072_v18, 8388608.0  ;;  %1246 = vmatpush.bf16.msra.mxu1 %v4549_v29 }
  0xff   :  { %v7442_v39 = vld [vmem:[#allocation5 + $0x258] sm:$0xf0]  ;;  %1159 = vmatmul.bf16.vlgmr.msrb.gmra.mxu0 %v7427_v61  ;;  %v451_v24 = vmax.f32 %v6023_v52, -128.0  ;;  %v4541_v22 = vor.u32 %v5692_v34, %v4538_v49  ;;  %v4458_v16 = vld [vmem:[#allocation5 + $0xc8] sm:$0xf0]  ;;  %v6079_v35 = vsel %vm6073_vm5, %v6078_v12, %v7399_v5  ;;  %1265 = vmatpush.bf16.msra.mxu2 %v4613_v3  ;;  %v4605_v40 = vor.u32 %v5708_v2, %v4602_v51  ;;  %v6592_v49 = vld [vmem:[%s8955_s1 + $0x90] sm:$0xff] }
 0x100   :  { %v7447_v27 = vld [vmem:[#allocation5 + $0x144] sm:$0xf]  ;;  %v7449_v60 = vpack.c.bf16 %v485_v10, %v478_v55  ;;  %1284 = vmatpush.bf16.msra.mxu3 %v4677_v37  ;;  %v4522_v56 = vld [vmem:[#allocation5 + $0x148] sm:$0xf0]  ;;  %v458_v62 = vmax.f32 %v6079_v35, -128.0  ;;  %v4669_v17 = vor.u32 %v5724_v54, %v4666_v58  ;;  %v4469_v18 = vor.u32 %v5674_v20, %v4466_v21  ;;  %v6594_v51 = vld [vmem:[%s8955_s1 + $0x98] sm:$0xff] }
 0x101   :  { %v7452_v6 = vld [vmem:[#allocation5 + $0x1c4] sm:$0xf]  ;;  %v7454_v14 = vld [vmem:[#allocation5 + $0x1c8] sm:$0xf0]  ;;  %v479_v15 = vmin.f32 %v451_v24, 127.0  ;;  %1228 = vmatpush.bf16.msra.mxu0 %v4477_v19  ;;  %v4533_v5 = vor.u32 %v7429_v45, %v7431_v63  ;;  %v4597_v23 = vor.u32 %v7433_v7, %v7435_v59  ;;  %v4661_v1 = vor.u32 %v7437_v33, %v7442_v39  ;;  %v6595_v36 = vld [vmem:[%s8955_s1 + $0xd0] sm:$0xff] }
 0x102   :  { %v7456_v32 = vld [vmem:[#allocation5 + $0x244] sm:$0xf]  ;;  %v7458_v41 = vld [vmem:[#allocation5 + $0x248] sm:$0xf0]  ;;  %1178 = vmatmul.bf16.vlgmr.msrb.gmra.mxu1 %v7449_v60  ;;  %v4461_v48 = vor.u32 %v7444_v28, %v4458_v16  ;;  %v486_v44 = vmin.f32 %v458_v62, 127.0  ;;  %v4525_v34 = vor.u32 %v7447_v27, %v4522_v56  ;;  %v7473_v8 = vmul.f32 %v6592_v49, %v7006_v9  ;;  %v6597_v27 = vld [vmem:[%s8955_s1 + $0xd8] sm:$0xff] }
 0x103   :  { %1247 = vmatpush.bf16.msra.mxu1 %v4541_v22  ;;  %v6593_v38 = vld [vmem:[%s8955_s1 + $0xc8] sm:$0xff]  ;;  %1266 = vmatpush.bf16.msra.mxu2 %v4605_v40  ;;  %v4589_v0 = vor.u32 %v7452_v6, %v7454_v14  ;;  %v4653_v2 = vor.u32 %v7456_v32, %v7458_v41  ;;  %v7490_v57 = vmul.f32 %v6594_v51, %v7006_v9  ;;  %v6596_v29 = vld [vmem:[%s8955_s1 + $0xa0] sm:$0xff]  ;;  %v5670_v32 = vld [vmem:[#allocation5 + $0xb4] sm:$0xf]  ;;  %s264_s1 = sld [smem:[#allocation2]] }
 0x104   :  { %v7479_v46 = vmul.f32 %v6593_v38, %v7063_v50  ;;  %1216 = vmatmul.bf16.vlgmr.msrb.gmra.mxu3 %v7166_v13  ;;  %v7492_v55 = vpack.c.bf16 %v486_v44, %v479_v15  ;;  %v6112_v13 = vand.u32 2147483647, %v7473_v8  ;;  %v6114_v42 = vcvt.f32.s32 %v7473_v8  ;;  %v4450_v41 = vld [vmem:[#allocation5 + $0xb8] sm:$0xf0]  ;;  %v5686_v44 = vld [vmem:[#allocation5 + $0x134] sm:$0xf] }
 0x105   :  { %1285 = vmatpush.bf16.msra.mxu3 %v4669_v17  ;;  %1229 = vmatpush.bf16.msra.mxu0 %v4469_v18  ;;  %v7500_v54 = vmul.f32 %v6595_v36, %v7063_v50  ;;  %v6120_v21 = vand.u32 2147483647, %v7490_v57  ;;  %v7509_v3 = vmul.f32 %v6596_v29, %v7006_v9  ;;  %v6117_v45 = vand.u32 2147483648, %v7473_v8  ;;  %v4642_v36 = vld [vmem:[#allocation5 + $0x238] sm:$0xf0] }
 0x106   :  { %v6168_v58 = vand.u32 2147483647, %v7479_v46  ;;  %v6170_v20 = vcvt.f32.s32 %v7479_v46  ;;  %1197 = vmatmul.bf16.vlgmr.msrb.gmra.mxu2 %v7492_v55  ;;  %v6115_v37 = vcvt.s32.f32 %v6114_v42  ;;  %v6173_v63 = vand.u32 2147483648, %v7479_v46  ;;  %v5718_v42 = vld [vmem:[#allocation5 + $0x234] sm:$0xf] }
 0x107   :  { %1248 = vmatpush.bf16.msra.mxu1 %v4533_v5  ;;  %v6122_v7 = vcvt.f32.s32 %v7490_v57  ;;  %1267 = vmatpush.bf16.msra.mxu2 %v4597_v23  ;;  %vm7515_vm6 = vcmp.lt.f32.partialorder %v6112_v13, 8388608.0  ;;  %v6125_v10 = vand.u32 2147483648, %v7490_v57  ;;  %v6176_v52 = vand.u32 2147483647, %v7500_v54  ;;  %v5702_v13 = vld [vmem:[#allocation5 + $0x1b4] sm:$0xf] }
 0x108   :  { %v6171_v33 = vcvt.s32.f32 %v6170_v20  ;;  %v6116_v12 = vand.u32 2147483647, %v6115_v37  ;;  %vm7521_vm7 = vcmp.lt.f32.partialorder %v6168_v58, 8388608.0  ;;  %v6178_v28 = vcvt.f32.s32 %v7500_v54  ;;  %v5668_v29 = vld [vmem:[#allocation5 + $0xa4] sm:$0xf] }
 0x109   :  { %1286 = vmatpush.bf16.msra.mxu3 %v4661_v1  ;;  %1230 = vmatpush.bf16.msra.mxu0 %v4461_v48  ;;  %v6123_v39 = vcvt.s32.f32 %v6122_v7  ;;  %vm7526_vm8 = vcmp.lt.f32.partialorder %v6120_v21, 8388608.0  ;;  %v6181_v16 = vand.u32 2147483648, %v7500_v54  ;;  %v7535_v35 = vmul.f32 %v6597_v27, %v7063_v50  ;;  %v4442_v37 = vld [vmem:[#allocation5 + $0xa8] sm:$0xf0]  ;;  %v5684_v59 = vld [vmem:[#allocation5 + $0x124] sm:$0xf] }
 0x10a   :  { %v6172_v24 = vand.u32 2147483647, %v6171_v33  ;;  %v6118_v40 = vor.u32 %v6117_v45, %v6116_v12  ;;  %v6179_v6 = vcvt.s32.f32 %v6178_v28  ;;  %v6130_v14 = vcvt.f32.s32 %v7509_v3  ;;  %v4506_v19 = vld [vmem:[#allocation5 + $0x128] sm:$0xf0]  ;;  %v5740_v28 = vld [vmem:[#allocation5 + $0x2e4] sm:$0xf] }
 0x10b   :  { %1249 = vmatpush.bf16.msra.mxu1 %v4525_v34  ;;  %v6124_v56 = vand.u32 2147483647, %v6123_v39  ;;  %1268 = vmatpush.bf16.msra.mxu2 %v4589_v0  ;;  %vm7538_vm9 = vcmp.lt.f32.partialorder %v6176_v52, 8388608.0  ;;  %v6128_v17 = vand.u32 2147483647, %v7509_v3  ;;  %v6133_v18 = vand.u32 2147483648, %v7509_v3 }
 0x10c   :  { %v6174_v62 = vor.u32 %v6173_v63, %v6172_v24  ;;  %v6119_v5 = vsel %vm7515_vm6, %v6118_v40, %v7473_v8  ;;  %v6180_v1 = vand.u32 2147483647, %v6179_v6  ;;  %v6131_v48 = vcvt.s32.f32 %v6130_v14  ;;  %v4514_v34 = vld [vmem:[#allocation5 + $0x138] sm:$0xf0]  ;;  %v5700_v39 = vld [vmem:[#allocation5 + $0x1a4] sm:$0xf] }
 0x10d   :  { %1287 = vmatpush.bf16.msra.mxu3 %v4653_v2  ;;  %v6126_v23 = vor.u32 %v6125_v10, %v6124_v56  ;;  %v463_v38 = vmax.f32 %v6119_v5, -128.0  ;;  %v6184_v0 = vand.u32 2147483647, %v7535_v35  ;;  %v6186_v51 = vcvt.f32.s32 %v7535_v35  ;;  %v4578_v2 = vld [vmem:[#allocation5 + $0x1b8] sm:$0xf0] }
 0x10e   :  { %v6175_v49 = vsel %vm7521_vm7, %v6174_v62, %v7479_v46  ;;  %v6182_v20 = vor.u32 %v6181_v16, %v6180_v1  ;;  %v6132_v21 = vand.u32 2147483647, %v6131_v48  ;;  %v6189_v7 = vand.u32 2147483648, %v7535_v35  ;;  %v4570_v16 = vld [vmem:[#allocation5 + $0x1a8] sm:$0xf0] }
 0x10f   :  { %v470_v58 = vmax.f32 %v6175_v49, -128.0  ;;  %v6127_v8 = vsel %vm7526_vm8, %v6126_v23, %v7490_v57  ;;  %v491_v45 = vmin.f32 %v463_v38, 127.0  ;;  %v6187_v63 = vcvt.s32.f32 %v6186_v51  ;;  %v5716_v6 = vld [vmem:[#allocation5 + $0x224] sm:$0xf]  ;;  %v4634_v14 = vld [vmem:[#allocation5 + $0x228] sm:$0xf0] }
 0x110   :  { %v464_v46 = vmax.f32 %v6127_v8, -128.0  ;;  %v6183_v10 = vsel %vm7538_vm9, %v6182_v20, %v7500_v54  ;;  %v6134_v52 = vor.u32 %v6133_v18, %v6132_v21  ;;  %v4453_v12 = vor.u32 %v5670_v32, %v4450_v41  ;;  %v5666_v32 = vld [vmem:[#allocation5 + $0x94] sm:$0xf]  ;;  %v4434_v41 = vld [vmem:[#allocation5 + $0x98] sm:$0xf0] }
 0x111   :  { %v498_v33 = vmin.f32 %v470_v58, 127.0  ;;  %v471_v57 = vmax.f32 %v6183_v10, -128.0  ;;  %vm7559_vm10 = vcmp.lt.f32.partialorder %v6128_v17, 8388608.0  ;;  %v6188_v24 = vand.u32 2147483647, %v6187_v63 }
 0x112   :  { %v4517_v22 = vor.u32 %v5686_v44, %v4514_v34  ;;  %v6135_v40 = vsel %vm7559_vm10, %v6134_v52, %v7509_v3  ;;  %1231 = vmatpush.bf16.msra.mxu0 %v4453_v12  ;;  %v4581_v54 = vor.u32 %v5702_v13, %v4578_v2  ;;  %v4645_v56 = vor.u32 %v5718_v42, %v4642_v36  ;;  %v5682_v1 = vld [vmem:[#allocation5 + $0x114] sm:$0xf]  ;;  %v4498_v49 = vld [vmem:[#allocation5 + $0x118] sm:$0xf0]  ;;  %v4426_v36 = vld [vmem:[#allocation5 + $0x88] sm:$0xf0] }
 0x113   :  { %v7563_v27 = vpack.c.bf16 %v498_v33, %v491_v45  ;;  %v492_v62 = vmin.f32 %v464_v46, 127.0  ;;  %v499_v15 = vmin.f32 %v471_v57, 127.0  ;;  %v6190_v17 = vor.u32 %v6189_v7, %v6188_v24  ;;  %v4562_v38 = vld [vmem:[#allocation5 + $0x198] sm:$0xf0]  ;;  %v5714_v2 = vld [vmem:[#allocation5 + $0x214] sm:$0xf] }
 0x114   :  { %1221 = vmatmul.bf16.gmra.mxu3 %v7262_v31  ;;  %1250 = vmatpush.bf16.msra.mxu1 %v4517_v22  ;;  %v4445_v18 = vor.u32 %v5668_v29, %v4442_v37  ;;  %vm6185_vm11 = vcmp.lt.f32.partialorder %v6184_v0, 8388608.0  ;;  %v465_v5 = vmax.f32 %v6135_v40, -128.0  ;;  %v4509_v3 = vor.u32 %v5684_v59, %v4506_v19  ;;  %v5698_v31 = vld [vmem:[#allocation5 + $0x194] sm:$0xf]  ;;  %v4626_v42 = vld [vmem:[#allocation5 + $0x218] sm:$0xf0] }
 0x115   :  { %1164 = vmatmul.bf16.gmra.mxu0 %v7563_v27  ;;  %1269 = vmatpush.bf16.msra.mxu2 %v4581_v54  ;;  %v4573_v23 = vor.u32 %v5700_v39, %v4570_v16  ;;  %v7570_v48 = vpack.c.bf16 %v499_v15, %v492_v62  ;;  %v6191_v44 = vsel %vm6185_vm11, %v6190_v17, %v7535_v35  ;;  %v5664_v0 = vld [vmem:[#allocation5 + $0x84] sm:$0xf]  ;;  %v5742_v35 = vld [vmem:[#allocation5 + $0x2f4] sm:$0xf]  ;;  %v4738_v21 = vld [vmem:[#allocation5 + $0x2f8] sm:$0xf0] }
 0x116   :  { %1288 = vmatpush.bf16.msra.mxu3 %v4645_v56  ;;  %v4637_v34 = vor.u32 %v5716_v6, %v4634_v14  ;;  %v472_v51 = vmax.f32 %v6191_v44, -128.0  ;;  %1232 = vmatpush.bf16.msra.mxu0 %v4445_v18  ;;  %v4437_v13 = vor.u32 %v5666_v32, %v4434_v41  ;;  %v493_v58 = vmin.f32 %v465_v5, 127.0  ;;  %v5680_v45 = vld [vmem:[#allocation5 + $0x104] sm:$0xf]  ;;  %v4490_v46 = vld [vmem:[#allocation5 + $0x108] sm:$0xf0] }
 0x117   :  { %1183 = vmatmul.bf16.gmra.mxu1 %v7570_v48  ;;  %v4501_v20 = vor.u32 %v5682_v1, %v4498_v49  ;;  %v4565_v29 = vor.u32 %v5698_v31, %v4562_v38  ;;  %v4629_v37 = vor.u32 %v5714_v2, %v4626_v42  ;;  %v5696_v63 = vld [vmem:[#allocation5 + $0x184] sm:$0xf]  ;;  %v4429_v59 = vor.u32 %v5664_v0, %v4426_v36  ;;  %v4554_v33 = vld [vmem:[#allocation5 + $0x188] sm:$0xf0]  ;;  %v5758_v19 = vld [vmem:[#allocation5 + $0x374] sm:$0xf] }
 0x118   :  { %v500_v8 = vmin.f32 %v472_v51, 127.0  ;;  %1251 = vmatpush.bf16.msra.mxu1 %v4509_v3  ;;  %v5712_v10 = vld [vmem:[#allocation5 + $0x204] sm:$0xf]  ;;  %v4618_v52 = vld [vmem:[#allocation5 + $0x208] sm:$0xf0]  ;;  %v4741_v12 = vor.u32 %v5742_v35, %v4738_v21  ;;  %v4493_v57 = vor.u32 %v5680_v45, %v4490_v46  ;;  %v4557_v22 = vor.u32 %v5696_v63, %v4554_v33 }
 0x119   :  { %1270 = vmatpush.bf16.msra.mxu2 %v4573_v23  ;;  %v4802_v39 = vld [vmem:[#allocation5 + $0x378] sm:$0xf0]  ;;  %v4730_v24 = vld [vmem:[#allocation5 + $0x2e8] sm:$0xf0]  ;;  %v4621_v16 = vor.u32 %v5712_v10, %v4618_v52  ;;  %v5756_v56 = vld [vmem:[#allocation5 + $0x364] sm:$0xf] }
 0x11a   :  { %1289 = vmatpush.bf16.msra.mxu3 %v4637_v34  ;;  %v7574_v7 = vpack.c.bf16 %v500_v8, %v493_v58  ;;  %1233 = vmatpush.bf16.msra.mxu0 %v4437_v13  ;;  %v4805_v40 = vor.u32 %v5758_v19, %v4802_v39  ;;  %v4733_v54 = vor.u32 %v5740_v28, %v4730_v24  ;;  %v4794_v6 = vld [vmem:[#allocation5 + $0x368] sm:$0xf0]  ;;  %v5738_v14 = vld [vmem:[#allocation5 + $0x2d4] sm:$0xf]  ;;  %v4722_v62 = vld [vmem:[#allocation5 + $0x2d8] sm:$0xf0] }
 0x11b   :  { %v4797_v15 = vor.u32 %v5756_v56, %v4794_v6  ;;  %v4725_v17 = vor.u32 %v5738_v14, %v4722_v62  ;;  %v5754_v18 = vld [vmem:[#allocation5 + $0x354] sm:$0xf]  ;;  %v4786_v32 = vld [vmem:[#allocation5 + $0x358] sm:$0xf0]  ;;  %v5736_v41 = vld [vmem:[#allocation5 + $0x2c4] sm:$0xf] }
 0x11c   :  { %1202 = vmatmul.bf16.gmra.mxu2 %v7574_v7  ;;  %1252 = vmatpush.bf16.msra.mxu1 %v4501_v20  ;;  %v4714_v5 = vld [vmem:[#allocation5 + $0x2c8] sm:$0xf0]  ;;  %v4789_v3 = vor.u32 %v5754_v18, %v4786_v32  ;;  %v5752_v1 = vld [vmem:[#allocation5 + $0x344] sm:$0xf]  ;;  %v5734_v34 = vld [vmem:[#allocation5 + $0x2b4] sm:$0xf] }
 0x11d   :  { %1271 = vmatpush.bf16.msra.mxu2 %v4565_v29  ;;  %v4717_v23 = vor.u32 %v5736_v41, %v4714_v5  ;;  %v4778_v44 = vld [vmem:[#allocation5 + $0x348] sm:$0xf0]  ;;  %v4706_v49 = vld [vmem:[#allocation5 + $0x2b8] sm:$0xf0]  ;;  %v5750_v51 = vld [vmem:[#allocation5 + $0x334] sm:$0xf]  ;;  %v1341_v5 = vstv %s264_s1 }
 0x11e   :  { %1290 = vmatpush.bf16.msra.mxu3 %v4629_v37  ;;  %1234 = vmatpush.bf16.msra.mxu0 %v4429_v59  ;;  %v4781_v31 = vor.u32 %v5752_v1, %v4778_v44  ;;  %v4709_v38 = vor.u32 %v5734_v34, %v4706_v49  ;;  %v4698_v13 = vld [vmem:[#allocation5 + $0x2a8] sm:$0xf0]  ;;  %v5748_v42 = vld [vmem:[#allocation5 + $0x324] sm:$0xf]  ;;  %v5730_v36 = vld [vmem:[#allocation5 + $0x294] sm:$0xf]  ;;  %v7625_v49 = vmul.f32 %v1341_v5, %v7085_v11 }
 0x11f   :  { %v4762_v0 = vld [vmem:[#allocation5 + $0x328] sm:$0xf0]  ;;  %v4690_v58 = vld [vmem:[#allocation5 + $0x298] sm:$0xf0]  ;;  %v5746_v35 = vld [vmem:[#allocation5 + $0x314] sm:$0xf] }
 0x120   :  { %1253 = vmatpush.bf16.msra.mxu1 %v4493_v57  ;;  %v4765_v8 = vor.u32 %v5748_v42, %v4762_v0  ;;  %v4693_v20 = vor.u32 %v5730_v36, %v4690_v58  ;;  %v4754_v21 = vld [vmem:[#allocation5 + $0x318] sm:$0xf0]  ;;  %v4682_v29 = vld [vmem:[#allocation5 + $0x288] sm:$0xf0]  ;;  %v5744_v46 = vld [vmem:[#allocation5 + $0x304] sm:$0xf]  ;;  %vm1366_vm1 = vweird.f32 %v7625_v49 }
 0x121   :  { %1272 = vmatpush.bf16.msra.mxu2 %v4557_v22  ;;  %v4757_v37 = vor.u32 %v5746_v35, %v4754_v21  ;;  %v4746_v63 = vld [vmem:[#allocation5 + $0x308] sm:$0xf0] }
 0x122   :  { %1303 = vmatpush.bf16.msrb.mxu0 %v4741_v12  ;;  %1291 = vmatpush.bf16.msra.mxu3 %v4621_v16  ;;  %v4749_v59 = vor.u32 %v5744_v46, %v4746_v63 }
 0x124   :  { %1322 = vmatpush.bf16.msrb.mxu1 %v4805_v40 }
 0x125   :  { %1235 = vmatmul.bf16.vlgmr.msra.gmra.mxu0 %v7170_v4  ;;  %1292 = vmatmul.bf16.vlgmr.msra.gmra.mxu3 %v7427_v61  ;;  %v4770_v4 = vld [vmem:[#allocation5 + $0x338] sm:$0xf0]  ;;  %v5732_v61 = vld [vmem:[#allocation5 + $0x2a4] sm:$0xf] }
 0x126   :  { %1304 = vmatpush.bf16.msrb.mxu0 %v4733_v54  ;;  %v4773_v2 = vor.u32 %v5750_v51, %v4770_v4 }
 0x127   :  { %1254 = vmatmul.bf16.vlgmr.msra.gmra.mxu1 %v7185_v47  ;;  %v4701_v47 = vor.u32 %v5732_v61, %v4698_v13  ;;  %v7631_v13 = vmul.f32 %v1341_v5, %v7006_v9  ;;  %v7645_v9 = vmul.f32 %v1341_v5, %v7063_v50 }
 0x128   :  { %1323 = vmatpush.bf16.msrb.mxu1 %v4797_v15 }
 0x129   :  { %vm1381_vm5 = vweird.f32 %v7631_v13  ;;  %vm1396_vm9 = vweird.f32 %v7645_v9 }
 0x12a   :  { %1305 = vmatpush.bf16.msrb.mxu0 %v4725_v17 }
 0x12c   :  { %1324 = vmatpush.bf16.msrb.mxu1 %v4789_v3  ;;  %1273 = vmatmul.bf16.vlgmr.msra.gmra.mxu2 %v7200_v25  ;;  %v5728_v25 = vld [vmem:[#allocation5 + $0x284] sm:$0xf] }
 0x12d   :  { %v4685_v45 = vor.u32 %v5728_v25, %v4682_v29 }
 0x12e   :  { %1306 = vmatpush.bf16.msrb.mxu0 %v4717_v23  ;;  %v1342_v23 = vmul.f32 %v1341_v5, %v7040_v26  ;;  %v263_v5 = vld [vmem:[%s8956_s2] ss:$8 sm:$0x3] }
 0x130   :  { %1325 = vmatpush.bf16.msrb.mxu1 %v4781_v31  ;;  %6498 = vrcp.f32 %v1342_v23  ;;  %vm1351_vm13 = vweird.f32 %v1342_v23  ;;  %v1355_v50 = vand.u32 2147483647, %v1342_v23 }
 0x131   :  { %6500 = vrcp.f32 %v7625_v49 }
 0x132   :  { %1307 = vmatpush.bf16.msrb.mxu0 %v4709_v38  ;;  %6502 = vrcp.f32 %v7631_v13  ;;  %vm1356_vm15 = vcmp.eq.f32.partialorder %v1355_v50, 8.507059e+37 }
 0x133   :  { %6504 = vrcp.f32 %v7645_v9 }
 0x134   :  { %1326 = vmatpush.bf16.msrb.mxu1 %v4773_v2 }
 0x135   :  { %1240 = vmatmul.bf16.gmra.mxu0 %v7277_v43  ;;  %1297 = vmatmul.bf16.gmra.mxu3 %v7563_v27 }
 0x136   :  { %1308 = vmatpush.bf16.msrb.mxu0 %v4701_v47  ;;  %v6499_v51 = vpop.eup %6498 }
 0x137   :  { %1259 = vmatmul.bf16.gmra.mxu1 %v7316_v30  ;;  %v1347_v61 = vmul.f32 %v6499_v51, %v1342_v23  ;;  %v7635_v2 = vpop.eup %6500  ;;  %vm1352_vm12 = vweird.f32 %v6499_v51 }
 0x138   :  { %1327 = vmatpush.bf16.msrb.mxu1 %v4765_v8  ;;  %v1362_v36 = vmul.f32 %v7635_v2, %v7625_v49  ;;  %v7647_v29 = vpop.eup %6502  ;;  %vm7654_vm14 = vmor %vm1351_vm13, %vm1352_vm12  ;;  %vm1367_vm0 = vweird.f32 %v7635_v2 }
 0x139   :  { %v1348_v42 = vsub.f32 1.0, %v1347_v61  ;;  %v7669_v61 = vpop.eup %6504  ;;  %vm7681_vm2 = vmor %vm1366_vm1, %vm1367_vm0  ;;  %vm1382_vm4 = vweird.f32 %v7647_v29 }
 0x13a   :  { %1309 = vmatpush.bf16.msrb.mxu0 %v4693_v20  ;;  %vm7718_vm6 = vmor %vm1381_vm5, %vm1382_vm4  ;;  %vm1397_vm8 = vweird.f32 %v7669_v61 }
 0x13b   :  { %v1349_v20 = vmul.f32 %v6499_v51, %v1348_v42  ;;  %vm7749_vm10 = vmor %vm1396_vm9, %vm1397_vm8 }
 0x13c   :  { %1328 = vmatpush.bf16.msrb.mxu1 %v4757_v37  ;;  %1278 = vmatmul.bf16.gmra.mxu2 %v7381_v53  ;;  %v1363_v37 = vsub.f32 1.0, %v1362_v36 }
 0x13d   :  { %v1350_v46 = vadd.f32 %v6499_v51, %v1349_v20  ;;  %v1387_v20 = vand.u32 2147483648, %v7631_v13 }
 0x13e   :  { %1310 = vmatpush.bf16.msrb.mxu0 %v4685_v45 }
 0x140   :  { %1329 = vmatpush.bf16.msrb.mxu1 %v4749_v59 }
 0x145   :  { %1311 = vmatmul.bf16.vlgmr.msrb.gmra.mxu0 %v7449_v60 }
 0x147   :  { %1330 = vmatmul.bf16.vlgmr.msrb.gmra.mxu1 %v7492_v55 }
 0x14f   :  { %v1084_v43 = vpop.f32.mrf.mxu0 }
 0x150   :  { %v1103_v27 = vpop.f32.mrf.mxu1 }
 0x151   :  { %v1104_v33 = vadd.f32 %v1103_v27, %v1084_v43  ;;  %v1357_v43 = vand.u32 2147483648, %v1342_v23 }
 0x155   :  { %1316 = vmatmul.bf16.gmra.mxu0 %v7570_v48 }
 0x157   :  { %1335 = vmatmul.bf16.gmra.mxu1 %v7574_v7  ;;  %v1086_v30 = vpop.f32.mrf.mxu0 }
 0x158   :  { %v1105_v10 = vpop.f32.mrf.mxu1 }
 0x159   :  { %v1122_v12 = vpop.f32.mrf.mxu2  ;;  %v1106_v21 = vadd.f32 %v1105_v10, %v1086_v30  ;;  %v1377_v30 = vmul.f32 %v7647_v29, %v7631_v13 }
 0x15a   :  { %v1123_v47 = vadd.f32 %v1122_v12, %v1104_v33 }
 0x15b   :  { %v1141_v53 = vpop.f32.mrf.mxu3 }
 0x15c   :  { %v1142_v8 = vadd.f32 %v1141_v53, %v1123_v47 }
 0x161   :  { %v1124_v57 = vpop.f32.mrf.mxu2 }
 0x162   :  { %v1125_v45 = vadd.f32 %v1124_v57, %v1106_v21 }
 0x163   :  { %v1089_v52 = vpop.f32.mrf.mxu0  ;;  %v7591_v28 = vpop.f32.mrf.mxu3 }
 0x164   :  { %v1108_v19 = vpop.f32.mrf.mxu1  ;;  %v1144_v53 = vadd.f32 %v7591_v28, %v1125_v45 }
 0x165   :  { %v7589_v39 = vadd.f32 %v1108_v19, %v1089_v52  ;;  %v1364_v52 = vmul.f32 %v7635_v2, %v1363_v37 }
 0x16b   :  { %v7593_v60 = vpop.f32.mrf.mxu0 }
 0x16c   :  { %v7595_v55 = vpop.f32.mrf.mxu1 }
 0x16f   :  { %v7597_v24 = vpop.f32.mrf.mxu2 }
 0x170   :  { %v1128_v28 = vadd.f32 %v7597_v24, %v7589_v39  ;;  %v1370_v24 = vand.u32 2147483647, %v7625_v49 }
 0x172   :  { %vm1371_vm3 = vcmp.eq.f32.partialorder %v1370_v24, 8.507059e+37 }
 0x177   :  { %v7599_v48 = vpop.f32.mrf.mxu3  ;;  %v7601_v16 = vpop.f32.mrf.mxu2 }
 0x17c   :  { %v1160_v7 = vpop.f32.mrf.mxu0 }
 0x17d   :  { %v1161_v25 = vadd.f32 %v1160_v7, %v1142_v8  ;;  %v1354_v7 = vsel %vm7654_vm14, %v6499_v51, %v1350_v46  ;;  %v1365_v51 = vadd.f32 %v7635_v2, %v1364_v52 }
 0x17f   :  { %v1179_v22 = vpop.f32.mrf.mxu1  ;;  %v7603_v40 = vpop.f32.mrf.mxu3 }
 0x180   :  { %v1180_v33 = vadd.f32 %v1179_v22, %v1161_v25  ;;  %v1147_v25 = vadd.f32 %v7599_v48, %v1128_v28 }
 0x184   :  { %v7605_v54 = vpop.f32.mrf.mxu0 }
 0x187   :  { %v7607_v56 = vpop.f32.mrf.mxu1  ;;  %v1217_v14 = vpop.f32.mrf.mxu3 }
 0x189   :  { %v1198_v6 = vpop.f32.mrf.mxu2 }
 0x18a   :  { %v1199_v57 = vadd.f32 %v1198_v6, %v1180_v33 }
 0x18f   :  { %v1219_v32 = vpop.f32.mrf.mxu3 }
 0x191   :  { %v7613_v17 = vpop.f32.mrf.mxu2 }
 0x192   :  { %v7609_v62 = vpop.f32.mrf.mxu0 }
 0x193   :  { %v1166_v33 = vadd.f32 %v7609_v62, %v1147_v25  ;;  %v5772_v25 = vld [vmem:[#allocation6 + $0x64] sm:$0xf] }
 0x194   :  { %v7611_v15 = vpop.f32.mrf.mxu1 }
 0x197   :  { %v7622_v34 = vpop.f32.mrf.mxu3 }
 0x19a   :  { %v7615_v18 = vpop.f32.mrf.mxu0 }
 0x19c   :  { %v7617_v41 = vpop.f32.mrf.mxu1 }
 0x19f   :  { %v7619_v3 = vpop.f32.mrf.mxu2  ;;  %v7633_v26 = vpop.f32.mrf.mxu3 }
 0x1a2   :  { %v1236_v1 = vpop.f32.mrf.mxu0 }
 0x1a3   :  { %v1237_v35 = vadd.f32 %v1236_v1, %v1217_v14  ;;  %v1358_v14 = vor.u32 1.1754944e-38, %v1357_v43  ;;  %v1163_v1 = vadd.f32 %v7605_v54, %v1144_v53  ;;  %v1372_v54 = vand.u32 2147483648, %v7625_v49 }
 0x1a4   :  { %v1255_v44 = vpop.f32.mrf.mxu1  ;;  %v7695_v49 = vperm.slane %v263_v5, 1 }
 0x1a5   :  { %v1256_v27 = vadd.f32 %v1255_v44, %v1237_v35  ;;  %v1378_v44 = vsub.f32 1.0, %v1377_v30  ;;  %v1359_v6 = vsel %vm1356_vm15, %v1358_v14, %v1354_v7  ;;  %v1182_v8 = vadd.f32 %v7607_v56, %v1163_v1 }
 0x1a6   :  { %v1406_v42 = vmul.f32 %v1359_v6, %v1199_v57  ;;  %v1392_v35 = vmul.f32 %v7669_v61, %v7645_v9  ;;  %v1369_v56 = vsel %vm7681_vm2, %v7635_v2, %v1365_v51  ;;  %v1373_v48 = vor.u32 1.1754944e-38, %v1372_v54 }
 0x1a7   :  { %v7627_v31 = vpop.f32.mrf.mxu2  ;;  %v1201_v46 = vadd.f32 %v7613_v17, %v1182_v8  ;;  %v1388_v14 = vor.u32 1.1754944e-38, %v1387_v20 }
 0x1a8   :  { %v1293_v63 = vpop.f32.mrf.mxu3  ;;  %v1393_v50 = vsub.f32 1.0, %v1392_v35  ;;  %v1374_v52 = vsel %vm1371_vm3, %v1373_v48, %v1369_v56  ;;  %v1400_v56 = vand.u32 2147483647, %v7645_v9 }
 0x1a9   :  { %v1408_v57 = vmul.f32 %v1374_v52, %v1201_v46 }
 0x1aa   :  { %v1238_v38 = vpop.f32.mrf.mxu0  ;;  %vm1401_vm11 = vcmp.eq.f32.partialorder %v1400_v56, 8.507059e+37 }
 0x1ab   :  { %v1239_v23 = vadd.f32 %v1238_v38, %v1219_v32 }
 0x1ac   :  { %v1257_v4 = vpop.f32.mrf.mxu1 }
 0x1ad   :  { %v1258_v32 = vadd.f32 %v1257_v4, %v1239_v23  ;;  %v1379_v4 = vmul.f32 %v7647_v29, %v1378_v44 }
 0x1af   :  { %v1274_v11 = vpop.f32.mrf.mxu2 }
 0x1b0   :  { %v1275_v12 = vadd.f32 %v1274_v11, %v1256_v27  ;;  %v7674_v11 = vperm.slane %v263_v5, 0  ;;  %v1295_v21 = vpop.f32.mrf.mxu3  ;;  %v1111_v27 = vadd.f32 %v7595_v55, %v7593_v60  ;;  %v1394_v5 = vmul.f32 %v7669_v61, %v1393_v50 }
 0x1b2   :  { %v7637_v0 = vpop.f32.mrf.mxu0  ;;  %v1294_v47 = vadd.f32 %v1293_v63, %v1275_v12  ;;  %v7698_v43 = vadd.f32 %v7674_v11, %v1406_v42  ;;  %v1130_v10 = vadd.f32 %v7601_v16, %v1111_v27  ;;  %v1380_v12 = vadd.f32 %v7647_v29, %v1379_v4 }
 0x1b3   :  { %v1242_v2 = vadd.f32 %v7637_v0, %v7622_v34  ;;  %v1185_v34 = vadd.f32 %v7611_v15, %v1166_v33  ;;  %v1385_v0 = vand.u32 2147483647, %v7631_v13  ;;  %v7730_v28 = vadd.f32 %v7674_v11, %v1408_v57 }
 0x1b4   :  { %v7642_v58 = vpop.f32.mrf.mxu1  ;;  %v1427_v62 = vmax.f32 %v7698_v43, 0.0  ;;  %v1149_v1 = vadd.f32 %v7603_v40, %v1130_v10  ;;  %v1384_v13 = vsel %vm7718_vm6, %v7647_v29, %v1380_v12 }
 0x1b5   :  { %v1261_v7 = vadd.f32 %v7642_v58, %v1242_v2  ;;  %v1204_v15 = vadd.f32 %v7619_v3, %v1185_v34  ;;  %vm1386_vm7 = vcmp.eq.f32.partialorder %v1385_v0, 8.507059e+37  ;;  %v1429_v35 = vmax.f32 %v7730_v28, 0.0 }
 0x1b6   :  { %v1389_v3 = vsel %vm1386_vm7, %v1388_v14, %v1384_v13  ;;  %v1168_v29 = vadd.f32 %v7615_v18, %v1149_v1  ;;  %v1402_v18 = vand.u32 2147483648, %v7645_v9 }
 0x1b7   :  { %v1276_v22 = vpop.f32.mrf.mxu2  ;;  %v1472_v27 = vand.u32 2147483647, %v1429_v35 }
 0x1b8   :  { %v1277_v37 = vadd.f32 %v1276_v22, %v1258_v32  ;;  %v1410_v32 = vmul.f32 %v1389_v3, %v1204_v15  ;;  %v1403_v48 = vor.u32 1.1754944e-38, %v1402_v18  ;;  %v4922_v18 = vld [vmem:[#allocation6 + $0xe0] sm:$0xf] }
 0x1ba   :  { %v7649_v59 = vpop.f32.mrf.mxu0  ;;  %v1296_v53 = vadd.f32 %v1295_v21, %v1277_v37  ;;  %v1187_v21 = vadd.f32 %v7617_v41, %v1168_v29  ;;  %v7756_v37 = vadd.f32 %v7674_v11, %v1410_v32  ;;  %v5790_v29 = vld [vmem:[#allocation6 + $0xf4] sm:$0xf] }
 0x1bb   :  { %v1244_v40 = vadd.f32 %v7649_v59, %v7633_v26 }
 0x1bc   :  { %v7659_v19 = vpop.f32.mrf.mxu1 }
 0x1bd   :  { %v1263_v26 = vadd.f32 %v7659_v19, %v1244_v40 }
 0x1bf   :  { %v1279_v17 = vpop.f32.mrf.mxu2 }
 0x1c0   :  { %v1280_v58 = vadd.f32 %v1279_v17, %v1261_v7 }
 0x1c2   :  { %v1312_v36 = vpop.f32.mrf.mxu0 }
 0x1c3   :  { %v1313_v38 = vadd.f32 %v1312_v36, %v1294_v47  ;;  %v1470_v47 = vand.u32 2147483647, %v1427_v62 }
 0x1c4   :  { %v1331_v45 = vpop.f32.mrf.mxu1 }
 0x1c5   :  { %v1332_v63 = vadd.f32 %v1331_v45, %v1313_v38  ;;  %v1395_v38 = vadd.f32 %v7669_v61, %v1394_v5 }
 0x1c7   :  { %v1407_v30 = vmul.f32 %v1359_v6, %v1332_v63  ;;  %v1298_v6 = vpop.f32.mrf.mxu3  ;;  %v1281_v39 = vpop.f32.mrf.mxu2  ;;  %v1399_v45 = vsel %vm7749_vm10, %v7669_v61, %v1395_v38  ;;  %v1206_v63 = vadd.f32 %v7627_v31, %v1187_v21  ;;  %v1431_v61 = vmax.f32 %v7756_v37, 0.0  ;;  %v5789_v21 = vld [vmem:[#allocation6 + $0xe4] sm:$0xf0] }
 0x1c8   :  { %v1299_v8 = vadd.f32 %v1298_v6, %v1280_v58  ;;  %v1282_v46 = vadd.f32 %v1281_v39, %v1263_v26  ;;  %v1404_v17 = vsel %vm1401_vm11, %v1403_v48, %v1399_v45  ;;  %v4866_v58 = vld [vmem:[#allocation6 + $0x70] sm:$0xf]  ;;  %v4858_v39 = vld [vmem:[#allocation6 + $0x60] sm:$0xf]  ;;  %v4923_v56 = vor.u32 %v5789_v21, %v4922_v18  ;;  %v4860_v45 = vld [vmem:[#allocation6 + $0x68] sm:$0xf0] }
 0x1c9   :  { %v7710_v55 = vadd.f32 %v7695_v49, %v1407_v30  ;;  %v1412_v10 = vmul.f32 %v1404_v17, %v1206_v63  ;;  %v1474_v0 = vand.u32 2147483647, %v1431_v61  ;;  %v4930_v6 = vld [vmem:[#allocation6 + $0xf0] sm:$0xf]  ;;  %v4863_v63 = vor.u32 %v5772_v25, %v4860_v45  ;;  %v5783_v25 = vld [vmem:[#allocation6 + $0xb4] sm:$0xf0] }
 0x1ca   :  { %v1314_v60 = vpop.f32.mrf.mxu0  ;;  %v4914_v48 = vld [vmem:[#allocation6 + $0xd0] sm:$0xf] }
 0x1cb   :  { %v1315_v16 = vadd.f32 %v1314_v60, %v1296_v53  ;;  %v1428_v23 = vmax.f32 %v7710_v55, 0.0  ;;  %v7772_v60 = vadd.f32 %v7674_v11, %v1412_v10  ;;  %v4898_v21 = vld [vmem:[#allocation6 + $0xb0] sm:$0xf]  ;;  %v5760_v55 = vld [vmem:[#allocation6 + $0x4] sm:$0xf] }
 0x1cc   :  { %v1333_v44 = vpop.f32.mrf.mxu1 }
 0x1cd   :  { %v1334_v51 = vadd.f32 %v1333_v44, %v1315_v16  ;;  %v1471_v42 = vand.u32 2147483647, %v1428_v23  ;;  %v1433_v5 = vmax.f32 %v7772_v60, 0.0  ;;  %v5775_v44 = vld [vmem:[#allocation6 + $0x74] sm:$0xf0] }
 0x1cf   :  { %v1409_v36 = vmul.f32 %v1374_v52, %v1334_v51  ;;  %v1478_v54 = vmax.f32 %v1470_v47, %v1471_v42  ;;  %v1300_v33 = vpop.f32.mrf.mxu3  ;;  %v1476_v11 = vand.u32 2147483647, %v1433_v5  ;;  %v4867_v51 = vor.u32 %v5775_v44, %v4866_v58  ;;  %v5791_v47 = vld [vmem:[#allocation6 + $0xf4] sm:$0xf0]  ;;  %v4868_v42 = vld [vmem:[#allocation6 + $0x78] sm:$0xf0] }
 0x1d0   :  { %v1301_v30 = vadd.f32 %v1300_v33, %v1282_v46  ;;  %v4931_v40 = vor.u32 %v5791_v47, %v4930_v6  ;;  %v5788_v46 = vld [vmem:[#allocation6 + $0xe4] sm:$0xf]  ;;  %v5769_v58 = vld [vmem:[#allocation6 + $0x44] sm:$0xf0]  ;;  %v4906_v47 = vld [vmem:[#allocation6 + $0xc0] sm:$0xf] }
 0x1d1   :  { %v7742_v24 = vadd.f32 %v7695_v49, %v1409_v36  ;;  %1479 = vmax.xlane.f32.xlu2 %v1478_v54  ;;  %v4932_v36 = vld [vmem:[#allocation6 + $0xf8] sm:$0xf0]  ;;  %1750 = vmatpush.bf16.msrb.mxu2 %v4867_v51 }
 0x1d2   :  { %v1317_v20 = vpop.f32.mrf.mxu0  ;;  %v4935_v54 = vor.u32 %v5790_v29, %v4932_v36  ;;  %1769 = vmatpush.bf16.msrb.mxu3 %v4931_v40  ;;  %v4844_v29 = vld [vmem:[#allocation6 + $0x48] sm:$0xf0]  ;;  %v5784_v36 = vld [vmem:[#allocation6 + $0xc4] sm:$0xf] }
 0x1d3   :  { %v1318_v59 = vadd.f32 %v1317_v20, %v1299_v8  ;;  %v1430_v4 = vmax.f32 %v7742_v24, 0.0  ;;  %v5773_v20 = vld [vmem:[#allocation6 + $0x64] sm:$0xf0] }
 0x1d4   :  { %v1336_v19 = vpop.f32.mrf.mxu1  ;;  %1807 = vmatpush.bf16.msra.mxu1 %v4935_v54 }
 0x1d5   :  { %v1337_v41 = vadd.f32 %v1336_v19, %v1318_v59  ;;  %v1473_v9 = vand.u32 2147483647, %v1430_v4  ;;  %v4859_v59 = vor.u32 %v5773_v20, %v4858_v39  ;;  %v4924_v19 = vld [vmem:[#allocation6 + $0xe8] sm:$0xf0]  ;;  %v5767_v39 = vld [vmem:[#allocation6 + $0x34] sm:$0xf0] }
 0x1d6   :  { %1770 = vmatpush.bf16.msrb.mxu3 %v4923_v56  ;;  %v5766_v56 = vld [vmem:[#allocation6 + $0x34] sm:$0xf] }
 0x1d7   :  { %v1411_v2 = vmul.f32 %v1389_v3, %v1337_v41  ;;  %v1481_v50 = vmax.f32 %v1472_v27, %v1473_v9  ;;  %1751 = vmatpush.bf16.msrb.mxu2 %v4859_v59  ;;  %v4927_v41 = vor.u32 %v5788_v46, %v4924_v19  ;;  %v4850_v27 = vld [vmem:[#allocation6 + $0x50] sm:$0xf]  ;;  %v5771_v9 = vld [vmem:[#allocation6 + $0x54] sm:$0xf0]  ;;  %v4899_v19 = vor.u32 %v5783_v25, %v4898_v21 }
 0x1d9   :  { %v7768_v52 = vadd.f32 %v7695_v49, %v1411_v2  ;;  %1482 = vmax.xlane.f32.xlu2 %v1481_v50  ;;  %v4851_v2 = vor.u32 %v5771_v9, %v4850_v27  ;;  %v5787_v50 = vld [vmem:[#allocation6 + $0xd4] sm:$0xf0]  ;;  %1808 = vmatpush.bf16.msra.mxu1 %v4927_v41  ;;  %v5782_v41 = vld [vmem:[#allocation6 + $0xb4] sm:$0xf] }
 0x1da   :  { %v1319_v31 = vpop.f32.mrf.mxu0 }
 0x1db   :  { %v1320_v12 = vadd.f32 %v1319_v31, %v1301_v30  ;;  %v1432_v53 = vmax.f32 %v7768_v52, 0.0  ;;  %v4852_v30 = vld [vmem:[#allocation6 + $0x58] sm:$0xf0]  ;;  %1752 = vmatpush.bf16.msrb.mxu2 %v4851_v2  ;;  %v5765_v2 = vld [vmem:[#allocation6 + $0x24] sm:$0xf0] }
 0x1dc   :  { %v1338_v57 = vpop.f32.mrf.mxu1 }
 0x1dd   :  { %v1339_v34 = vadd.f32 %v1338_v57, %v1320_v12  ;;  %v1475_v7 = vand.u32 2147483647, %v1432_v53  ;;  %v4915_v12 = vor.u32 %v5787_v50, %v4914_v48  ;;  %v4900_v48 = vld [vmem:[#allocation6 + $0xb8] sm:$0xf0] }
 0x1df   :  { %v1413_v16 = vmul.f32 %v1404_v17, %v1339_v34  ;;  %v1484_v22 = vmax.f32 %v1474_v0, %v1475_v7  ;;  %v5770_v17 = vld [vmem:[#allocation6 + $0x54] sm:$0xf]  ;;  %v4916_v0 = vld [vmem:[#allocation6 + $0xd8] sm:$0xf0]  ;;  %1771 = vmatpush.bf16.msrb.mxu3 %v4915_v12 }
 0x1e0   :  { %v4855_v57 = vor.u32 %v5770_v17, %v4852_v30  ;;  %v5786_v34 = vld [vmem:[#allocation6 + $0xd4] sm:$0xf]  ;;  %v4890_v17 = vld [vmem:[#allocation6 + $0xa0] sm:$0xf]  ;;  %v5781_v30 = vld [vmem:[#allocation6 + $0xa4] sm:$0xf0] }
 0x1e1   :  { %v7779_v14 = vadd.f32 %v7695_v49, %v1413_v16  ;;  %1485 = vmax.xlane.f32.xlu0 %v1484_v22  ;;  %v5774_v49 = vld [vmem:[#allocation6 + $0x74] sm:$0xf]  ;;  %v4919_v16 = vor.u32 %v5786_v34, %v4916_v0  ;;  %v5764_v34 = vld [vmem:[#allocation6 + $0x24] sm:$0xf] }
 0x1e2   :  { %v4871_v3 = vor.u32 %v5774_v49, %v4868_v42  ;;  %v5785_v49 = vld [vmem:[#allocation6 + $0xc4] sm:$0xf0] }
 0x1e3   :  { %v1434_v1 = vmax.f32 %v7779_v14, 0.0  ;;  %1809 = vmatpush.bf16.msra.mxu1 %v4919_v16  ;;  %v4907_v40 = vor.u32 %v5785_v49, %v4906_v47  ;;  %v4892_v47 = vld [vmem:[#allocation6 + $0xa8] sm:$0xf0]  ;;  %v4818_v49 = vld [vmem:[#allocation6 + $0x10] sm:$0xf] }
 0x1e4   :  { %1788 = vmatpush.bf16.msra.mxu0 %v4871_v3  ;;  %v5768_v3 = vld [vmem:[#allocation6 + $0x44] sm:$0xf] }
 0x1e5   :  { %v1477_v15 = vand.u32 2147483647, %v1434_v1  ;;  %v4847_v54 = vor.u32 %v5768_v3, %v4844_v29  ;;  %1772 = vmatpush.bf16.msrb.mxu3 %v4907_v40  ;;  %v4882_v40 = vld [vmem:[#allocation6 + $0x90] sm:$0xf] }
 0x1e7   :  { %v1487_v13 = vmax.f32 %v1476_v11, %v1477_v15  ;;  %v4828_v15 = vld [vmem:[#allocation6 + $0x28] sm:$0xf0] }
 0x1e8   :  { %1789 = vmatpush.bf16.msra.mxu0 %v4863_v63  ;;  %v4836_v63 = vld [vmem:[#allocation6 + $0x38] sm:$0xf0] }
 0x1e9   :  { %1488 = vmax.xlane.f32.xlu1 %v1487_v13  ;;  %v4842_v13 = vld [vmem:[#allocation6 + $0x40] sm:$0xf]  ;;  %v4839_v9 = vor.u32 %v5766_v56, %v4836_v63  ;;  %1773 = vmatpush.bf16.msrb.mxu3 %v4899_v19  ;;  %v5761_v19 = vld [vmem:[#allocation6 + $0x4] sm:$0xf0] }
 0x1ea   :  { %v4843_v51 = vor.u32 %v5769_v58, %v4842_v13  ;;  %v5780_v13 = vld [vmem:[#allocation6 + $0xa4] sm:$0xf]  ;;  %v4874_v63 = vld [vmem:[#allocation6 + $0x80] sm:$0xf] }
 0x1ec   :  { %1790 = vmatpush.bf16.msra.mxu0 %v4855_v57  ;;  %1753 = vmatpush.bf16.msrb.mxu2 %v4843_v51  ;;  %v4831_v51 = vor.u32 %v5764_v34, %v4828_v15 }
 0x1f0   :  { %1791 = vmatpush.bf16.msra.mxu0 %v4847_v54 }
 0x1f4   :  { %1792 = vmatpush.bf16.msra.mxu0 %v4839_v9 }
 0x1f8   :  { %1793 = vmatpush.bf16.msra.mxu0 %v4831_v51 }
 0x244   :  { %v1480_v32 = vpop.xlane.xlu2 %1479 }
 0x245   :  { %v7787_v38 = vmax.f32 %v1480_v32, 1e-05  ;;  %v4908_v32 = vld [vmem:[#allocation6 + $0xc8] sm:$0xf0] }
 0x247   :  { %6506 = vrcp.f32 %v7787_v38  ;;  %v1503_v8 = vand.u32 2147483647, %v7787_v38  ;;  %v1505_v26 = vand.u32 2147483648, %v7787_v38  ;;  %vm1499_vm14 = vweird.f32 %v7787_v38 }
 0x249   :  { %vm7797_vm12 = vcmp.eq.f32.partialorder %v1503_v8, 8.507059e+37  ;;  %v1506_v44 = vor.u32 1.1754944e-38, %v1505_v26  ;;  %v4834_v8 = vld [vmem:[#allocation6 + $0x30] sm:$0xf]  ;;  %v4911_v26 = vor.u32 %v5784_v36, %v4908_v32 }
 0x24a   :  { %v4835_v59 = vor.u32 %v5767_v39, %v4834_v8  ;;  %v5762_v8 = vld [vmem:[#allocation6 + $0x14] sm:$0xf]  ;;  %v4820_v39 = vld [vmem:[#allocation6 + $0x18] sm:$0xf0] }
 0x24b   :  { %1810 = vmatpush.bf16.msra.mxu1 %v4911_v26  ;;  %v4884_v26 = vld [vmem:[#allocation6 + $0x98] sm:$0xf0] }
 0x24c   :  { %v1483_v33 = vpop.xlane.xlu2 %1482  ;;  %1754 = vmatpush.bf16.msrb.mxu2 %v4835_v59  ;;  %v4810_v59 = vld [vmem:[#allocation6] sm:$0xf] }
 0x24d   :  { %v6507_v10 = vpop.eup %6506  ;;  %v7792_v31 = vmax.f32 %v1483_v33, 1e-05  ;;  %v4826_v33 = vld [vmem:[#allocation6 + $0x20] sm:$0xf] }
 0x24e   :  { %v1495_v7 = vmul.f32 %v6507_v10, %v7787_v38  ;;  %vm1500_vm13 = vweird.f32 %v6507_v10  ;;  %v4827_v16 = vor.u32 %v5765_v2, %v4826_v33  ;;  %v4811_v2 = vor.u32 %v5761_v19, %v4810_v59 }
 0x24f   :  { %6508 = vrcp.f32 %v7792_v31  ;;  %v1518_v22 = vand.u32 2147483647, %v7792_v31  ;;  %v1520_v6 = vand.u32 2147483648, %v7792_v31  ;;  %vm1501_vm15 = vmor %vm1499_vm14, %vm1500_vm13  ;;  %vm1514_vm2 = vweird.f32 %v7792_v31 }
 0x250   :  { %v1496_v11 = vsub.f32 1.0, %v1495_v7  ;;  %1755 = vmatpush.bf16.msrb.mxu2 %v4827_v16 }
 0x251   :  { %vm7815_vm0 = vcmp.eq.f32.partialorder %v1518_v22, 8.507059e+37  ;;  %v1521_v7 = vor.u32 1.1754944e-38, %v1520_v6  ;;  %v4895_v22 = vor.u32 %v5780_v13, %v4892_v47  ;;  %v5779_v6 = vld [vmem:[#allocation6 + $0x94] sm:$0xf0] }
 0x252   :  { %v1497_v42 = vmul.f32 %v6507_v10, %v1496_v11  ;;  %v4891_v11 = vor.u32 %v5781_v30, %v4890_v17  ;;  %v4883_v32 = vor.u32 %v5779_v6, %v4882_v40 }
 0x254   :  { %v1498_v20 = vadd.f32 %v6507_v10, %v1497_v42  ;;  %v1486_v18 = vpop.xlane.xlu0 %1485  ;;  %v5763_v42 = vld [vmem:[#allocation6 + $0x14] sm:$0xf0]  ;;  %1774 = vmatpush.bf16.msrb.mxu3 %v4891_v11 }
 0x255   :  { %v7803_v45 = vpop.eup %6508  ;;  %v7806_v46 = vmax.f32 %v1486_v18, 1e-05  ;;  %v4819_v54 = vor.u32 %v5763_v42, %v4818_v49 }
 0x256   :  { %v1502_v27 = vsel %vm1501_vm15, %v6507_v10, %v1498_v20  ;;  %v1510_v38 = vmul.f32 %v7803_v45, %v7792_v31  ;;  %v4903_v10 = vor.u32 %v5782_v41, %v4900_v48  ;;  %vm1515_vm1 = vweird.f32 %v7803_v45  ;;  %v5778_v20 = vld [vmem:[#allocation6 + $0x94] sm:$0xf]  ;;  %v5777_v41 = vld [vmem:[#allocation6 + $0x84] sm:$0xf0] }
 0x257   :  { %v1507_v50 = vsel %vm7797_vm12, %v1506_v44, %v1502_v27  ;;  %6510 = vrcp.f32 %v7806_v46  ;;  %v1533_v44 = vand.u32 2147483647, %v7806_v46  ;;  %vm1516_vm3 = vmor %vm1514_vm2, %vm1515_vm1  ;;  %v4887_v56 = vor.u32 %v5778_v20, %v4884_v26  ;;  %1756 = vmatpush.bf16.msrb.mxu2 %v4819_v54 }
 0x258   :  { %v7813_v12 = vmul.f32 127.0, %v1507_v50  ;;  %v1511_v57 = vsub.f32 1.0, %v1510_v38  ;;  %1811 = vmatpush.bf16.msra.mxu1 %v4903_v10  ;;  %v1535_v38 = vand.u32 2147483648, %v7806_v46  ;;  %1775 = vmatpush.bf16.msrb.mxu3 %v4883_v32  ;;  %v5776_v50 = vld [vmem:[#allocation6 + $0x84] sm:$0xf]  ;;  %v4875_v17 = vor.u32 %v5777_v41, %v4874_v63 }
 0x259   :  { %vm1529_vm5 = vweird.f32 %v7806_v46  ;;  %vm7859_vm6 = vcmp.eq.f32.partialorder %v1533_v44, 8.507059e+37 }
 0x25a   :  { %v1512_v58 = vmul.f32 %v7803_v45, %v1511_v57  ;;  %v7825_v3 = vmul.f32 %v7813_v12, %v1427_v62  ;;  %v4823_v62 = vor.u32 %v5762_v8, %v4820_v39  ;;  %v7838_v31 = vmul.f32 %v7813_v12, %v1428_v23  ;;  %v4812_v23 = vld [vmem:[#allocation6 + $0x8] sm:$0xf0] }
 0x25b   :  { %v4815_v30 = vor.u32 %v5760_v55, %v4812_v23  ;;  %v4876_v57 = vld [vmem:[#allocation6 + $0x88] sm:$0xf0]  ;;  %v1536_v15 = vor.u32 1.1754944e-38, %v1535_v38  ;;  %1757 = vmatpush.bf16.msrb.mxu2 %v4811_v2 }
 0x25c   :  { %v1513_v29 = vadd.f32 %v7803_v45, %v1512_v58  ;;  %v1489_v36 = vpop.xlane.xlu1 %1488  ;;  %1812 = vmatpush.bf16.msra.mxu1 %v4895_v22  ;;  %1794 = vmatpush.bf16.msra.mxu0 %v4823_v62  ;;  %v6202_v10 = vcvt.f32.s32 %v7838_v31  ;;  %v4879_v0 = vor.u32 %v5776_v50, %v4876_v57  ;;  %v6192_v16 = vand.u32 2147483647, %v7825_v3 }
 0x25d   :  { %v7829_v18 = vpop.eup %6510  ;;  %v7833_v43 = vmax.f32 %v1489_v36, 1e-05  ;;  %1776 = vmatpush.bf16.msrb.mxu3 %v4875_v17  ;;  %v6197_v44 = vand.u32 2147483648, %v7825_v3  ;;  %v6200_v24 = vand.u32 2147483647, %v7838_v31  ;;  %v6205_v20 = vand.u32 2147483648, %v7838_v31 }
 0x25e   :  { %v1517_v21 = vsel %vm1516_vm3, %v7803_v45, %v1513_v29  ;;  %v1525_v25 = vmul.f32 %v7829_v18, %v7806_v46  ;;  %v6194_v45 = vcvt.f32.s32 %v7825_v3  ;;  %vm1530_vm4 = vweird.f32 %v7829_v18 }
 0x25f   :  { %v1522_v27 = vsel %vm7815_vm0, %v1521_v7, %v1517_v21  ;;  %6512 = vrcp.f32 %v7833_v43  ;;  %v1550_v33 = vand.u32 2147483648, %v7833_v43  ;;  %vm1544_vm7 = vweird.f32 %v7833_v43  ;;  %vm1531_vm8 = vmor %vm1529_vm5, %vm1530_vm4 }
 0x260   :  { %v7848_v9 = vmul.f32 127.0, %v1522_v27  ;;  %v1526_v48 = vsub.f32 1.0, %v1525_v25  ;;  %1813 = vmatpush.bf16.msra.mxu1 %v4887_v56  ;;  %v6195_v13 = vcvt.s32.f32 %v6194_v45  ;;  %v1548_v51 = vand.u32 2147483647, %v7833_v43  ;;  %1795 = vmatpush.bf16.msra.mxu0 %v4815_v30 }
 0x261   :  { %v1551_v28 = vor.u32 1.1754944e-38, %v1550_v33  ;;  %v6203_v22 = vcvt.s32.f32 %v6202_v10  ;;  %vm7874_vm9 = vcmp.lt.f32.partialorder %v6192_v16, 8388608.0  ;;  %vm7890_vm12 = vcmp.lt.f32.partialorder %v6200_v24, 8388608.0 }
 0x262   :  { %v1527_v34 = vmul.f32 %v7829_v18, %v1526_v48  ;;  %v1556_v7 = vmul.f32 %v7848_v9, %v1429_v35  ;;  %v6196_v46 = vand.u32 2147483647, %v6195_v13  ;;  %v1557_v49 = vmul.f32 %v7848_v9, %v1430_v4 }
 0x263   :  { %v6204_v39 = vand.u32 2147483647, %v6203_v22  ;;  %vm1549_vm14 = vcmp.eq.f32.partialorder %v1548_v51, 8.507059e+37 }
 0x264   :  { %v1528_v58 = vadd.f32 %v7829_v18, %v1527_v34  ;;  %v6210_v35 = vcvt.f32.s32 %v1556_v7  ;;  %1814 = vmatpush.bf16.msra.mxu1 %v4879_v0  ;;  %v6208_v29 = vand.u32 2147483647, %v1556_v7  ;;  %v6198_v54 = vor.u32 %v6197_v44, %v6196_v46 }
 0x265   :  { %v6513_v47 = vpop.eup %6512  ;;  %v6213_v26 = vand.u32 2147483648, %v1556_v7  ;;  %v6218_v59 = vcvt.f32.s32 %v1557_v49  ;;  %v6206_v25 = vor.u32 %v6205_v20, %v6204_v39  ;;  %v6216_v56 = vand.u32 2147483647, %v1557_v49 }
 0x266   :  { %v1532_v42 = vsel %vm1531_vm8, %v7829_v18, %v1528_v58  ;;  %v1540_v40 = vmul.f32 %v6513_v47, %v7833_v43  ;;  %v6211_v32 = vcvt.s32.f32 %v6210_v35  ;;  %v6199_v18 = vsel %vm7874_vm9, %v6198_v54, %v7825_v3 }
 0x267   :  { %v1537_v36 = vsel %vm7859_vm6, %v1536_v15, %v1532_v42  ;;  %vm1545_vm10 = vweird.f32 %v6513_v47  ;;  %v1570_v63 = vmax.f32 %v6199_v18, -128.0  ;;  %v6219_v41 = vcvt.s32.f32 %v6218_v59 }
 0x268   :  { %v7881_v8 = vmul.f32 127.0, %v1537_v36  ;;  %v1541_v4 = vsub.f32 1.0, %v1540_v40  ;;  %v6212_v62 = vand.u32 2147483647, %v6211_v32  ;;  %vm6209_vm11 = vcmp.lt.f32.partialorder %v6208_v29, 8388608.0  ;;  %vm1546_vm13 = vmor %vm1544_vm7, %vm1545_vm10 }
 0x269   :  { %v6221_v3 = vand.u32 2147483648, %v1557_v49  ;;  %v6207_v45 = vsel %vm7890_vm12, %v6206_v25, %v7838_v31  ;;  %v6220_v48 = vand.u32 2147483647, %v6219_v41  ;;  %v1578_v17 = vmin.f32 %v1570_v63, 127.0 }
 0x26a   :  { %v1542_v21 = vmul.f32 %v6513_v47, %v1541_v4  ;;  %v6214_v19 = vor.u32 %v6213_v26, %v6212_v62  ;;  %v1558_v27 = vmul.f32 %v7881_v8, %v1431_v61  ;;  %v1559_v37 = vmul.f32 %v7881_v8, %v1432_v53 }
 0x26b   :  { %vm6217_vm15 = vcmp.lt.f32.partialorder %v6216_v56, 8388608.0  ;;  %v6222_v30 = vor.u32 %v6221_v3, %v6220_v48  ;;  %v1571_v10 = vmax.f32 %v6207_v45, -128.0 }
 0x26c   :  { %v1543_v38 = vadd.f32 %v6513_v47, %v1542_v21  ;;  %v6215_v23 = vsel %vm6209_vm11, %v6214_v19, %v1556_v7  ;;  %v6226_v2 = vcvt.f32.s32 %v1558_v27  ;;  %v6229_v31 = vand.u32 2147483648, %v1558_v27 }
 0x26d   :  { %v1572_v33 = vmax.f32 %v6215_v23, -128.0  ;;  %v6223_v0 = vsel %vm6217_vm15, %v6222_v30, %v1557_v49  ;;  %v6234_v7 = vcvt.f32.s32 %v1559_v37  ;;  %v6224_v15 = vand.u32 2147483647, %v1558_v27 }
 0x26e   :  { %v1547_v61 = vsel %vm1546_vm13, %v6513_v47, %v1543_v38  ;;  %v6227_v34 = vcvt.s32.f32 %v6226_v2  ;;  %v1573_v52 = vmax.f32 %v6223_v0, -128.0  ;;  %v1579_v51 = vmin.f32 %v1571_v10, 127.0 }
 0x26f   :  { %v1552_v50 = vsel %vm1549_vm14, %v1551_v28, %v1547_v61  ;;  %v1580_v57 = vmin.f32 %v1572_v33, 127.0  ;;  %v6235_v58 = vcvt.s32.f32 %v6234_v7  ;;  %v6237_v44 = vand.u32 2147483648, %v1559_v37 }
 0x270   :  { %v7902_v43 = vmul.f32 127.0, %v1552_v50  ;;  %v6228_v11 = vand.u32 2147483647, %v6227_v34  ;;  %v1581_v28 = vmin.f32 %v1573_v52, 127.0  ;;  %v6232_v42 = vand.u32 2147483647, %v1559_v37 }
 0x271   :  { %v1586_v16 = vpack.c.bf16 %v1580_v57, %v1578_v17  ;;  %v6236_v46 = vand.u32 2147483647, %v6235_v58  ;;  %vm6225_vm0 = vcmp.lt.f32.partialorder %v6224_v15, 8388608.0  ;;  %v1826_v38 = vstv %s4807_s8 }
 0x272   :  { %v1560_v53 = vmul.f32 %v7902_v43, %v1433_v5  ;;  %v1561_v13 = vmul.f32 %v7902_v43, %v1434_v1  ;;  %v6230_v35 = vor.u32 %v6229_v31, %v6228_v11  ;;  %v1587_v22 = vpack.c.bf16 %v1581_v28, %v1579_v51 }
 0x273   :  { %1758 = vmatmul.bf16.vlgmr.msrb.gmra.mxu2 %v1586_v16  ;;  %1796 = vmatmul.bf16.vlgmr.msra.gmra.mxu0 %v1586_v16  ;;  %v6238_v40 = vor.u32 %v6237_v44, %v6236_v46  ;;  %vm6233_vm1 = vcmp.lt.f32.partialorder %v6232_v42, 8388608.0  ;;  %v1827_v55 = vmul.f32 %v1826_v38, %v7813_v12  ;;  %v1828_v3 = vmul.f32 %v1826_v38, %v7848_v9 }
 0x274   :  { %v6242_v47 = vcvt.f32.s32 %v1560_v53  ;;  %v6250_v49 = vcvt.f32.s32 %v1561_v13  ;;  %v6240_v5 = vand.u32 2147483647, %v1560_v53  ;;  %1777 = vmatmul.bf16.vlgmr.msrb.gmra.mxu3 %v1587_v22  ;;  %1815 = vmatmul.bf16.vlgmr.msra.gmra.mxu1 %v1587_v22  ;;  %v6231_v14 = vsel %vm6225_vm0, %v6230_v35, %v1558_v27 }
 0x275   :  { %v6245_v29 = vand.u32 2147483648, %v1560_v53  ;;  %v6248_v36 = vand.u32 2147483647, %v1561_v13  ;;  %v6253_v32 = vand.u32 2147483648, %v1561_v13  ;;  %v1574_v4 = vmax.f32 %v6231_v14, -128.0 }
 0x276   :  { %v6243_v60 = vcvt.s32.f32 %v6242_v47  ;;  %v6251_v6 = vcvt.s32.f32 %v6250_v49  ;;  %vm6241_vm2 = vcmp.lt.f32.partialorder %v6240_v5, 8388608.0  ;;  %v6239_v39 = vsel %vm6233_vm1, %v6238_v40, %v1559_v37 }
 0x277   :  { %vm6249_vm3 = vcmp.lt.f32.partialorder %v6248_v36, 8388608.0  ;;  %v1575_v59 = vmax.f32 %v6239_v39, -128.0  ;;  %v1582_v25 = vmin.f32 %v1574_v4, 127.0  ;;  %6514 = vrcp.f32 %v1827_v55 }
 0x278   :  { %v6244_v1 = vand.u32 2147483647, %v6243_v60  ;;  %v6252_v54 = vand.u32 2147483647, %v6251_v6  ;;  %6516 = vrcp.f32 %v1828_v3  ;;  %v7913_v48 = vmul.f32 %v1826_v38, %v7881_v8 }
 0x279   :  { %v1583_v41 = vmin.f32 %v1575_v59, 127.0  ;;  %v7917_v50 = vmul.f32 %v1826_v38, %v7902_v43  ;;  %v1842_v57 = vand.u32 2147483648, %v1827_v55  ;;  %vm1836_vm5 = vweird.f32 %v1827_v55  ;;  %v4806_v43 = vld [vmem:[%s8956_s2 + $0x1] ss:$8 sm:$0x3] }
 0x27a   :  { %v6246_v24 = vor.u32 %v6245_v29, %v6244_v1  ;;  %v6254_v20 = vor.u32 %v6253_v32, %v6252_v54  ;;  %6518 = vrcp.f32 %v7913_v48  ;;  %v1840_v10 = vand.u32 2147483647, %v1827_v55 }
 0x27b   :  { %6520 = vrcp.f32 %v7917_v50  ;;  %v1843_v7 = vor.u32 1.1754944e-38, %v1842_v57  ;;  %v7929_v58 = vperm.slane %v4806_v43, 1  ;;  %v1857_v35 = vand.u32 2147483648, %v1828_v3 }
 0x27c   :  { %v6247_v18 = vsel %vm6241_vm2, %v6246_v24, %v1560_v53  ;;  %v6255_v26 = vsel %vm6249_vm3, %v6254_v20, %v1561_v13  ;;  %vm1841_vm7 = vcmp.eq.f32.partialorder %v1840_v10, 8.507059e+37  ;;  %vm1851_vm9 = vweird.f32 %v1828_v3 }
 0x27d   :  { %v1576_v62 = vmax.f32 %v6247_v18, -128.0  ;;  %v1577_v21 = vmax.f32 %v6255_v26, -128.0  ;;  %v6515_v23 = vpop.eup %6514  ;;  %v1855_v47 = vand.u32 2147483647, %v1828_v3  ;;  %v7937_v42 = vperm.slane %v4806_v43, 0  ;;  %v5806_v26 = vld [vmem:[%s8959_s5 + $0x70] sm:$0xff] }
 0x27e   :  { %v1832_v45 = vmul.f32 %v6515_v23, %v1827_v55  ;;  %v6517_v61 = vpop.eup %6516  ;;  %vm1837_vm4 = vweird.f32 %v6515_v23  ;;  %v1858_v6 = vor.u32 1.1754944e-38, %v1857_v35  ;;  %vm1866_vm13 = vweird.f32 %v7913_v48 }
 0x27f   :  { %v1584_v56 = vmin.f32 %v1576_v62, 127.0  ;;  %v1585_v19 = vmin.f32 %v1577_v21, 127.0  ;;  %v1847_v2 = vmul.f32 %v6517_v61, %v1828_v3  ;;  %vm1838_vm6 = vmor %vm1836_vm5, %vm1837_vm4  ;;  %vm1852_vm8 = vweird.f32 %v6517_v61 }
 0x280   :  { %v1833_v37 = vsub.f32 1.0, %v1832_v45  ;;  %v7919_v17 = vpop.eup %6518  ;;  %vm1853_vm10 = vmor %vm1851_vm9, %vm1852_vm8  ;;  %vm1856_vm11 = vcmp.eq.f32.partialorder %v1855_v47, 8.507059e+37  ;;  %v1872_v18 = vand.u32 2147483648, %v7913_v48  ;;  %v1870_v59 = vand.u32 2147483647, %v7913_v48 }
 0x281   :  { %v1588_v63 = vpack.c.bf16 %v1584_v56, %v1582_v25  ;;  %v1589_v27 = vpack.c.bf16 %v1585_v19, %v1583_v41  ;;  %v1848_v9 = vsub.f32 1.0, %v1847_v2  ;;  %v1862_v8 = vmul.f32 %v7919_v17, %v7913_v48  ;;  %v7927_v15 = vpop.eup %6520 }
 0x282   :  { %v1834_v33 = vmul.f32 %v6515_v23, %v1833_v37  ;;  %v1877_v49 = vmul.f32 %v7927_v15, %v7917_v50  ;;  %vm1867_vm12 = vweird.f32 %v7919_v17  ;;  %v1873_v55 = vor.u32 1.1754944e-38, %v1872_v18  ;;  %v5798_v18 = vld [vmem:[%s8959_s5 + $0x30] sm:$0xff] }
 0x283   :  { %1763 = vmatmul.bf16.gmra.mxu2 %v1588_v63  ;;  %1801 = vmatmul.bf16.gmra.mxu0 %v1588_v63  ;;  %v1849_v0 = vmul.f32 %v6517_v61, %v1848_v9  ;;  %v1863_v11 = vsub.f32 1.0, %v1862_v8  ;;  %vm7948_vm14 = vmor %vm1866_vm13, %vm1867_vm12  ;;  %vm1871_vm15 = vcmp.eq.f32.partialorder %v1870_v59, 8.507059e+37  ;;  %vm1882_vm0 = vweird.f32 %v7927_v15  ;;  %v5797_v59 = vld [vmem:[%s8959_s5 + $0x28] sm:$0xff] }
 0x284   :  { %1782 = vmatmul.bf16.gmra.mxu3 %v1589_v27  ;;  %1820 = vmatmul.bf16.gmra.mxu1 %v1589_v27  ;;  %v1835_v12 = vadd.f32 %v6515_v23, %v1834_v33  ;;  %v1878_v32 = vsub.f32 1.0, %v1877_v49  ;;  %vm1881_vm1 = vweird.f32 %v7917_v50 }
 0x285   :  { %v1850_v51 = vadd.f32 %v6517_v61, %v1849_v0  ;;  %v1864_v44 = vmul.f32 %v7919_v17, %v1863_v11  ;;  %vm7972_vm2 = vmor %vm1881_vm1, %vm1882_vm0 }
 0x286   :  { %v1839_v34 = vsel %vm1838_vm6, %v6515_v23, %v1835_v12  ;;  %v1879_v56 = vmul.f32 %v7927_v15, %v1878_v32  ;;  %v1887_v12 = vand.u32 2147483648, %v7917_v50  ;;  %v5799_v32 = vld [vmem:[%s8959_s5 + $0x38] sm:$0xff] }
 0x287   :  { %v1844_v52 = vsel %vm1841_vm7, %v1843_v7, %v1839_v34  ;;  %v1854_v5 = vsel %vm1853_vm10, %v6517_v61, %v1850_v51  ;;  %v1865_v54 = vadd.f32 %v7919_v17, %v1864_v44  ;;  %2170 = vmatpush.bf16.msra.mxu2 %v5799_v32 }
 0x288   :  { %v1859_v29 = vsel %vm1856_vm11, %v1858_v6, %v1854_v5  ;;  %v1880_v61 = vadd.f32 %v7927_v15, %v1879_v56 }
 0x289   :  { %v1869_v25 = vsel %vm7948_vm14, %v7919_v17, %v1865_v54 }
 0x28a   :  { %v1874_v48 = vsel %vm1871_vm15, %v1873_v55, %v1869_v25  ;;  %v1884_v34 = vsel %vm7972_vm2, %v7927_v15, %v1880_v61  ;;  %v5804_v55 = vld [vmem:[%s8959_s5 + $0x60] sm:$0xff] }
 0x28b   :  { %2171 = vmatpush.bf16.msra.mxu2 %v5798_v18 }
 0x28f   :  { %2172 = vmatpush.bf16.msra.mxu2 %v5797_v59 }
 0x2f0   :  { %v1797_v30 = vpop.f32.mrf.mxu0 }
 0x2f1   :  { %v1816_v31 = vpop.f32.mrf.mxu1 }
 0x2f2   :  { %v1817_v16 = vadd.f32 %v1816_v31, %v1797_v30  ;;  %v1885_v30 = vand.u32 2147483647, %v7917_v50  ;;  %v1888_v50 = vor.u32 1.1754944e-38, %v1887_v12 }
 0x2f4   :  { %v1892_v13 = vmul.f32 %v1844_v52, %v1817_v16  ;;  %vm1886_vm3 = vcmp.eq.f32.partialorder %v1885_v30, 8.507059e+37 }
 0x2f6   :  { %v1759_v53 = vpop.f32.mrf.mxu2  ;;  %v7935_v22 = vadd.f32 %v7929_v58, %v1892_v13  ;;  %v1889_v13 = vsel %vm1886_vm3, %v1888_v50, %v1884_v34  ;;  %v5794_v34 = vld [vmem:[%s8959_s5 + $0x10] sm:$0xff] }
 0x2f7   :  { %v1778_v46 = vpop.f32.mrf.mxu3 }
 0x2f8   :  { %v1799_v28 = vpop.f32.mrf.mxu0  ;;  %v1779_v60 = vadd.f32 %v1778_v46, %v1759_v53  ;;  %v1913_v24 = vmax.f32 %v7935_v22, 0.0 }
 0x2f9   :  { %v1818_v40 = vpop.f32.mrf.mxu1 }
 0x2fa   :  { %v1891_v14 = vmul.f32 %v1844_v52, %v1779_v60  ;;  %v1819_v1 = vadd.f32 %v1818_v40, %v1799_v28  ;;  %v1955_v27 = vand.u32 2147483647, %v1913_v24 }
 0x2fc   :  { %v7943_v4 = vadd.f32 %v7937_v42, %v1891_v14  ;;  %v1894_v39 = vmul.f32 %v1859_v29, %v1819_v1 }
 0x2fe   :  { %v1761_v36 = vpop.f32.mrf.mxu2  ;;  %v1912_v62 = vmax.f32 %v7943_v4, 0.0  ;;  %v7958_v19 = vadd.f32 %v7929_v58, %v1894_v39 }
 0x2ff   :  { %v1780_v21 = vpop.f32.mrf.mxu3 }
 0x300   :  { %v1802_v20 = vpop.f32.mrf.mxu0  ;;  %v1781_v63 = vadd.f32 %v1780_v21, %v1761_v36  ;;  %v1954_v41 = vand.u32 2147483647, %v1912_v62  ;;  %v1915_v33 = vmax.f32 %v7958_v19, 0.0  ;;  %v5805_v21 = vld [vmem:[%s8959_s5 + $0x68] sm:$0xff] }
 0x301   :  { %v1821_v38 = vpop.f32.mrf.mxu1 }
 0x302   :  { %v1893_v3 = vmul.f32 %v1859_v29, %v1781_v63  ;;  %v1822_v23 = vadd.f32 %v1821_v38, %v1802_v20  ;;  %v1962_v45 = vmax.f32 %v1954_v41, %v1955_v27  ;;  %v1957_v7 = vand.u32 2147483647, %v1915_v33  ;;  %v5796_v38 = vld [vmem:[%s8959_s5 + $0x20] sm:$0xff] }
 0x303   :  { %2173 = vmatpush.bf16.msra.mxu2 %v5796_v38 }
 0x304   :  { %v7968_v2 = vadd.f32 %v7937_v42, %v1893_v3  ;;  %v1896_v17 = vmul.f32 %v1874_v48, %v1822_v23  ;;  %1963 = vmax.xlane.f32.xlu2 %v1962_v45 }
 0x306   :  { %v1764_v37 = vpop.f32.mrf.mxu2  ;;  %v1914_v57 = vmax.f32 %v7968_v2, 0.0  ;;  %v7982_v0 = vadd.f32 %v7929_v58, %v1896_v17 }
 0x307   :  { %v1783_v10 = vpop.f32.mrf.mxu3 }
 0x308   :  { %v1804_v8 = vpop.f32.mrf.mxu0  ;;  %v1784_v43 = vadd.f32 %v1783_v10, %v1764_v37  ;;  %v1956_v31 = vand.u32 2147483647, %v1914_v57  ;;  %v1917_v51 = vmax.f32 %v7982_v0, 0.0  ;;  %v5803_v37 = vld [vmem:[%s8959_s5 + $0x58] sm:$0xff] }
 0x309   :  { %v1823_v16 = vpop.f32.mrf.mxu1 }
 0x30a   :  { %v1895_v52 = vmul.f32 %v1874_v48, %v1784_v43  ;;  %v1824_v53 = vadd.f32 %v1823_v16, %v1804_v8  ;;  %v1965_v11 = vmax.f32 %v1956_v31, %v1957_v7  ;;  %v1959_v5 = vand.u32 2147483647, %v1917_v51  ;;  %v5795_v48 = vld [vmem:[%s8959_s5 + $0x18] sm:$0xff]  ;;  %v5802_v43 = vld [vmem:[%s8959_s5 + $0x50] sm:$0xff] }
 0x30b   :  { %2174 = vmatpush.bf16.msra.mxu2 %v5795_v48 }
 0x30c   :  { %v7990_v15 = vadd.f32 %v7937_v42, %v1895_v52  ;;  %v1898_v28 = vmul.f32 %v1889_v13, %v1824_v53  ;;  %1966 = vmax.xlane.f32.xlu0 %v1965_v11  ;;  %v5793_v11 = vld [vmem:[%s8959_s5 + $0x8] sm:$0xff] }
 0x30e   :  { %v1766_v35 = vpop.f32.mrf.mxu2  ;;  %v1916_v47 = vmax.f32 %v7990_v15, 0.0  ;;  %v7994_v44 = vadd.f32 %v7929_v58, %v1898_v28 }
 0x30f   :  { %v1785_v46 = vpop.f32.mrf.mxu3  ;;  %2175 = vmatpush.bf16.msra.mxu2 %v5794_v34 }
 0x310   :  { %v1786_v49 = vadd.f32 %v1785_v46, %v1766_v35  ;;  %v1958_v60 = vand.u32 2147483647, %v1916_v47  ;;  %v1919_v14 = vmax.f32 %v7994_v44, 0.0 }
 0x312   :  { %v1897_v40 = vmul.f32 %v1889_v13, %v1786_v49  ;;  %v1968_v6 = vmax.f32 %v1958_v60, %v1959_v5  ;;  %v1961_v36 = vand.u32 2147483647, %v1919_v14  ;;  %v5801_v13 = vld [vmem:[%s8959_s5 + $0x48] sm:$0xff] }
 0x313   :  { %2176 = vmatpush.bf16.msra.mxu2 %v5793_v11 }
 0x314   :  { %v8002_v1 = vadd.f32 %v7937_v42, %v1897_v40  ;;  %1969 = vmax.xlane.f32.xlu1 %v1968_v6  ;;  %v5807_v42 = vld [vmem:[%s8959_s5 + $0x78] sm:$0xff] }
 0x315   :  { %2189 = vmatpush.bf16.msra.mxu3 %v5807_v42 }
 0x316   :  { %v1918_v29 = vmax.f32 %v8002_v1, 0.0 }
 0x318   :  { %v1960_v58 = vand.u32 2147483647, %v1918_v29 }
 0x319   :  { %2190 = vmatpush.bf16.msra.mxu3 %v5806_v26 }
 0x31a   :  { %v1971_v54 = vmax.f32 %v1960_v58, %v1961_v36  ;;  %v5800_v36 = vld [vmem:[%s8959_s5 + $0x40] sm:$0xff] }
 0x31c   :  { %1972 = vmax.xlane.f32.xlu2 %v1971_v54 }
 0x31d   :  { %2191 = vmatpush.bf16.msra.mxu3 %v5805_v21 }
 0x321   :  { %2192 = vmatpush.bf16.msra.mxu3 %v5804_v55 }
 0x325   :  { %2193 = vmatpush.bf16.msra.mxu3 %v5803_v37 }
 0x329   :  { %2194 = vmatpush.bf16.msra.mxu3 %v5802_v43 }
 0x32d   :  { %2195 = vmatpush.bf16.msra.mxu3 %v5801_v13 }
 0x331   :  { %2196 = vmatpush.bf16.msra.mxu3 %v5800_v36 }
 0x377   :  { %v1964_v39 = vpop.xlane.xlu2 %1963 }
 0x378   :  { %v1974_v20 = vmax.f32 %v1964_v39, 1e-05 }
 0x37a   :  { %6522 = vrcp.f32 %v1974_v20  ;;  %v1989_v3 = vand.u32 2147483648, %v1974_v20  ;;  %v1987_v45 = vand.u32 2147483647, %v1974_v20  ;;  %vm1983_vm5 = vweird.f32 %v1974_v20 }
 0x37c   :  { %v1990_v9 = vor.u32 1.1754944e-38, %v1989_v3  ;;  %vm1988_vm7 = vcmp.eq.f32.partialorder %v1987_v45, 8.507059e+37 }
 0x37f   :  { %v1967_v25 = vpop.xlane.xlu0 %1966 }
 0x380   :  { %v6523_v56 = vpop.eup %6522  ;;  %v1975_v63 = vmax.f32 %v1967_v25, 1e-05 }
 0x381   :  { %v1979_v41 = vmul.f32 %v6523_v56, %v1974_v20  ;;  %vm1984_vm4 = vweird.f32 %v6523_v56 }
 0x382   :  { %6524 = vrcp.f32 %v1975_v63  ;;  %vm1985_vm6 = vmor %vm1983_vm5, %vm1984_vm4  ;;  %v2002_v50 = vand.u32 2147483647, %v1975_v63  ;;  %v2004_v52 = vand.u32 2147483648, %v1975_v63  ;;  %vm1998_vm9 = vweird.f32 %v1975_v63 }
 0x383   :  { %v1980_v27 = vsub.f32 1.0, %v1979_v41 }
 0x384   :  { %v2005_v40 = vor.u32 1.1754944e-38, %v2004_v52  ;;  %vm2003_vm11 = vcmp.eq.f32.partialorder %v2002_v50, 8.507059e+37 }
 0x385   :  { %v1981_v23 = vmul.f32 %v6523_v56, %v1980_v27 }
 0x387   :  { %v1982_v61 = vadd.f32 %v6523_v56, %v1981_v23  ;;  %v1970_v17 = vpop.xlane.xlu1 %1969 }
 0x388   :  { %v6525_v12 = vpop.eup %6524  ;;  %v8039_v30 = vmax.f32 %v1970_v17, 1e-05 }
 0x389   :  { %v1986_v10 = vsel %vm1985_vm6, %v6523_v56, %v1982_v61  ;;  %v1994_v8 = vmul.f32 %v6525_v12, %v1975_v63  ;;  %vm1999_vm8 = vweird.f32 %v6525_v12 }
 0x38a   :  { %v1991_v31 = vsel %vm1988_vm7, %v1990_v9, %v1986_v10  ;;  %6526 = vrcp.f32 %v8039_v30  ;;  %vm2000_vm10 = vmor %vm1998_vm9, %vm1999_vm8  ;;  %v2017_v6 = vand.u32 2147483647, %v8039_v30  ;;  %v2019_v32 = vand.u32 2147483648, %v8039_v30 }
 0x38b   :  { %v8048_v7 = vmul.f32 127.0, %v1991_v31  ;;  %v1995_v16 = vsub.f32 1.0, %v1994_v8  ;;  %vm2013_vm12 = vweird.f32 %v8039_v30 }
 0x38c   :  { %vm8083_vm13 = vcmp.eq.f32.partialorder %v2017_v6, 8.507059e+37  ;;  %v2020_v41 = vor.u32 1.1754944e-38, %v2019_v32 }
 0x38d   :  { %v1996_v53 = vmul.f32 %v6525_v12, %v1995_v16  ;;  %v8059_v28 = vmul.f32 %v8048_v7, %v1912_v62  ;;  %v8064_v35 = vmul.f32 %v8048_v7, %v1913_v24  ;;  %v5792_v24 = vld [vmem:[%s8959_s5] sm:$0xff]  ;;  %s4936_s5 = sld [smem:[#allocation2 + $0x2]] }
 0x38e   :  { %2177 = vmatpush.bf16.msra.mxu2 %v5792_v24 }
 0x38f   :  { %v1997_v46 = vadd.f32 %v6525_v12, %v1996_v53  ;;  %v1973_v49 = vpop.xlane.xlu2 %1972  ;;  %v6258_v60 = vcvt.f32.s32 %v8059_v28  ;;  %v6266_v4 = vcvt.f32.s32 %v8064_v35  ;;  %v6256_v26 = vand.u32 2147483647, %v8059_v28 }
 0x390   :  { %v6527_v5 = vpop.eup %6526  ;;  %v8068_v58 = vmax.f32 %v1973_v49, 1e-05  ;;  %v6261_v59 = vand.u32 2147483648, %v8059_v28  ;;  %v6264_v38 = vand.u32 2147483647, %v8064_v35  ;;  %v6269_v48 = vand.u32 2147483648, %v8064_v35 }
 0x391   :  { %v2001_v62 = vsel %vm2000_vm10, %v6525_v12, %v1997_v46  ;;  %v2009_v22 = vmul.f32 %v6527_v5, %v8039_v30  ;;  %v6259_v20 = vcvt.s32.f32 %v6258_v60  ;;  %v6267_v21 = vcvt.s32.f32 %v6266_v4 }
 0x392   :  { %v2006_v54 = vsel %vm2003_vm11, %v2005_v40, %v2001_v62  ;;  %6528 = vrcp.f32 %v8068_v58  ;;  %vm2014_vm14 = vweird.f32 %v6527_v5  ;;  %vm2028_vm0 = vweird.f32 %v8068_v58 }
 0x393   :  { %v8080_v42 = vmul.f32 127.0, %v2006_v54  ;;  %v2010_v39 = vsub.f32 1.0, %v2009_v22  ;;  %v6260_v63 = vand.u32 2147483647, %v6259_v20  ;;  %v6268_v55 = vand.u32 2147483647, %v6267_v21  ;;  %vm2015_vm15 = vmor %vm2013_vm12, %vm2014_vm14 }
 0x394   :  { %v2032_v2 = vand.u32 2147483647, %v8068_v58  ;;  %vm8101_vm1 = vcmp.lt.f32.partialorder %v6256_v26, 8388608.0  ;;  %v2034_v17 = vand.u32 2147483648, %v8068_v58  ;;  %vm8112_vm2 = vcmp.lt.f32.partialorder %v6264_v38, 8388608.0 }
 0x395   :  { %v2011_v25 = vmul.f32 %v6527_v5, %v2010_v39  ;;  %v2040_v56 = vmul.f32 %v8080_v42, %v1914_v57  ;;  %v2041_v27 = vmul.f32 %v8080_v42, %v1915_v33  ;;  %v6262_v23 = vor.u32 %v6261_v59, %v6260_v63 }
 0x396   :  { %v6270_v12 = vor.u32 %v6269_v48, %v6268_v55  ;;  %vm2033_vm4 = vcmp.eq.f32.partialorder %v2032_v2, 8.507059e+37 }
 0x397   :  { %v2012_v3 = vadd.f32 %v6527_v5, %v2011_v25  ;;  %v6274_v45 = vcvt.f32.s32 %v2040_v56  ;;  %v6282_v33 = vcvt.f32.s32 %v2041_v27  ;;  %v6263_v30 = vsel %vm8101_vm1, %v6262_v23, %v8059_v28 }
 0x398   :  { %v6529_v37 = vpop.eup %6528  ;;  %v6272_v31 = vand.u32 2147483647, %v2040_v56  ;;  %v6277_v16 = vand.u32 2147483648, %v2040_v56  ;;  %v6280_v52 = vand.u32 2147483647, %v2041_v27  ;;  %v2054_v13 = vmax.f32 %v6263_v30, -128.0 }
 0x399   :  { %v2016_v57 = vsel %vm2015_vm15, %v6527_v5, %v2012_v3  ;;  %v2024_v61 = vmul.f32 %v6529_v37, %v8068_v58  ;;  %v6275_v10 = vcvt.s32.f32 %v6274_v45  ;;  %vm2029_vm3 = vweird.f32 %v6529_v37 }
 0x39a   :  { %v2021_v9 = vsel %vm8083_vm13, %v2020_v41, %v2016_v57  ;;  %v6283_v53 = vcvt.s32.f32 %v6282_v33  ;;  %v6271_v28 = vsel %vm8112_vm2, %v6270_v12, %v8064_v35  ;;  %v6285_v5 = vand.u32 2147483648, %v2041_v27  ;;  %vm2030_vm6 = vmor %vm2028_vm0, %vm2029_vm3 }
 0x39b   :  { %v8116_v34 = vmul.f32 127.0, %v2021_v9  ;;  %v2025_v43 = vsub.f32 1.0, %v2024_v61  ;;  %v6276_v50 = vand.u32 2147483647, %v6275_v10  ;;  %vm6273_vm5 = vcmp.lt.f32.partialorder %v6272_v31, 8388608.0 }
 0x39c   :  { %v6284_v60 = vand.u32 2147483647, %v6283_v53  ;;  %v2035_v35 = vor.u32 1.1754944e-38, %v2034_v17  ;;  %v2055_v22 = vmax.f32 %v6271_v28, -128.0  ;;  %vm6281_vm7 = vcmp.lt.f32.partialorder %v6280_v52, 8388608.0 }
 0x39d   :  { %v2026_v11 = vmul.f32 %v6529_v37, %v2025_v43  ;;  %v2042_v46 = vmul.f32 %v8116_v34, %v1916_v47  ;;  %v6278_v49 = vor.u32 %v6277_v16, %v6276_v50  ;;  %v2043_v40 = vmul.f32 %v8116_v34, %v1917_v51 }
 0x39e   :  { %v6286_v15 = vor.u32 %v6285_v5, %v6284_v60  ;;  %v2062_v0 = vmin.f32 %v2054_v13, 127.0  ;;  %v2063_v59 = vmin.f32 %v2055_v22, 127.0 }
 0x39f   :  { %v2027_v6 = vadd.f32 %v6529_v37, %v2026_v11  ;;  %v6290_v4 = vcvt.f32.s32 %v2042_v46  ;;  %v6279_v62 = vsel %vm6273_vm5, %v6278_v49, %v2040_v56  ;;  %v6298_v51 = vcvt.f32.s32 %v2043_v40 }
 0x3a0   :  { %v2056_v24 = vmax.f32 %v6279_v62, -128.0  ;;  %v6287_v32 = vsel %vm6281_vm7, %v6286_v15, %v2041_v27  ;;  %v6293_v63 = vand.u32 2147483648, %v2042_v46  ;;  %v6288_v41 = vand.u32 2147483647, %v2042_v46 }
 0x3a1   :  { %v2031_v47 = vsel %vm2030_vm6, %v6529_v37, %v2027_v6  ;;  %v6291_v36 = vcvt.s32.f32 %v6290_v4  ;;  %v2057_v18 = vmax.f32 %v6287_v32, -128.0  ;;  %v6299_v58 = vcvt.s32.f32 %v6298_v51 }
 0x3a2   :  { %v2036_v54 = vsel %vm2033_vm4, %v2035_v35, %v2031_v47  ;;  %v2064_v20 = vmin.f32 %v2056_v24, 127.0  ;;  %v6301_v45 = vand.u32 2147483648, %v2043_v40  ;;  %v6296_v48 = vand.u32 2147483647, %v2043_v40 }
 0x3a3   :  { %v8130_v39 = vmul.f32 127.0, %v2036_v54  ;;  %v6292_v26 = vand.u32 2147483647, %v6291_v36  ;;  %v2065_v25 = vmin.f32 %v2057_v18, 127.0  ;;  %v6300_v38 = vand.u32 2147483647, %v6299_v58 }
 0x3a4   :  { %v2070_v21 = vpack.c.bf16 %v2064_v20, %v2062_v0  ;;  %vm6289_vm8 = vcmp.lt.f32.partialorder %v6288_v41, 8388608.0  ;;  %vm6297_vm9 = vcmp.lt.f32.partialorder %v6296_v48, 8388608.0  ;;  %v2208_v49 = vstv %s4936_s5 }
 0x3a5   :  { %v2044_v56 = vmul.f32 %v8130_v39, %v1918_v29  ;;  %v2045_v27 = vmul.f32 %v8130_v39, %v1919_v14  ;;  %v2071_v55 = vpack.c.bf16 %v2065_v25, %v2063_v59  ;;  %v6294_v3 = vor.u32 %v6293_v63, %v6292_v26  ;;  %v1952_v59 = vld [vmem:[%s8956_s2 + $0x2] ss:$0 sm:$0xff] }
 0x3a6   :  { %2178 = vmatmul.bf16.vlgmr.msra.gmra.mxu2 %v2070_v21  ;;  %v6302_v2 = vor.u32 %v6301_v45, %v6300_v38  ;;  %v2209_v60 = vmul.f32 %v2208_v49, %v8048_v7  ;;  %v2210_v5 = vmul.f32 %v2208_v49, %v8080_v42  ;;  %v8141_v4 = vmul.f32 %v2208_v49, %v8116_v34 }
 0x3a7   :  { %v6306_v23 = vcvt.f32.s32 %v2044_v56  ;;  %2197 = vmatmul.bf16.vlgmr.msra.gmra.mxu3 %v2071_v55  ;;  %v6314_v19 = vcvt.f32.s32 %v2045_v27  ;;  %v6304_v1 = vand.u32 2147483647, %v2044_v56  ;;  %v6295_v29 = vsel %vm6289_vm8, %v6294_v3, %v2042_v46 }
 0x3a8   :  { %v6309_v57 = vand.u32 2147483648, %v2044_v56  ;;  %v6312_v44 = vand.u32 2147483647, %v2045_v27  ;;  %v6303_v17 = vsel %vm6297_vm9, %v6302_v2, %v2043_v40  ;;  %v6317_v9 = vand.u32 2147483648, %v2045_v27 }
 0x3a9   :  { %v6307_v37 = vcvt.s32.f32 %v6306_v23  ;;  %v6315_v61 = vcvt.s32.f32 %v6314_v19  ;;  %vm6305_vm10 = vcmp.lt.f32.partialorder %v6304_v1, 8388608.0  ;;  %v2058_v30 = vmax.f32 %v6295_v29, -128.0 }
 0x3aa   :  { %vm6313_vm11 = vcmp.lt.f32.partialorder %v6312_v44, 8388608.0  ;;  %v2059_v31 = vmax.f32 %v6303_v17, -128.0  ;;  %6530 = vrcp.f32 %v2209_v60  ;;  %v8145_v47 = vmul.f32 %v2208_v49, %v8130_v39 }
 0x3ab   :  { %v6308_v33 = vand.u32 2147483647, %v6307_v37  ;;  %v6316_v12 = vand.u32 2147483647, %v6315_v61  ;;  %v2066_v50 = vmin.f32 %v2058_v30, 127.0  ;;  %6532 = vrcp.f32 %v2210_v5 }
 0x3ac   :  { %v2067_v13 = vmin.f32 %v2059_v31, 127.0  ;;  %6534 = vrcp.f32 %v8141_v4  ;;  %v2224_v42 = vand.u32 2147483648, %v2209_v60  ;;  %vm2218_vm13 = vweird.f32 %v2209_v60 }
 0x3ad   :  { %v6310_v14 = vor.u32 %v6309_v57, %v6308_v33  ;;  %v6318_v8 = vor.u32 %v6317_v9, %v6316_v12  ;;  %v2222_v54 = vand.u32 2147483647, %v2209_v60  ;;  %6536 = vrcp.f32 %v8145_v47 }
 0x3ae   :  { %v2225_v18 = vor.u32 1.1754944e-38, %v2224_v42  ;;  %v2239_v63 = vand.u32 2147483648, %v2210_v5  ;;  %vm2233_vm1 = vweird.f32 %v2210_v5  ;;  %v2237_v41 = vand.u32 2147483647, %v2210_v5  ;;  %v5053_v42 = vld [vmem:[#allocation8 + $0x60] sm:$0xf] }
 0x3af   :  { %v6311_v10 = vsel %vm6305_vm10, %v6310_v14, %v2044_v56  ;;  %v6319_v16 = vsel %vm6313_vm11, %v6318_v8, %v2045_v27  ;;  %vm2223_vm15 = vcmp.eq.f32.partialorder %v2222_v54, 8.507059e+37  ;;  %v2254_v57 = vand.u32 2147483648, %v8141_v4  ;;  %v5821_v54 = vld [vmem:[#allocation8 + $0x64] sm:$0xf0] }
 0x3b0   :  { %v2060_v43 = vmax.f32 %v6311_v10, -128.0  ;;  %v2061_v53 = vmax.f32 %v6319_v16, -128.0  ;;  %v6531_v40 = vpop.eup %6530  ;;  %v2240_v37 = vor.u32 1.1754944e-38, %v2239_v63  ;;  %vm2238_vm3 = vcmp.eq.f32.partialorder %v2237_v41, 8.507059e+37  ;;  %v5037_v41 = vld [vmem:[#allocation8 + $0x40] sm:$0xf] }
 0x3b1   :  { %v2214_v6 = vmul.f32 %v6531_v40, %v2209_v60  ;;  %v6533_v62 = vpop.eup %6532  ;;  %vm2219_vm12 = vweird.f32 %v6531_v40  ;;  %vm2248_vm5 = vweird.f32 %v8141_v4  ;;  %v2252_v61 = vand.u32 2147483647, %v8141_v4 }
 0x3b2   :  { %v2068_v52 = vmin.f32 %v2060_v43, 127.0  ;;  %v2069_v28 = vmin.f32 %v2061_v53, 127.0  ;;  %v2229_v22 = vmul.f32 %v6533_v62, %v2210_v5  ;;  %v6535_v36 = vpop.eup %6534  ;;  %vm2220_vm14 = vmor %vm2218_vm13, %vm2219_vm12  ;;  %vm2234_vm0 = vweird.f32 %v6533_v62 }
 0x3b3   :  { %v2215_v35 = vsub.f32 1.0, %v2214_v6  ;;  %v2244_v51 = vmul.f32 %v6535_v36, %v8141_v4  ;;  %v6537_v56 = vpop.eup %6536  ;;  %vm2235_vm2 = vmor %vm2233_vm1, %vm2234_vm0  ;;  %vm2249_vm4 = vweird.f32 %v6535_v36  ;;  %v2255_v10 = vor.u32 1.1754944e-38, %v2254_v57 }
 0x3b4   :  { %v2072_v11 = vpack.c.bf16 %v2068_v52, %v2066_v50  ;;  %v2073_v46 = vpack.c.bf16 %v2069_v28, %v2067_v13  ;;  %v2230_v7 = vsub.f32 1.0, %v2229_v22  ;;  %v2259_v45 = vmul.f32 %v6537_v56, %v8145_v47  ;;  %vm2250_vm6 = vmor %vm2248_vm5, %vm2249_vm4 }
 0x3b5   :  { %v2216_v15 = vmul.f32 %v6531_v40, %v2215_v35  ;;  %v2245_v25 = vsub.f32 1.0, %v2244_v51  ;;  %vm2253_vm7 = vcmp.eq.f32.partialorder %v2252_v61, 8.507059e+37  ;;  %vm2264_vm8 = vweird.f32 %v6537_v56  ;;  %v5061_v35 = vld [vmem:[#allocation8 + $0x70] sm:$0xf] }
 0x3b6   :  { %2183 = vmatmul.bf16.gmra.mxu2 %v2072_v11  ;;  %v2231_v32 = vmul.f32 %v6533_v62, %v2230_v7  ;;  %v2260_v33 = vsub.f32 1.0, %v2259_v45  ;;  %v2269_v50 = vand.u32 2147483648, %v8145_v47  ;;  %vm2263_vm9 = vweird.f32 %v8145_v47 }
 0x3b7   :  { %2202 = vmatmul.bf16.gmra.mxu3 %v2073_v46  ;;  %v2217_v24 = vadd.f32 %v6531_v40, %v2216_v15  ;;  %v2246_v23 = vmul.f32 %v6535_v36, %v2245_v25  ;;  %v2267_v52 = vand.u32 2147483647, %v8145_v47  ;;  %vm2265_vm10 = vmor %vm2263_vm9, %vm2264_vm8  ;;  %v5822_v15 = vld [vmem:[#allocation8 + $0x74] sm:$0xf]  ;;  %v5063_v47 = vld [vmem:[#allocation8 + $0x78] sm:$0xf0] }
 0x3b8   :  { %v2232_v21 = vadd.f32 %v6533_v62, %v2231_v32  ;;  %v2261_v9 = vmul.f32 %v6537_v56, %v2260_v33  ;;  %v2270_v49 = vor.u32 1.1754944e-38, %v2269_v50  ;;  %v5066_v7 = vor.u32 %v5822_v15, %v5063_v47  ;;  %v5031_v33 = vld [vmem:[#allocation8 + $0x38] sm:$0xf0] }
 0x3b9   :  { %v2221_v34 = vsel %vm2220_vm14, %v6531_v40, %v2217_v24  ;;  %v2247_v29 = vadd.f32 %v6535_v36, %v2246_v23  ;;  %vm2268_vm11 = vcmp.eq.f32.partialorder %v2267_v52, 8.507059e+37  ;;  %v5054_v32 = vor.u32 %v5821_v54, %v5053_v42  ;;  %v5039_v23 = vld [vmem:[#allocation8 + $0x48] sm:$0xf0]  ;;  %v5808_v42 = vld [vmem:[#allocation8 + $0x4] sm:$0xf] }
 0x3ba   :  { %v2226_v39 = vsel %vm2223_vm15, %v2225_v18, %v2221_v34  ;;  %v2236_v55 = vsel %vm2235_vm2, %v6533_v62, %v2232_v21  ;;  %v2262_v16 = vadd.f32 %v6537_v56, %v2261_v9  ;;  %v5823_v62 = vld [vmem:[#allocation8 + $0x74] sm:$0xf0]  ;;  %2493 = vmatpush.bf16.msrb.mxu1 %v5066_v7  ;;  %v5055_v34 = vld [vmem:[#allocation8 + $0x68] sm:$0xf0]  ;;  %v5812_v9 = vld [vmem:[#allocation8 + $0x24] sm:$0xf] }
 0x3bb   :  { %v2241_v19 = vsel %vm2238_vm3, %v2240_v37, %v2236_v55  ;;  %v2251_v17 = vsel %vm2250_vm6, %v6535_v36, %v2247_v29  ;;  %v5062_v22 = vor.u32 %v5823_v62, %v5061_v35  ;;  %v5819_v18 = vld [vmem:[#allocation8 + $0x54] sm:$0xf0]  ;;  %v5816_v55 = vld [vmem:[#allocation8 + $0x44] sm:$0xf]  ;;  %v5814_v29 = vld [vmem:[#allocation8 + $0x34] sm:$0xf] }
 0x3bc   :  { %v2256_v43 = vsel %vm2253_vm7, %v2255_v10, %v2251_v17  ;;  %v2266_v13 = vsel %vm2265_vm10, %v6537_v56, %v2262_v16  ;;  %v5042_v37 = vor.u32 %v5816_v55, %v5039_v23  ;;  %v5021_v17 = vld [vmem:[#allocation8 + $0x20] sm:$0xf]  ;;  %v5007_v54 = vld [vmem:[#allocation8 + $0x8] sm:$0xf0] }
 0x3bd   :  { %v2271_v5 = vsel %vm2268_vm11, %v2270_v49, %v2266_v13  ;;  %2474 = vmatpush.bf16.msrb.mxu0 %v5062_v22  ;;  %v5005_v7 = vld [vmem:[#allocation8] sm:$0xf] }
 0x3c1   :  { %2475 = vmatpush.bf16.msrb.mxu0 %v5054_v32 }
 0x429   :  { %v2179_v0 = vpop.f32.mrf.mxu2 }
 0x42a   :  { %v2198_v20 = vpop.f32.mrf.mxu3 }
 0x42b   :  { %v2199_v26 = vadd.f32 %v2198_v20, %v2179_v0  ;;  %v5820_v0 = vld [vmem:[#allocation8 + $0x64] sm:$0xf]  ;;  %v5045_v20 = vld [vmem:[#allocation8 + $0x50] sm:$0xf] }
 0x42c   :  { %v5058_v51 = vor.u32 %v5820_v0, %v5055_v34 }
 0x42d   :  { %v2273_v58 = vmul.f32 %v2226_v39, %v2199_v26  ;;  %v5818_v26 = vld [vmem:[#allocation8 + $0x54] sm:$0xf]  ;;  %v5047_v39 = vld [vmem:[#allocation8 + $0x58] sm:$0xf0] }
 0x42e   :  { %2494 = vmatpush.bf16.msrb.mxu1 %v5058_v51 }
 0x42f   :  { %v8152_v27 = vadd.f32 %v2273_v58, %v1952_v59  ;;  %v5050_v58 = vor.u32 %v5818_v26, %v5047_v39 }
 0x431   :  { %v2181_v38 = vpop.f32.mrf.mxu2  ;;  %v2300_v3 = vand.u32 2147483647, %v8152_v27 }
 0x432   :  { %v2200_v48 = vpop.f32.mrf.mxu3  ;;  %2495 = vmatpush.bf16.msrb.mxu1 %v5050_v58 }
 0x433   :  { %v2201_v2 = vadd.f32 %v2200_v48, %v2181_v38  ;;  %2304 = vmax.xlane.f32.xlu0 %v2300_v3  ;;  %v5817_v38 = vld [vmem:[#allocation8 + $0x44] sm:$0xf0] }
 0x434   :  { %v5038_v48 = vor.u32 %v5817_v38, %v5037_v41 }
 0x435   :  { %v2274_v1 = vmul.f32 %v2241_v19, %v2201_v2  ;;  %v5029_v2 = vld [vmem:[#allocation8 + $0x30] sm:$0xf]  ;;  %v5815_v19 = vld [vmem:[#allocation8 + $0x34] sm:$0xf0] }
 0x436   :  { %2496 = vmatpush.bf16.msrb.mxu1 %v5042_v37  ;;  %v5030_v61 = vor.u32 %v5815_v19, %v5029_v2 }
 0x437   :  { %v8159_v44 = vadd.f32 %v2274_v1, %v1952_v59 }
 0x439   :  { %v2184_v14 = vpop.f32.mrf.mxu2  ;;  %v2301_v12 = vand.u32 2147483647, %v8159_v44 }
 0x43a   :  { %v2203_v30 = vpop.f32.mrf.mxu3 }
 0x43b   :  { %v2204_v8 = vadd.f32 %v2203_v30, %v2184_v14  ;;  %2306 = vmax.xlane.f32.xlu1 %v2301_v12  ;;  %v5034_v14 = vor.u32 %v5814_v29, %v5031_v33  ;;  %v5813_v12 = vld [vmem:[#allocation8 + $0x24] sm:$0xf0]  ;;  %v5023_v30 = vld [vmem:[#allocation8 + $0x28] sm:$0xf0] }
 0x43c   :  { %v5022_v50 = vor.u32 %v5813_v12, %v5021_v17  ;;  %v5026_v13 = vor.u32 %v5812_v9, %v5023_v30 }
 0x43d   :  { %v2275_v31 = vmul.f32 %v2256_v43, %v2204_v8  ;;  %2497 = vmatpush.bf16.msrb.mxu1 %v5034_v14 }
 0x43f   :  { %v8165_v53 = vadd.f32 %v2275_v31, %v1952_v59 }
 0x441   :  { %v2186_v11 = vpop.f32.mrf.mxu2  ;;  %v2302_v28 = vand.u32 2147483647, %v8165_v53  ;;  %2498 = vmatpush.bf16.msrb.mxu1 %v5026_v13 }
 0x442   :  { %v2205_v46 = vpop.f32.mrf.mxu3 }
 0x443   :  { %v2206_v60 = vadd.f32 %v2205_v46, %v2186_v11  ;;  %2308 = vmax.xlane.f32.xlu2 %v2302_v28  ;;  %v5013_v28 = vld [vmem:[#allocation8 + $0x10] sm:$0xf]  ;;  %v5811_v46 = vld [vmem:[#allocation8 + $0x14] sm:$0xf0] }
 0x444   :  { %v5014_v15 = vor.u32 %v5811_v46, %v5013_v28 }
 0x445   :  { %v2276_v40 = vmul.f32 %v2271_v5, %v2206_v60  ;;  %v5810_v60 = vld [vmem:[#allocation8 + $0x14] sm:$0xf]  ;;  %v5015_v5 = vld [vmem:[#allocation8 + $0x18] sm:$0xf0] }
 0x447   :  { %v8168_v6 = vadd.f32 %v2276_v40, %v1952_v59  ;;  %v5046_v59 = vor.u32 %v5819_v18, %v5045_v20 }
 0x449   :  { %v2303_v4 = vand.u32 2147483647, %v8168_v6  ;;  %2476 = vmatpush.bf16.msrb.mxu0 %v5046_v59  ;;  %v5010_v59 = vor.u32 %v5808_v42, %v5007_v54 }
 0x44b   :  { %2310 = vmax.xlane.f32.xlu0 %v2303_v4 }
 0x44d   :  { %2477 = vmatpush.bf16.msrb.mxu0 %v5038_v48 }
 0x451   :  { %2478 = vmatpush.bf16.msrb.mxu0 %v5030_v61 }
 0x455   :  { %2479 = vmatpush.bf16.msrb.mxu0 %v5022_v50 }
 0x459   :  { %2480 = vmatpush.bf16.msrb.mxu0 %v5014_v15 }
 0x4a6   :  { %v2305_v24 = vpop.xlane.xlu0 %2304 }
 0x4a7   :  { %v2312_v36 = vmax.f32 %v2305_v24, 1e-05  ;;  %v5018_v24 = vor.u32 %v5810_v60, %v5015_v5 }
 0x4a9   :  { %6538 = vrcp.f32 %v2312_v36  ;;  %v2325_v3 = vand.u32 2147483647, %v2312_v36  ;;  %v2327_v1 = vand.u32 2147483648, %v2312_v36  ;;  %vm2321_vm13 = vweird.f32 %v2312_v36  ;;  %2499 = vmatpush.bf16.msrb.mxu1 %v5018_v24 }
 0x4ab   :  { %v2328_v31 = vor.u32 1.1754944e-38, %v2327_v1  ;;  %vm2326_vm15 = vcmp.eq.f32.partialorder %v2325_v3, 8.507059e+37 }
 0x4ad   :  { %2500 = vmatpush.bf16.msrb.mxu1 %v5010_v59  ;;  %v2512_v59 = vstv %s5002_s24 }
 0x4ae   :  { %v2307_v21 = vpop.xlane.xlu1 %2306 }
 0x4af   :  { %v6539_v25 = vpop.eup %6538  ;;  %v8171_v56 = vmax.f32 %v2307_v21, 1e-05 }
 0x4b0   :  { %v2317_v63 = vmul.f32 %v6539_v25, %v2312_v36  ;;  %vm2322_vm12 = vweird.f32 %v6539_v25  ;;  %v5809_v36 = vld [vmem:[#allocation8 + $0x4] sm:$0xf0] }
 0x4b1   :  { %6540 = vrcp.f32 %v8171_v56  ;;  %vm2323_vm14 = vmor %vm2321_vm13, %vm2322_vm12  ;;  %v2340_v35 = vand.u32 2147483647, %v8171_v56  ;;  %v2342_v62 = vand.u32 2147483648, %v8171_v56  ;;  %vm2336_vm1 = vweird.f32 %v8171_v56 }
 0x4b2   :  { %v2318_v45 = vsub.f32 1.0, %v2317_v63  ;;  %v5006_v18 = vor.u32 %v5809_v36, %v5005_v7 }
 0x4b3   :  { %v2343_v20 = vor.u32 1.1754944e-38, %v2342_v62  ;;  %vm2341_vm3 = vcmp.eq.f32.partialorder %v2340_v35, 8.507059e+37 }
 0x4b4   :  { %v2319_v57 = vmul.f32 %v6539_v25, %v2318_v45  ;;  %2481 = vmatpush.bf16.msrb.mxu0 %v5006_v18 }
 0x4b6   :  { %v2320_v10 = vadd.f32 %v6539_v25, %v2319_v57  ;;  %v2309_v8 = vpop.xlane.xlu2 %2308 }
 0x4b7   :  { %v6541_v43 = vpop.eup %6540  ;;  %v8174_v16 = vmax.f32 %v2309_v8, 1e-05 }
 0x4b8   :  { %v2324_v52 = vsel %vm2323_vm14, %v6539_v25, %v2320_v10  ;;  %v2332_v11 = vmul.f32 %v6541_v43, %v8171_v56  ;;  %vm2337_vm0 = vweird.f32 %v6541_v43 }
 0x4b9   :  { %v2329_v49 = vsel %vm2326_vm15, %v2328_v31, %v2324_v52  ;;  %6542 = vrcp.f32 %v8174_v16  ;;  %vm2338_vm2 = vmor %vm2336_vm1, %vm2337_vm0  ;;  %v2355_v63 = vand.u32 2147483647, %v8174_v16  ;;  %v2357_v41 = vand.u32 2147483648, %v8174_v16 }
 0x4ba   :  { %v8178_v40 = vmul.f32 127.0, %v2329_v49  ;;  %v2333_v4 = vsub.f32 1.0, %v2332_v11  ;;  %vm2351_vm5 = vweird.f32 %v8174_v16 }
 0x4bb   :  { %v2358_v19 = vor.u32 1.1754944e-38, %v2357_v41  ;;  %vm2356_vm7 = vcmp.eq.f32.partialorder %v2355_v63, 8.507059e+37 }
 0x4bc   :  { %v8184_v22 = vmul.f32 %v8178_v40, %v8152_v27  ;;  %v2334_v47 = vmul.f32 %v6541_v43, %v2333_v4 }
 0x4be   :  { %v2335_v0 = vadd.f32 %v6541_v43, %v2334_v47  ;;  %v2311_v34 = vpop.xlane.xlu0 %2310  ;;  %v6322_v32 = vcvt.f32.s32 %v8184_v22  ;;  %v6325_v23 = vand.u32 2147483648, %v8184_v22  ;;  %v6320_v48 = vand.u32 2147483647, %v8184_v22 }
 0x4bf   :  { %v6543_v51 = vpop.eup %6542  ;;  %v2315_v27 = vmax.f32 %v2311_v34, 1e-05 }
 0x4c0   :  { %v2339_v26 = vsel %vm2338_vm2, %v6541_v43, %v2335_v0  ;;  %v2347_v39 = vmul.f32 %v6543_v51, %v8174_v16  ;;  %v6323_v56 = vcvt.s32.f32 %v6322_v32  ;;  %vm2352_vm4 = vweird.f32 %v6543_v51 }
 0x4c1   :  { %v2344_v58 = vsel %vm2341_vm3, %v2343_v20, %v2339_v26  ;;  %6544 = vrcp.f32 %v2315_v27  ;;  %vm2353_vm6 = vmor %vm2351_vm5, %vm2352_vm4  ;;  %vm6321_vm8 = vcmp.lt.f32.partialorder %v6320_v48, 8388608.0  ;;  %v2372_v12 = vand.u32 2147483648, %v2315_v27 }
 0x4c2   :  { %v8189_v21 = vmul.f32 127.0, %v2344_v58  ;;  %v2348_v25 = vsub.f32 1.0, %v2347_v39  ;;  %v6324_v3 = vand.u32 2147483647, %v6323_v56  ;;  %v2370_v43 = vand.u32 2147483647, %v2315_v27 }
 0x4c3   :  { %vm2366_vm10 = vweird.f32 %v2315_v27  ;;  %v2373_v13 = vor.u32 1.1754944e-38, %v2372_v12  ;;  %v2513_v58 = vmul.f32 %v2512_v59, %v8178_v40 }
 0x4c4   :  { %v2377_v38 = vmul.f32 %v8189_v21, %v8159_v44  ;;  %v2349_v55 = vmul.f32 %v6543_v51, %v2348_v25  ;;  %v6326_v1 = vor.u32 %v6325_v23, %v6324_v3  ;;  %vm2371_vm13 = vcmp.eq.f32.partialorder %v2370_v43, 8.507059e+37 }
 0x4c5   :  { %6546 = vrcp.f32 %v2513_v58  ;;  %v2514_v25 = vmul.f32 %v2512_v59, %v8189_v21  ;;  %vm2522_vm1 = vweird.f32 %v2513_v58  ;;  %v2526_v21 = vand.u32 2147483647, %v2513_v58 }
 0x4c6   :  { %v2350_v45 = vadd.f32 %v6543_v51, %v2349_v55  ;;  %v6330_v37 = vcvt.f32.s32 %v2377_v38  ;;  %v6328_v14 = vand.u32 2147483647, %v2377_v38  ;;  %v6327_v9 = vsel %vm6321_vm8, %v6326_v1, %v8184_v22 }
 0x4c7   :  { %v6545_v2 = vpop.eup %6544  ;;  %v6333_v10 = vand.u32 2147483648, %v2377_v38  ;;  %v2384_v52 = vmax.f32 %v6327_v9, -128.0  ;;  %6548 = vrcp.f32 %v2514_v25  ;;  %vm2527_vm3 = vcmp.eq.f32.partialorder %v2526_v21, 8.507059e+37 }
 0x4c8   :  { %v2354_v29 = vsel %vm2353_vm6, %v6543_v51, %v2350_v45  ;;  %v2362_v44 = vmul.f32 %v6545_v2, %v2315_v27  ;;  %v6331_v33 = vcvt.s32.f32 %v6330_v37  ;;  %vm2367_vm9 = vweird.f32 %v6545_v2 }
 0x4c9   :  { %v2359_v57 = vsel %vm2356_vm7, %v2358_v19, %v2354_v29  ;;  %vm6329_vm11 = vcmp.lt.f32.partialorder %v6328_v14, 8388608.0  ;;  %vm2368_vm12 = vmor %vm2366_vm10, %vm2367_vm9  ;;  %v2388_v4 = vmin.f32 %v2384_v52, 127.0  ;;  %v5001_v19 = vld [vmem:[%s8956_s2 + $0x3] ss:$8 sm:$0x3]  ;;  %vm2537_vm5 = vweird.f32 %v2514_v25 }
 0x4ca   :  { %v2363_v61 = vsub.f32 1.0, %v2362_v44  ;;  %v2360_v17 = vmul.f32 127.0, %v2359_v57  ;;  %v6332_v30 = vand.u32 2147483647, %v6331_v33  ;;  %v8216_v57 = vperm.slane %v5001_v19, 0 }
 0x4cb   :  { %v6547_v56 = vpop.eup %6546  ;;  %v2541_v52 = vand.u32 2147483647, %v2514_v25 }
 0x4cc   :  { %v2364_v8 = vmul.f32 %v6545_v2, %v2363_v61  ;;  %v2378_v31 = vmul.f32 %v2360_v17, %v8165_v53  ;;  %v6334_v16 = vor.u32 %v6333_v10, %v6332_v30  ;;  %v2518_v63 = vmul.f32 %v6547_v56, %v2513_v58 }
 0x4cd   :  { %v8203_v41 = vmul.f32 %v2512_v59, %v2360_v17  ;;  %v6549_v55 = vpop.eup %6548  ;;  %vm2523_vm0 = vweird.f32 %v6547_v56  ;;  %v8218_v61 = vperm.slane %v5001_v19, 1  ;;  %vm2542_vm7 = vcmp.eq.f32.partialorder %v2541_v52, 8.507059e+37 }
 0x4ce   :  { %v2365_v50 = vadd.f32 %v6545_v2, %v2364_v8  ;;  %v6338_v11 = vcvt.f32.s32 %v2378_v31  ;;  %v6335_v28 = vsel %vm6329_vm11, %v6334_v16, %v2377_v38  ;;  %v6341_v47 = vand.u32 2147483648, %v2378_v31  ;;  %vm2524_vm2 = vmor %vm2522_vm1, %vm2523_vm0 }
 0x4cf   :  { %v2385_v49 = vmax.f32 %v6335_v28, -128.0  ;;  %v6336_v24 = vand.u32 2147483647, %v2378_v31  ;;  %v2519_v38 = vsub.f32 1.0, %v2518_v63  ;;  %6550 = vrcp.f32 %v8203_v41 }
 0x4d0   :  { %v2369_v46 = vsel %vm2368_vm12, %v6545_v2, %v2365_v50  ;;  %v6339_v60 = vcvt.s32.f32 %v6338_v11  ;;  %v2533_v23 = vmul.f32 %v6549_v55, %v2514_v25  ;;  %v2528_v2 = vand.u32 2147483648, %v2513_v58 }
 0x4d1   :  { %v2374_v5 = vsel %vm2371_vm13, %v2373_v13, %v2369_v46  ;;  %v2389_v35 = vmin.f32 %v2385_v49, 127.0  ;;  %vm6337_vm14 = vcmp.lt.f32.partialorder %v6336_v24, 8388608.0  ;;  %v2520_v3 = vmul.f32 %v6547_v56, %v2519_v38 }
 0x4d2   :  { %v2375_v62 = vmul.f32 127.0, %v2374_v5  ;;  %v6340_v15 = vand.u32 2147483647, %v6339_v60  ;;  %v2534_v40 = vsub.f32 1.0, %v2533_v23  ;;  %v2529_v33 = vor.u32 1.1754944e-38, %v2528_v2 }
 0x4d3   :  { %v2392_v22 = vpack.c.bf16 %v2389_v35, %v2388_v4  ;;  %v2521_v37 = vadd.f32 %v6547_v56, %v2520_v3  ;;  %vm2538_vm4 = vweird.f32 %v6549_v55  ;;  %vm2552_vm9 = vweird.f32 %v8203_v41 }
 0x4d4   :  { %v2379_v53 = vmul.f32 %v2375_v62, %v8168_v6  ;;  %v6342_v7 = vor.u32 %v6341_v47, %v6340_v15  ;;  %v8206_v45 = vmul.f32 %v2512_v59, %v2375_v62  ;;  %v2535_v44 = vmul.f32 %v6549_v55, %v2534_v40  ;;  %vm2539_vm6 = vmor %vm2537_vm5, %vm2538_vm4 }
 0x4d5   :  { %2482 = vmatmul.bf16.vlgmr.msrb.gmra.mxu0 %v2392_v22  ;;  %2501 = vmatmul.bf16.vlgmr.msrb.gmra.mxu1 %v2392_v22  ;;  %v8208_v48 = vpop.eup %6550  ;;  %v2525_v29 = vsel %vm2524_vm2, %v6547_v56, %v2521_v37 }
 0x4d6   :  { %v6346_v36 = vcvt.f32.s32 %v2379_v53  ;;  %v6344_v54 = vand.u32 2147483647, %v2379_v53  ;;  %v6343_v0 = vsel %vm6337_vm14, %v6342_v7, %v2378_v31  ;;  %v6349_v32 = vand.u32 2147483648, %v2379_v53 }
 0x4d7   :  { %v2386_v20 = vmax.f32 %v6343_v0, -128.0  ;;  %6552 = vrcp.f32 %v8206_v45  ;;  %v2548_v1 = vmul.f32 %v8208_v48, %v8203_v41  ;;  %v2530_v17 = vsel %vm2527_vm3, %v2529_v33, %v2525_v29 }
 0x4d8   :  { %v6347_v42 = vcvt.s32.f32 %v6346_v36  ;;  %vm6345_vm15 = vcmp.lt.f32.partialorder %v6344_v54, 8388608.0  ;;  %v2536_v8 = vadd.f32 %v6549_v55, %v2535_v44  ;;  %v2543_v31 = vand.u32 2147483648, %v2514_v25 }
 0x4d9   :  { %v2390_v26 = vmin.f32 %v2386_v20, 127.0  ;;  %v2549_v9 = vsub.f32 1.0, %v2548_v1  ;;  %vm2553_vm8 = vweird.f32 %v8208_v48  ;;  %v2558_v36 = vand.u32 2147483648, %v8203_v41 }
 0x4da   :  { %v6348_v34 = vand.u32 2147483647, %v6347_v42  ;;  %v2540_v46 = vsel %vm2539_vm6, %v6549_v55, %v2536_v8  ;;  %v2544_v60 = vor.u32 1.1754944e-38, %v2543_v31  ;;  %v2556_v0 = vand.u32 2147483647, %v8203_v41  ;;  %vm2554_vm10 = vmor %vm2552_vm9, %vm2553_vm8 }
 0x4db   :  { %v2550_v11 = vmul.f32 %v8208_v48, %v2549_v9  ;;  %v2573_v41 = vand.u32 2147483648, %v8206_v45  ;;  %vm2567_vm13 = vweird.f32 %v8206_v45  ;;  %v2571_v3 = vand.u32 2147483647, %v8206_v45  ;;  %v5839_v31 = vld [vmem:[#allocation9 + $0x74] sm:$0xf0] }
 0x4dc   :  { %v6350_v51 = vor.u32 %v6349_v32, %v6348_v34  ;;  %v2545_v62 = vsel %vm2542_vm7, %v2544_v60, %v2540_v46  ;;  %vm2557_vm11 = vcmp.eq.f32.partialorder %v2556_v0, 8.507059e+37  ;;  %v5129_v46 = vld [vmem:[#allocation9 + $0x78] sm:$0xf0]  ;;  %v5853_v0 = vld [vmem:[#allocation9 + $0xe4] sm:$0xf0] }
 0x4dd   :  { %v8220_v43 = vpop.eup %6552  ;;  %v2551_v22 = vadd.f32 %v8208_v48, %v2550_v11  ;;  %v2574_v40 = vor.u32 1.1754944e-38, %v2573_v41  ;;  %v5855_v11 = vld [vmem:[#allocation9 + $0xf4] sm:$0xf0] }
 0x4de   :  { %v6351_v27 = vsel %vm6345_vm15, %v6350_v51, %v2379_v53  ;;  %v2563_v49 = vmul.f32 %v8220_v43, %v8206_v45  ;;  %vm2568_vm12 = vweird.f32 %v8220_v43  ;;  %vm2572_vm15 = vcmp.eq.f32.partialorder %v2571_v3, 8.507059e+37  ;;  %v5851_v41 = vld [vmem:[#allocation9 + $0xd4] sm:$0xf0]  ;;  %v5834_v3 = vld [vmem:[#allocation9 + $0x54] sm:$0xf] }
 0x4df   :  { %v2387_v18 = vmax.f32 %v6351_v27, -128.0  ;;  %v2555_v51 = vsel %vm2554_vm10, %v8208_v48, %v2551_v22  ;;  %v2559_v27 = vor.u32 1.1754944e-38, %v2558_v36  ;;  %vm2569_vm14 = vmor %vm2567_vm13, %vm2568_vm12 }
 0x4e0   :  { %v2564_v7 = vsub.f32 1.0, %v2563_v49 }
 0x4e1   :  { %v2391_v39 = vmin.f32 %v2387_v18, 127.0 }
 0x4e2   :  { %v2565_v20 = vmul.f32 %v8220_v43, %v2564_v7 }
 0x4e3   :  { %v2393_v6 = vpack.c.bf16 %v2391_v39, %v2390_v26 }
 0x4e4   :  { %v2566_v63 = vadd.f32 %v8220_v43, %v2565_v20 }
 0x4e5   :  { %2487 = vmatmul.bf16.gmra.mxu0 %v2393_v6  ;;  %2506 = vmatmul.bf16.gmra.mxu1 %v2393_v6  ;;  %v2560_v6 = vsel %vm2557_vm11, %v2559_v27, %v2555_v51  ;;  %v5836_v51 = vld [vmem:[#allocation9 + $0x64] sm:$0xf]  ;;  %v5121_v27 = vld [vmem:[#allocation9 + $0x68] sm:$0xf0] }
 0x4e6   :  { %v2570_v37 = vsel %vm2569_vm14, %v8220_v43, %v2566_v63  ;;  %v5127_v43 = vld [vmem:[#allocation9 + $0x70] sm:$0xf] }
 0x4e7   :  { %v2575_v1 = vsel %vm2572_vm15, %v2574_v40, %v2570_v37  ;;  %v5128_v52 = vor.u32 %v5839_v31, %v5127_v43  ;;  %v5113_v37 = vld [vmem:[#allocation9 + $0x58] sm:$0xf0]  ;;  %v5833_v43 = vld [vmem:[#allocation9 + $0x44] sm:$0xf0] }
 0x4e9   :  { %2921 = vmatpush.bf16.msrb.mxu2 %v5128_v52 }
 0x552   :  { %v2483_v14 = vpop.f32.mrf.mxu0  ;;  %v2502_v12 = vpop.f32.mrf.mxu1 }
 0x553   :  { %v2577_v30 = vmul.f32 %v2530_v17, %v2483_v14  ;;  %v2578_v10 = vmul.f32 %v2530_v17, %v2502_v12 }
 0x555   :  { %v8223_v16 = vadd.f32 %v8216_v57, %v2577_v30  ;;  %v8226_v50 = vadd.f32 %v8218_v61, %v2578_v10 }
 0x557   :  { %v2598_v13 = vmax.f32 %v8223_v16, 0.0  ;;  %v2599_v28 = vmax.f32 %v8226_v50, 0.0  ;;  %v5824_v50 = vld [vmem:[#allocation9 + $0x4] sm:$0xf] }
 0x559   :  { %v2641_v5 = vand.u32 2147483647, %v2598_v13  ;;  %v2642_v4 = vand.u32 2147483647, %v2599_v28 }
 0x55a   :  { %v2485_v35 = vpop.f32.mrf.mxu0  ;;  %v2504_v15 = vpop.f32.mrf.mxu1 }
 0x55b   :  { %v2579_v53 = vmul.f32 %v2545_v62, %v2485_v35  ;;  %v2580_v47 = vmul.f32 %v2545_v62, %v2504_v15  ;;  %v2649_v24 = vmax.f32 %v2641_v5, %v2642_v4  ;;  %v5854_v5 = vld [vmem:[#allocation9 + $0xf4] sm:$0xf]  ;;  %v5193_v4 = vld [vmem:[#allocation9 + $0xf8] sm:$0xf0] }
 0x55c   :  { %v5196_v35 = vor.u32 %v5854_v5, %v5193_v4  ;;  %v5105_v5 = vld [vmem:[#allocation9 + $0x48] sm:$0xf0]  ;;  %v5848_v4 = vld [vmem:[#allocation9 + $0xc4] sm:$0xf] }
 0x55d   :  { %v8241_v42 = vadd.f32 %v8216_v57, %v2579_v53  ;;  %v8244_v54 = vadd.f32 %v8218_v61, %v2580_v47  ;;  %2650 = vmax.xlane.f32.xlu1 %v2649_v24  ;;  %v5119_v53 = vld [vmem:[#allocation9 + $0x60] sm:$0xf]  ;;  %v5837_v47 = vld [vmem:[#allocation9 + $0x64] sm:$0xf0] }
 0x55e   :  { %2978 = vmatpush.bf16.msra.mxu1 %v5196_v35  ;;  %v5183_v24 = vld [vmem:[#allocation9 + $0xe0] sm:$0xf]  ;;  %v5120_v36 = vor.u32 %v5837_v47, %v5119_v53  ;;  %v5831_v53 = vld [vmem:[#allocation9 + $0x34] sm:$0xf0] }
 0x55f   :  { %v2600_v34 = vmax.f32 %v8241_v42, 0.0  ;;  %v2601_v32 = vmax.f32 %v8244_v54, 0.0  ;;  %v5184_v20 = vor.u32 %v5853_v0, %v5183_v24  ;;  %v5159_v0 = vld [vmem:[#allocation9 + $0xb0] sm:$0xf] }
 0x560   :  { %2922 = vmatpush.bf16.msrb.mxu2 %v5120_v36 }
 0x561   :  { %v2643_v18 = vand.u32 2147483647, %v2600_v34  ;;  %v2644_v26 = vand.u32 2147483647, %v2601_v32 }
 0x562   :  { %v2488_v39 = vpop.f32.mrf.mxu0  ;;  %v2507_v59 = vpop.f32.mrf.mxu1 }
 0x563   :  { %v2581_v58 = vmul.f32 %v2560_v6, %v2488_v39  ;;  %v2582_v25 = vmul.f32 %v2560_v6, %v2507_v59  ;;  %v2652_v56 = vmax.f32 %v2643_v18, %v2644_v26  ;;  %v5852_v18 = vld [vmem:[#allocation9 + $0xe4] sm:$0xf]  ;;  %v5185_v26 = vld [vmem:[#allocation9 + $0xe8] sm:$0xf0]  ;;  %v5124_v39 = vor.u32 %v5836_v51, %v5121_v27  ;;  %v5111_v59 = vld [vmem:[#allocation9 + $0x50] sm:$0xf] }
 0x564   :  { %v5188_v6 = vor.u32 %v5852_v18, %v5185_v26  ;;  %v5847_v51 = vld [vmem:[#allocation9 + $0xb4] sm:$0xf0] }
 0x565   :  { %v8260_v38 = vadd.f32 %v8216_v57, %v2581_v58  ;;  %v8263_v55 = vadd.f32 %v8218_v61, %v2582_v25  ;;  %2653 = vmax.xlane.f32.xlu2 %v2652_v56  ;;  %v5835_v58 = vld [vmem:[#allocation9 + $0x54] sm:$0xf0]  ;;  %v5175_v25 = vld [vmem:[#allocation9 + $0xd0] sm:$0xf]  ;;  %v5160_v26 = vor.u32 %v5847_v51, %v5159_v0 }
 0x566   :  { %v5112_v63 = vor.u32 %v5835_v58, %v5111_v59  ;;  %2979 = vmatpush.bf16.msra.mxu1 %v5188_v6  ;;  %v5846_v6 = vld [vmem:[#allocation9 + $0xb4] sm:$0xf] }
 0x567   :  { %v2602_v23 = vmax.f32 %v8260_v38, 0.0  ;;  %v2603_v48 = vmax.f32 %v8263_v55, 0.0 }
 0x568   :  { %2923 = vmatpush.bf16.msrb.mxu2 %v5112_v63  ;;  %v5829_v63 = vld [vmem:[#allocation9 + $0x24] sm:$0xf0] }
 0x569   :  { %v2645_v2 = vand.u32 2147483647, %v2602_v23  ;;  %v2646_v21 = vand.u32 2147483647, %v2603_v48 }
 0x56a   :  { %v2490_v19 = vpop.f32.mrf.mxu0  ;;  %v2509_v29 = vpop.f32.mrf.mxu1 }
 0x56b   :  { %v2583_v44 = vmul.f32 %v2575_v1, %v2490_v19  ;;  %v2584_v45 = vmul.f32 %v2575_v1, %v2509_v29  ;;  %v2655_v33 = vmax.f32 %v2645_v2, %v2646_v21  ;;  %v5176_v21 = vor.u32 %v5851_v41, %v5175_v25  ;;  %v5850_v1 = vld [vmem:[#allocation9 + $0xd4] sm:$0xf]  ;;  %v5177_v29 = vld [vmem:[#allocation9 + $0xd8] sm:$0xf0] }
 0x56c   :  { %v5116_v19 = vor.u32 %v5834_v3, %v5113_v37  ;;  %v5161_v25 = vld [vmem:[#allocation9 + $0xb8] sm:$0xf0]  ;;  %v5151_v3 = vld [vmem:[#allocation9 + $0xa0] sm:$0xf]  ;;  %v5845_v37 = vld [vmem:[#allocation9 + $0xa4] sm:$0xf0] }
 0x56d   :  { %v8275_v14 = vadd.f32 %v8216_v57, %v2583_v44  ;;  %v8278_v17 = vadd.f32 %v8218_v61, %v2584_v45  ;;  %2656 = vmax.xlane.f32.xlu0 %v2655_v33  ;;  %v5191_v57 = vld [vmem:[#allocation9 + $0xf0] sm:$0xf]  ;;  %v5838_v61 = vld [vmem:[#allocation9 + $0x74] sm:$0xf]  ;;  %v5180_v45 = vor.u32 %v5850_v1, %v5177_v29  ;;  %v5828_v1 = vld [vmem:[#allocation9 + $0x24] sm:$0xf] }
 0x56e   :  { %v5192_v49 = vor.u32 %v5855_v11, %v5191_v57  ;;  %v5132_v60 = vor.u32 %v5838_v61, %v5129_v46  ;;  %v5167_v11 = vld [vmem:[#allocation9 + $0xc0] sm:$0xf]  ;;  %v5849_v61 = vld [vmem:[#allocation9 + $0xc4] sm:$0xf0] }
 0x56f   :  { %v2604_v12 = vmax.f32 %v8275_v14, 0.0  ;;  %v2605_v9 = vmax.f32 %v8278_v17, 0.0  ;;  %2980 = vmatpush.bf16.msra.mxu1 %v5180_v45 }
 0x570   :  { %2940 = vmatpush.bf16.msrb.mxu3 %v5192_v49  ;;  %2959 = vmatpush.bf16.msra.mxu0 %v5132_v60  ;;  %v5168_v49 = vor.u32 %v5849_v61, %v5167_v11  ;;  %v5832_v60 = vld [vmem:[#allocation9 + $0x44] sm:$0xf]  ;;  %v5153_v11 = vld [vmem:[#allocation9 + $0xa8] sm:$0xf0]  ;;  %v5079_v61 = vld [vmem:[#allocation9 + $0x10] sm:$0xf] }
 0x571   :  { %v2647_v30 = vand.u32 2147483647, %v2604_v12  ;;  %v2648_v10 = vand.u32 2147483647, %v2605_v9  ;;  %v5108_v35 = vor.u32 %v5832_v60, %v5105_v5 }
 0x573   :  { %v2658_v8 = vmax.f32 %v2647_v30, %v2648_v10  ;;  %v5089_v10 = vld [vmem:[#allocation9 + $0x28] sm:$0xf0] }
 0x574   :  { %2941 = vmatpush.bf16.msrb.mxu3 %v5184_v20  ;;  %2960 = vmatpush.bf16.msra.mxu0 %v5124_v39  ;;  %v5830_v20 = vld [vmem:[#allocation9 + $0x34] sm:$0xf]  ;;  %v5097_v39 = vld [vmem:[#allocation9 + $0x38] sm:$0xf0] }
 0x575   :  { %2659 = vmax.xlane.f32.xlu1 %v2658_v8  ;;  %v5103_v8 = vld [vmem:[#allocation9 + $0x40] sm:$0xf]  ;;  %v5100_v58 = vor.u32 %v5830_v20, %v5097_v39 }
 0x576   :  { %v5104_v52 = vor.u32 %v5833_v43, %v5103_v8  ;;  %v5844_v8 = vld [vmem:[#allocation9 + $0xa4] sm:$0xf]  ;;  %v5135_v39 = vld [vmem:[#allocation9 + $0x80] sm:$0xf] }
 0x578   :  { %2942 = vmatpush.bf16.msrb.mxu3 %v5176_v21  ;;  %2961 = vmatpush.bf16.msra.mxu0 %v5116_v19 }
 0x579   :  { %2924 = vmatpush.bf16.msrb.mxu2 %v5104_v52  ;;  %v5092_v52 = vor.u32 %v5828_v1, %v5089_v10 }
 0x57c   :  { %2943 = vmatpush.bf16.msrb.mxu3 %v5168_v49  ;;  %2962 = vmatpush.bf16.msra.mxu0 %v5108_v35  ;;  %v5143_v49 = vld [vmem:[#allocation9 + $0x90] sm:$0xf] }
 0x580   :  { %2944 = vmatpush.bf16.msrb.mxu3 %v5160_v26  ;;  %2963 = vmatpush.bf16.msra.mxu0 %v5100_v58  ;;  %v5825_v26 = vld [vmem:[#allocation9 + $0x4] sm:$0xf0] }
 0x584   :  { %2964 = vmatpush.bf16.msra.mxu0 %v5092_v52 }
 0x5d0   :  { %v2651_v62 = vpop.xlane.xlu1 %2650 }
 0x5d1   :  { %v8286_v15 = vmax.f32 %v2651_v62, 1e-05  ;;  %v5169_v62 = vld [vmem:[#allocation9 + $0xc8] sm:$0xf0] }
 0x5d3   :  { %6554 = vrcp.f32 %v8286_v15  ;;  %v2674_v22 = vand.u32 2147483647, %v8286_v15  ;;  %v2676_v7 = vand.u32 2147483648, %v8286_v15  ;;  %vm2670_vm2 = vweird.f32 %v8286_v15 }
 0x5d5   :  { %vm8296_vm0 = vcmp.eq.f32.partialorder %v2674_v22, 8.507059e+37  ;;  %v2677_v31 = vor.u32 1.1754944e-38, %v2676_v7  ;;  %v5095_v22 = vld [vmem:[#allocation9 + $0x30] sm:$0xf]  ;;  %v5172_v7 = vor.u32 %v5848_v4, %v5169_v62 }
 0x5d6   :  { %v5096_v36 = vor.u32 %v5831_v53, %v5095_v22  ;;  %v5826_v22 = vld [vmem:[#allocation9 + $0x14] sm:$0xf]  ;;  %v5081_v53 = vld [vmem:[#allocation9 + $0x18] sm:$0xf0] }
 0x5d7   :  { %2981 = vmatpush.bf16.msra.mxu1 %v5172_v7  ;;  %v5145_v7 = vld [vmem:[#allocation9 + $0x98] sm:$0xf0] }
 0x5d8   :  { %v2654_v56 = vpop.xlane.xlu2 %2653  ;;  %2925 = vmatpush.bf16.msrb.mxu2 %v5096_v36  ;;  %v5071_v36 = vld [vmem:[#allocation9] sm:$0xf] }
 0x5d9   :  { %v6555_v40 = vpop.eup %6554  ;;  %v8291_v2 = vmax.f32 %v2654_v56, 1e-05  ;;  %v5087_v56 = vld [vmem:[#allocation9 + $0x20] sm:$0xf] }
 0x5da   :  { %v2666_v44 = vmul.f32 %v6555_v40, %v8286_v15  ;;  %vm2671_vm1 = vweird.f32 %v6555_v40  ;;  %v5088_v45 = vor.u32 %v5829_v63, %v5087_v56  ;;  %v5072_v63 = vor.u32 %v5825_v26, %v5071_v36 }
 0x5db   :  { %6556 = vrcp.f32 %v8291_v2  ;;  %v2689_v33 = vand.u32 2147483647, %v8291_v2  ;;  %v2691_v57 = vand.u32 2147483648, %v8291_v2  ;;  %vm2672_vm3 = vmor %vm2670_vm2, %vm2671_vm1  ;;  %vm2685_vm6 = vweird.f32 %v8291_v2 }
 0x5dc   :  { %v2667_v30 = vsub.f32 1.0, %v2666_v44  ;;  %2926 = vmatpush.bf16.msrb.mxu2 %v5088_v45 }
 0x5dd   :  { %vm8314_vm4 = vcmp.eq.f32.partialorder %v2689_v33, 8.507059e+37  ;;  %v2692_v44 = vor.u32 1.1754944e-38, %v2691_v57  ;;  %v5156_v33 = vor.u32 %v5844_v8, %v5153_v11  ;;  %v5843_v57 = vld [vmem:[#allocation9 + $0x94] sm:$0xf0] }
 0x5de   :  { %v2668_v46 = vmul.f32 %v6555_v40, %v2667_v30  ;;  %v5152_v30 = vor.u32 %v5845_v37, %v5151_v3  ;;  %v5144_v62 = vor.u32 %v5843_v57, %v5143_v49 }
 0x5e0   :  { %v2669_v47 = vadd.f32 %v6555_v40, %v2668_v46  ;;  %v2657_v24 = vpop.xlane.xlu0 %2656  ;;  %v5827_v46 = vld [vmem:[#allocation9 + $0x14] sm:$0xf0]  ;;  %2945 = vmatpush.bf16.msrb.mxu3 %v5152_v30 }
 0x5e1   :  { %v8302_v27 = vpop.eup %6556  ;;  %v8305_v18 = vmax.f32 %v2657_v24, 1e-05  ;;  %v5080_v35 = vor.u32 %v5827_v46, %v5079_v61 }
 0x5e2   :  { %v2673_v59 = vsel %vm2672_vm3, %v6555_v40, %v2669_v47  ;;  %v2681_v15 = vmul.f32 %v8302_v27, %v8291_v2  ;;  %v5164_v40 = vor.u32 %v5846_v6, %v5161_v25  ;;  %vm2686_vm5 = vweird.f32 %v8302_v27  ;;  %v5842_v47 = vld [vmem:[#allocation9 + $0x94] sm:$0xf]  ;;  %v5841_v6 = vld [vmem:[#allocation9 + $0x84] sm:$0xf0] }
 0x5e3   :  { %v2678_v41 = vsel %vm8296_vm0, %v2677_v31, %v2673_v59  ;;  %6558 = vrcp.f32 %v8305_v18  ;;  %v2704_v31 = vand.u32 2147483647, %v8305_v18  ;;  %vm2687_vm7 = vmor %vm2685_vm6, %vm2686_vm5  ;;  %v5148_v20 = vor.u32 %v5842_v47, %v5145_v7  ;;  %2927 = vmatpush.bf16.msrb.mxu2 %v5080_v35 }
 0x5e4   :  { %v8312_v21 = vmul.f32 127.0, %v2678_v41  ;;  %v2682_v19 = vsub.f32 1.0, %v2681_v15  ;;  %2982 = vmatpush.bf16.msra.mxu1 %v5164_v40  ;;  %v2706_v15 = vand.u32 2147483648, %v8305_v18  ;;  %2946 = vmatpush.bf16.msrb.mxu3 %v5144_v62  ;;  %v5840_v41 = vld [vmem:[#allocation9 + $0x84] sm:$0xf]  ;;  %v5136_v3 = vor.u32 %v5841_v6, %v5135_v39 }
 0x5e5   :  { %vm2700_vm9 = vweird.f32 %v8305_v18  ;;  %vm8358_vm10 = vcmp.eq.f32.partialorder %v2704_v31, 8.507059e+37 }
 0x5e6   :  { %v2683_v43 = vmul.f32 %v8302_v27, %v2682_v19  ;;  %v8324_v60 = vmul.f32 %v8312_v21, %v2598_v13  ;;  %v5084_v13 = vor.u32 %v5826_v22, %v5081_v53  ;;  %v8337_v2 = vmul.f32 %v8312_v21, %v2599_v28  ;;  %v5073_v28 = vld [vmem:[#allocation9 + $0x8] sm:$0xf0] }
 0x5e7   :  { %v5076_v37 = vor.u32 %v5824_v50, %v5073_v28  ;;  %v5137_v19 = vld [vmem:[#allocation9 + $0x88] sm:$0xf0]  ;;  %v2707_v10 = vor.u32 1.1754944e-38, %v2706_v15  ;;  %2928 = vmatpush.bf16.msrb.mxu2 %v5072_v63 }
 0x5e8   :  { %v2684_v5 = vadd.f32 %v8302_v27, %v2683_v43  ;;  %v2660_v4 = vpop.xlane.xlu1 %2659  ;;  %2983 = vmatpush.bf16.msra.mxu1 %v5156_v33  ;;  %2965 = vmatpush.bf16.msra.mxu0 %v5084_v13  ;;  %v6362_v40 = vcvt.f32.s32 %v8337_v2  ;;  %v5140_v29 = vor.u32 %v5840_v41, %v5137_v19  ;;  %v6352_v45 = vand.u32 2147483647, %v8324_v60 }
 0x5e9   :  { %v8328_v24 = vpop.eup %6558  ;;  %v8332_v16 = vmax.f32 %v2660_v4, 1e-05  ;;  %2947 = vmatpush.bf16.msrb.mxu3 %v5136_v3  ;;  %v6357_v31 = vand.u32 2147483648, %v8324_v60  ;;  %v6360_v54 = vand.u32 2147483647, %v8337_v2  ;;  %v6365_v47 = vand.u32 2147483648, %v8337_v2 }
 0x5ea   :  { %v2688_v0 = vsel %vm2687_vm7, %v8302_v27, %v2684_v5  ;;  %v2696_v51 = vmul.f32 %v8328_v24, %v8305_v18  ;;  %v6354_v27 = vcvt.f32.s32 %v8324_v60  ;;  %vm2701_vm8 = vweird.f32 %v8328_v24 }
 0x5eb   :  { %v2693_v59 = vsel %vm8314_vm4, %v2692_v44, %v2688_v0  ;;  %6560 = vrcp.f32 %v8332_v16  ;;  %v2721_v56 = vand.u32 2147483648, %v8332_v16  ;;  %vm2715_vm11 = vweird.f32 %v8332_v16  ;;  %vm2702_vm12 = vmor %vm2700_vm9, %vm2701_vm8 }
 0x5ec   :  { %v8347_v58 = vmul.f32 127.0, %v2693_v59  ;;  %v2697_v25 = vsub.f32 1.0, %v2696_v51  ;;  %2984 = vmatpush.bf16.msra.mxu1 %v5148_v20  ;;  %v6355_v8 = vcvt.s32.f32 %v6354_v27  ;;  %v2719_v52 = vand.u32 2147483647, %v8332_v16  ;;  %2966 = vmatpush.bf16.msra.mxu0 %v5076_v37 }
 0x5ed   :  { %v2722_v42 = vor.u32 1.1754944e-38, %v2721_v56  ;;  %v6363_v33 = vcvt.s32.f32 %v6362_v40  ;;  %vm8373_vm13 = vcmp.lt.f32.partialorder %v6352_v45, 8388608.0  ;;  %vm8389_vm0 = vcmp.lt.f32.partialorder %v6360_v54, 8388608.0 }
 0x5ee   :  { %v2698_v1 = vmul.f32 %v8328_v24, %v2697_v25  ;;  %v2727_v44 = vmul.f32 %v8347_v58, %v2600_v34  ;;  %v6356_v18 = vand.u32 2147483647, %v6355_v8  ;;  %v2728_v61 = vmul.f32 %v8347_v58, %v2601_v32 }
 0x5ef   :  { %v6364_v53 = vand.u32 2147483647, %v6363_v33  ;;  %vm2720_vm2 = vcmp.eq.f32.partialorder %v2719_v52, 8.507059e+37 }
 0x5f0   :  { %v2699_v43 = vadd.f32 %v8328_v24, %v2698_v1  ;;  %v6370_v34 = vcvt.f32.s32 %v2727_v44  ;;  %2985 = vmatpush.bf16.msra.mxu1 %v5140_v29  ;;  %v6368_v5 = vand.u32 2147483647, %v2727_v44  ;;  %v6358_v35 = vor.u32 %v6357_v31, %v6356_v18 }
 0x5f1   :  { %v6561_v11 = vpop.eup %6560  ;;  %v6373_v7 = vand.u32 2147483648, %v2727_v44  ;;  %v6378_v36 = vcvt.f32.s32 %v2728_v61  ;;  %v6366_v51 = vor.u32 %v6365_v47, %v6364_v53  ;;  %v6376_v20 = vand.u32 2147483647, %v2728_v61 }
 0x5f2   :  { %v2703_v46 = vsel %vm2702_vm12, %v8328_v24, %v2699_v43  ;;  %v2711_v49 = vmul.f32 %v6561_v11, %v8332_v16  ;;  %v6371_v62 = vcvt.s32.f32 %v6370_v34  ;;  %v6359_v24 = vsel %vm8373_vm13, %v6358_v35, %v8324_v60 }
 0x5f3   :  { %v2708_v4 = vsel %vm8358_vm10, %v2707_v10, %v2703_v46  ;;  %vm2716_vm14 = vweird.f32 %v6561_v11  ;;  %v2741_v39 = vmax.f32 %v6359_v24, -128.0  ;;  %v6379_v6 = vcvt.s32.f32 %v6378_v36 }
 0x5f4   :  { %v8380_v22 = vmul.f32 127.0, %v2708_v4  ;;  %v2712_v32 = vsub.f32 1.0, %v2711_v49  ;;  %v6372_v13 = vand.u32 2147483647, %v6371_v62  ;;  %vm6369_vm15 = vcmp.lt.f32.partialorder %v6368_v5, 8388608.0  ;;  %vm2717_vm1 = vmor %vm2715_vm11, %vm2716_vm14 }
 0x5f5   :  { %v6381_v60 = vand.u32 2147483648, %v2728_v61  ;;  %v6367_v27 = vsel %vm8389_vm0, %v6366_v51, %v8337_v2  ;;  %v6380_v25 = vand.u32 2147483647, %v6379_v6  ;;  %v2749_v3 = vmin.f32 %v2741_v39, 127.0 }
 0x5f6   :  { %v2713_v0 = vmul.f32 %v6561_v11, %v2712_v32  ;;  %v6374_v26 = vor.u32 %v6373_v7, %v6372_v13  ;;  %v2729_v59 = vmul.f32 %v8380_v22, %v2602_v23  ;;  %v2730_v38 = vmul.f32 %v8380_v22, %v2603_v48 }
 0x5f7   :  { %vm6377_vm3 = vcmp.lt.f32.partialorder %v6376_v20, 8388608.0  ;;  %v6382_v37 = vor.u32 %v6381_v60, %v6380_v25  ;;  %v2742_v40 = vmax.f32 %v6367_v27, -128.0 }
 0x5f8   :  { %v2714_v15 = vadd.f32 %v6561_v11, %v2713_v0  ;;  %v6375_v28 = vsel %vm6369_vm15, %v6374_v26, %v2727_v44  ;;  %v6386_v63 = vcvt.f32.s32 %v2729_v59  ;;  %v6389_v2 = vand.u32 2147483648, %v2729_v59 }
 0x5f9   :  { %v2743_v56 = vmax.f32 %v6375_v28, -128.0  ;;  %v6383_v29 = vsel %vm6377_vm3, %v6382_v37, %v2728_v61  ;;  %v6394_v44 = vcvt.f32.s32 %v2730_v38  ;;  %v6384_v10 = vand.u32 2147483647, %v2729_v59 }
 0x5fa   :  { %v2718_v23 = vsel %vm2717_vm1, %v6561_v11, %v2714_v15  ;;  %v6387_v1 = vcvt.s32.f32 %v6386_v63  ;;  %v2744_v55 = vmax.f32 %v6383_v29, -128.0  ;;  %v2750_v52 = vmin.f32 %v2742_v40, 127.0 }
 0x5fb   :  { %v2723_v41 = vsel %vm2720_vm2, %v2722_v42, %v2718_v23  ;;  %v2751_v19 = vmin.f32 %v2743_v56, 127.0  ;;  %v6395_v43 = vcvt.s32.f32 %v6394_v44  ;;  %v6397_v31 = vand.u32 2147483648, %v2730_v38 }
 0x5fc   :  { %v8401_v16 = vmul.f32 127.0, %v2723_v41  ;;  %v6388_v30 = vand.u32 2147483647, %v6387_v1  ;;  %v2752_v42 = vmin.f32 %v2744_v55, 127.0  ;;  %v6392_v46 = vand.u32 2147483647, %v2730_v38 }
 0x5fd   :  { %v2757_v45 = vpack.c.bf16 %v2751_v19, %v2749_v3  ;;  %v6396_v18 = vand.u32 2147483647, %v6395_v43  ;;  %vm6385_vm4 = vcmp.lt.f32.partialorder %v6384_v10, 8388608.0  ;;  %v2997_v15 = vstv %s5068_s7 }
 0x5fe   :  { %v2731_v48 = vmul.f32 %v8401_v16, %v2604_v12  ;;  %v2732_v8 = vmul.f32 %v8401_v16, %v2605_v9  ;;  %v6390_v34 = vor.u32 %v6389_v2, %v6388_v30  ;;  %v2758_v33 = vpack.c.bf16 %v2752_v42, %v2750_v52 }
 0x5ff   :  { %2929 = vmatmul.bf16.vlgmr.msrb.gmra.mxu2 %v2757_v45  ;;  %2967 = vmatmul.bf16.vlgmr.msra.gmra.mxu0 %v2757_v45  ;;  %v6398_v49 = vor.u32 %v6397_v31, %v6396_v18  ;;  %vm6393_vm5 = vcmp.lt.f32.partialorder %v6392_v46, 8388608.0  ;;  %v2998_v50 = vmul.f32 %v2997_v15, %v8312_v21  ;;  %v2999_v60 = vmul.f32 %v2997_v15, %v8347_v58 }
 0x600   :  { %v6402_v11 = vcvt.f32.s32 %v2731_v48  ;;  %v6410_v61 = vcvt.f32.s32 %v2732_v8  ;;  %v6400_v12 = vand.u32 2147483647, %v2731_v48  ;;  %2948 = vmatmul.bf16.vlgmr.msrb.gmra.mxu3 %v2758_v33  ;;  %2986 = vmatmul.bf16.vlgmr.msra.gmra.mxu1 %v2758_v33  ;;  %v6391_v17 = vsel %vm6385_vm4, %v6390_v34, %v2729_v59 }
 0x601   :  { %v6405_v5 = vand.u32 2147483648, %v2731_v48  ;;  %v6408_v4 = vand.u32 2147483647, %v2732_v8  ;;  %v6413_v62 = vand.u32 2147483648, %v2732_v8  ;;  %v2745_v32 = vmax.f32 %v6391_v17, -128.0 }
 0x602   :  { %v6403_v14 = vcvt.s32.f32 %v6402_v11  ;;  %v6411_v57 = vcvt.s32.f32 %v6410_v61  ;;  %vm6401_vm6 = vcmp.lt.f32.partialorder %v6400_v12, 8388608.0  ;;  %v6399_v53 = vsel %vm6393_vm5, %v6398_v49, %v2730_v38 }
 0x603   :  { %vm6409_vm7 = vcmp.lt.f32.partialorder %v6408_v4, 8388608.0  ;;  %v2746_v36 = vmax.f32 %v6399_v53, -128.0  ;;  %v2753_v51 = vmin.f32 %v2745_v32, 127.0  ;;  %6562 = vrcp.f32 %v2998_v50 }
 0x604   :  { %v6404_v9 = vand.u32 2147483647, %v6403_v14  ;;  %v6412_v35 = vand.u32 2147483647, %v6411_v57  ;;  %6564 = vrcp.f32 %v2999_v60  ;;  %v8412_v25 = vmul.f32 %v2997_v15, %v8380_v22 }
 0x605   :  { %v2754_v6 = vmin.f32 %v2746_v36, 127.0  ;;  %v8416_v41 = vmul.f32 %v2997_v15, %v8401_v16  ;;  %v3013_v19 = vand.u32 2147483648, %v2998_v50  ;;  %vm3007_vm9 = vweird.f32 %v2998_v50  ;;  %v5067_v16 = vld [vmem:[%s8956_s2 + $0x4] ss:$8 sm:$0x3] }
 0x606   :  { %v6406_v54 = vor.u32 %v6405_v5, %v6404_v9  ;;  %v6414_v47 = vor.u32 %v6413_v62, %v6412_v35  ;;  %6566 = vrcp.f32 %v8412_v25  ;;  %v3011_v40 = vand.u32 2147483647, %v2998_v50 }
 0x607   :  { %6568 = vrcp.f32 %v8416_v41  ;;  %v3014_v44 = vor.u32 1.1754944e-38, %v3013_v19  ;;  %v8428_v43 = vperm.slane %v5067_v16, 1  ;;  %v3028_v34 = vand.u32 2147483648, %v2999_v60 }
 0x608   :  { %v6407_v24 = vsel %vm6401_vm6, %v6406_v54, %v2731_v48  ;;  %v6415_v7 = vsel %vm6409_vm7, %v6414_v47, %v2732_v8  ;;  %vm3012_vm11 = vcmp.eq.f32.partialorder %v3011_v40, 8.507059e+37  ;;  %vm3022_vm13 = vweird.f32 %v2999_v60 }
 0x609   :  { %v2747_v13 = vmax.f32 %v6407_v24, -128.0  ;;  %v2748_v0 = vmax.f32 %v6415_v7, -128.0  ;;  %v6563_v28 = vpop.eup %6562  ;;  %v3026_v11 = vand.u32 2147483647, %v2999_v60  ;;  %v8436_v46 = vperm.slane %v5067_v16, 0 }
 0x60a   :  { %v3003_v27 = vmul.f32 %v6563_v28, %v2998_v50  ;;  %v6565_v23 = vpop.eup %6564  ;;  %vm3008_vm8 = vweird.f32 %v6563_v28  ;;  %v3029_v57 = vor.u32 1.1754944e-38, %v3028_v34  ;;  %vm3037_vm1 = vweird.f32 %v8412_v25 }
 0x60b   :  { %v2755_v20 = vmin.f32 %v2747_v13, 127.0  ;;  %v2756_v26 = vmin.f32 %v2748_v0, 127.0  ;;  %v3018_v63 = vmul.f32 %v6565_v23, %v2999_v60  ;;  %vm3009_vm10 = vmor %vm3007_vm9, %vm3008_vm8  ;;  %vm3023_vm12 = vweird.f32 %v6565_v23 }
 0x60c   :  { %v3004_v38 = vsub.f32 1.0, %v3003_v27  ;;  %v8418_v3 = vpop.eup %6566  ;;  %vm3024_vm14 = vmor %vm3022_vm13, %vm3023_vm12  ;;  %vm3027_vm15 = vcmp.eq.f32.partialorder %v3026_v11, 8.507059e+37  ;;  %v3043_v24 = vand.u32 2147483648, %v8412_v25  ;;  %v3041_v36 = vand.u32 2147483647, %v8412_v25 }
 0x60d   :  { %v2759_v39 = vpack.c.bf16 %v2755_v20, %v2753_v51  ;;  %v2760_v59 = vpack.c.bf16 %v2756_v26, %v2754_v6  ;;  %v3019_v58 = vsub.f32 1.0, %v3018_v63  ;;  %v3033_v22 = vmul.f32 %v8418_v3, %v8412_v25  ;;  %v8426_v10 = vpop.eup %6568 }
 0x60e   :  { %v3005_v56 = vmul.f32 %v6563_v28, %v3004_v38  ;;  %v3048_v61 = vmul.f32 %v8426_v10, %v8416_v41  ;;  %vm3038_vm0 = vweird.f32 %v8418_v3  ;;  %v3044_v50 = vor.u32 1.1754944e-38, %v3043_v24 }
 0x60f   :  { %2934 = vmatmul.bf16.gmra.mxu2 %v2759_v39  ;;  %2972 = vmatmul.bf16.gmra.mxu0 %v2759_v39  ;;  %v3020_v29 = vmul.f32 %v6565_v23, %v3019_v58  ;;  %v3034_v30 = vsub.f32 1.0, %v3033_v22  ;;  %vm8447_vm2 = vmor %vm3037_vm1, %vm3038_vm0  ;;  %vm3042_vm3 = vcmp.eq.f32.partialorder %v3041_v36, 8.507059e+37  ;;  %vm3053_vm4 = vweird.f32 %v8426_v10  ;;  %v5398_v36 = vld [vmem:[#allocation11 + $0x188] sm:$0xf] }
 0x610   :  { %2953 = vmatmul.bf16.gmra.mxu3 %v2760_v59  ;;  %2991 = vmatmul.bf16.gmra.mxu1 %v2760_v59  ;;  %v3006_v21 = vadd.f32 %v6563_v28, %v3005_v56  ;;  %v3049_v62 = vsub.f32 1.0, %v3048_v61  ;;  %vm3052_vm5 = vweird.f32 %v8416_v41  ;;  %v3056_v19 = vand.u32 2147483647, %v8416_v41 }
 0x611   :  { %v3021_v52 = vadd.f32 %v6565_v23, %v3020_v29  ;;  %v3035_v31 = vmul.f32 %v8418_v3, %v3034_v30  ;;  %vm8472_vm6 = vmor %vm3052_vm5, %vm3053_vm4 }
 0x612   :  { %v3010_v1 = vsel %vm3009_vm10, %v6563_v28, %v3006_v21  ;;  %v3050_v20 = vmul.f32 %v8426_v10, %v3049_v62  ;;  %v3058_v21 = vand.u32 2147483648, %v8416_v41  ;;  %vm3057_vm7 = vcmp.eq.f32.partialorder %v3056_v19, 8.507059e+37  ;;  %v5370_v19 = vld [vmem:[#allocation11 + $0x150] sm:$0xf] }
 0x613   :  { %v3015_v55 = vsel %vm3012_vm11, %v3014_v44, %v3010_v1  ;;  %v3025_v12 = vsel %vm3024_vm14, %v6565_v23, %v3021_v52  ;;  %v3036_v35 = vadd.f32 %v8418_v3, %v3035_v31 }
 0x614   :  { %v3030_v5 = vsel %vm3027_vm15, %v3029_v57, %v3025_v12  ;;  %v3051_v23 = vadd.f32 %v8426_v10, %v3050_v20 }
 0x615   :  { %v3040_v51 = vsel %vm8447_vm2, %v8418_v3, %v3036_v35 }
 0x616   :  { %v3045_v25 = vsel %vm3042_vm3, %v3044_v50, %v3040_v51  ;;  %v3055_v1 = vsel %vm8472_vm6, %v8426_v10, %v3051_v23 }
 0x67c   :  { %v2968_v37 = vpop.f32.mrf.mxu0 }
 0x67d   :  { %v2987_v2 = vpop.f32.mrf.mxu1 }
 0x67e   :  { %v2988_v45 = vadd.f32 %v2987_v2, %v2968_v37 }
 0x680   :  { %v3063_v8 = vmul.f32 %v3015_v55, %v2988_v45 }
 0x682   :  { %v2930_v48 = vpop.f32.mrf.mxu2  ;;  %v8434_v33 = vadd.f32 %v8428_v43, %v3063_v8 }
 0x683   :  { %v2949_v18 = vpop.f32.mrf.mxu3 }
 0x684   :  { %v2970_v42 = vpop.f32.mrf.mxu0  ;;  %v2950_v14 = vadd.f32 %v2949_v18, %v2930_v48  ;;  %v3084_v54 = vmax.f32 %v8434_v33, 0.0 }
 0x685   :  { %v2989_v49 = vpop.f32.mrf.mxu1 }
 0x686   :  { %v3062_v17 = vmul.f32 %v3015_v55, %v2950_v14  ;;  %v2990_v9 = vadd.f32 %v2989_v49, %v2970_v42  ;;  %v3225_v59 = vand.u32 2147483647, %v3084_v54  ;;  %v3059_v55 = vor.u32 1.1754944e-38, %v3058_v21 }
 0x688   :  { %v8442_v32 = vadd.f32 %v8436_v46, %v3062_v17  ;;  %v3065_v53 = vmul.f32 %v3030_v5, %v2990_v9  ;;  %v3060_v8 = vsel %vm3057_vm7, %v3059_v55, %v3055_v1  ;;  %v5372_v55 = vld [vmem:[#allocation11 + $0x16c] sm:$0xf0] }
 0x68a   :  { %v2932_v4 = vpop.f32.mrf.mxu2  ;;  %v3083_v13 = vmax.f32 %v8442_v32, 0.0  ;;  %v8457_v26 = vadd.f32 %v8428_v43, %v3065_v53 }
 0x68b   :  { %v2951_v0 = vpop.f32.mrf.mxu3 }
 0x68c   :  { %v2973_v47 = vpop.f32.mrf.mxu0  ;;  %v2952_v39 = vadd.f32 %v2951_v0, %v2932_v4  ;;  %v3224_v6 = vand.u32 2147483647, %v3083_v13  ;;  %v3086_v56 = vmax.f32 %v8457_v26, 0.0  ;;  %v5622_v0 = vld [vmem:[#allocation11 + $0x348] sm:$0xf] }
 0x68d   :  { %v2992_v15 = vpop.f32.mrf.mxu1 }
 0x68e   :  { %v3064_v60 = vmul.f32 %v3030_v5, %v2952_v39  ;;  %v2993_v28 = vadd.f32 %v2992_v15, %v2973_v47  ;;  %v3232_v27 = vmax.f32 %v3224_v6, %v3225_v59  ;;  %v3227_v44 = vand.u32 2147483647, %v3086_v56  ;;  %v5964_v6 = vld [vmem:[#allocation11 + $0x360] sm:$0xf0]  ;;  %v5905_v59 = vld [vmem:[#allocation11 + $0x18c] sm:$0xf] }
 0x68f   :  { %v5623_v50 = vor.u32 %v5964_v6, %v5622_v0  ;;  %v5947_v0 = vld [vmem:[#allocation11 + $0x2dc] sm:$0xf] }
 0x690   :  { %v8467_v63 = vadd.f32 %v8436_v46, %v3064_v60  ;;  %v3067_v3 = vmul.f32 %v3045_v25, %v2993_v28  ;;  %3233 = vmax.xlane.f32.xlu2 %v3232_v27  ;;  %v5400_v60 = vld [vmem:[#allocation11 + $0x1a4] sm:$0xf0]  ;;  %v5961_v28 = vld [vmem:[#allocation11 + $0x34c] sm:$0xf] }
 0x691   :  { %v5624_v27 = vld [vmem:[#allocation11 + $0x364] sm:$0xf0]  ;;  %3939 = vmatpush.bf16.msra.mxu3 %v5623_v50 }
 0x692   :  { %v2935_v38 = vpop.f32.mrf.mxu2  ;;  %v3085_v58 = vmax.f32 %v8467_v63, 0.0  ;;  %v8481_v29 = vadd.f32 %v8428_v43, %v3067_v3  ;;  %v5627_v23 = vor.u32 %v5961_v28, %v5624_v27 }
 0x693   :  { %v2954_v40 = vpop.f32.mrf.mxu3 }
 0x694   :  { %v2975_v22 = vpop.f32.mrf.mxu0  ;;  %v2955_v16 = vadd.f32 %v2954_v40, %v2935_v38  ;;  %v3226_v2 = vand.u32 2147483647, %v3085_v58  ;;  %v3088_v52 = vmax.f32 %v8481_v29, 0.0  ;;  %v5403_v38 = vor.u32 %v5905_v59, %v5400_v60  ;;  %3977 = vmatpush.bf16.msrb.mxu1 %v5627_v23  ;;  %v5901_v40 = vld [vmem:[#allocation11 + $0x168] sm:$0xf0] }
 0x695   :  { %v2994_v45 = vpop.f32.mrf.mxu1 }
 0x696   :  { %v3066_v48 = vmul.f32 %v3045_v25, %v2955_v16  ;;  %v2995_v41 = vadd.f32 %v2994_v45, %v2975_v22  ;;  %v3235_v30 = vmax.f32 %v3226_v2, %v3227_v44  ;;  %v3229_v12 = vand.u32 2147483647, %v3088_v52  ;;  %3958 = vmatpush.bf16.msrb.mxu0 %v5403_v38  ;;  %v5594_v22 = vld [vmem:[#allocation11 + $0x310] sm:$0xf]  ;;  %v5957_v44 = vld [vmem:[#allocation11 + $0x328] sm:$0xf0] }
 0x697   :  { %v5371_v2 = vor.u32 %v5901_v40, %v5370_v19  ;;  %v5898_v45 = vld [vmem:[#allocation11 + $0x154] sm:$0xf]  ;;  %v5314_v40 = vld [vmem:[#allocation11 + $0xe0] sm:$0xf]  ;;  %v5512_v19 = vld [vmem:[#allocation11 + $0x284] sm:$0xf0] }
 0x698   :  { %v8489_v10 = vadd.f32 %v8436_v46, %v3066_v48  ;;  %v3069_v42 = vmul.f32 %v3060_v8, %v2995_v41  ;;  %3236 = vmax.xlane.f32.xlu0 %v3235_v30  ;;  %v5595_v30 = vor.u32 %v5957_v44, %v5594_v22  ;;  %v5887_v22 = vld [vmem:[#allocation11 + $0xf8] sm:$0xf0] }
 0x69a   :  { %v2937_v34 = vpop.f32.mrf.mxu2  ;;  %v3087_v11 = vmax.f32 %v8489_v10, 0.0  ;;  %v8493_v31 = vadd.f32 %v8428_v43, %v3069_v42  ;;  %v5954_v42 = vld [vmem:[#allocation11 + $0x314] sm:$0xf]  ;;  %3940 = vmatpush.bf16.msra.mxu3 %v5595_v30 }
 0x69b   :  { %v2956_v18 = vpop.f32.mrf.mxu3 }
 0x69c   :  { %v2957_v61 = vadd.f32 %v2956_v18, %v2937_v34  ;;  %v3228_v14 = vand.u32 2147483647, %v3087_v11  ;;  %v3090_v17 = vmax.f32 %v8493_v31, 0.0  ;;  %v5596_v34 = vld [vmem:[#allocation11 + $0x32c] sm:$0xf0] }
 0x69e   :  { %v3068_v49 = vmul.f32 %v3060_v8, %v2957_v61  ;;  %v3238_v57 = vmax.f32 %v3228_v14, %v3229_v12  ;;  %v3231_v4 = vand.u32 2147483647, %v3090_v17  ;;  %v5375_v8 = vor.u32 %v5898_v45, %v5372_v55  ;;  %v5342_v12 = vld [vmem:[#allocation11 + $0x118] sm:$0xf] }
 0x69f   :  { %v5599_v14 = vor.u32 %v5954_v42, %v5596_v34  ;;  %v5315_v34 = vor.u32 %v5887_v22, %v5314_v40 }
 0x6a0   :  { %v8501_v9 = vadd.f32 %v8436_v46, %v3068_v49  ;;  %3239 = vmax.xlane.f32.xlu1 %v3238_v57  ;;  %v5908_v46 = vld [vmem:[#allocation11 + $0x1a0] sm:$0xf0]  ;;  %v5894_v49 = vld [vmem:[#allocation11 + $0x130] sm:$0xf0]  ;;  %v5566_v57 = vld [vmem:[#allocation11 + $0x2d8] sm:$0xf]  ;;  %3959 = vmatpush.bf16.msrb.mxu0 %v5375_v8 }
 0x6a1   :  { %v5399_v39 = vor.u32 %v5908_v46, %v5398_v36  ;;  %3978 = vmatpush.bf16.msrb.mxu1 %v5599_v14 }
 0x6a2   :  { %v3089_v5 = vmax.f32 %v8501_v9, 0.0 }
 0x6a3   :  { %3920 = vmatpush.bf16.msra.mxu2 %v5399_v39 }
 0x6a4   :  { %v3230_v43 = vand.u32 2147483647, %v3089_v5 }
 0x6a6   :  { %v3241_v35 = vmax.f32 %v3230_v43, %v3231_v4  ;;  %v5950_v4 = vld [vmem:[#allocation11 + $0x2f0] sm:$0xf0] }
 0x6a7   :  { %3921 = vmatpush.bf16.msra.mxu2 %v5371_v2  ;;  %v5567_v36 = vor.u32 %v5950_v4, %v5566_v57  ;;  %v5884_v4 = vld [vmem:[#allocation11 + $0xe4] sm:$0xf] }
 0x6a8   :  { %3242 = vmax.xlane.f32.xlu2 %v3241_v35  ;;  %v5891_v35 = vld [vmem:[#allocation11 + $0x11c] sm:$0xf] }
 0x6a9   :  { %3941 = vmatpush.bf16.msra.mxu3 %v5567_v36 }
 0x703   :  { %v3234_v62 = vpop.xlane.xlu2 %3233 }
 0x704   :  { %v3244_v53 = vmax.f32 %v3234_v62, 1e-05 }
 0x706   :  { %6570 = vrcp.f32 %v3244_v53  ;;  %v3257_v47 = vand.u32 2147483647, %v3244_v53  ;;  %v3259_v24 = vand.u32 2147483648, %v3244_v53  ;;  %vm3253_vm10 = vweird.f32 %v3244_v53 }
 0x708   :  { %vm8511_vm9 = vcmp.eq.f32.partialorder %v3257_v47, 8.507059e+37  ;;  %v3260_v37 = vor.u32 1.1754944e-38, %v3259_v24  ;;  %v5343_v47 = vor.u32 %v5894_v49, %v5342_v12  ;;  %v5344_v24 = vld [vmem:[#allocation11 + $0x134] sm:$0xf0] }
 0x709   :  { %v5347_v46 = vor.u32 %v5891_v35, %v5344_v24  ;;  %v5316_v35 = vld [vmem:[#allocation11 + $0xfc] sm:$0xf0] }
 0x70a   :  { %3922 = vmatpush.bf16.msra.mxu2 %v5343_v47  ;;  %v5286_v47 = vld [vmem:[#allocation11 + $0xa8] sm:$0xf] }
 0x70b   :  { %v3237_v7 = vpop.xlane.xlu0 %3236  ;;  %3960 = vmatpush.bf16.msrb.mxu0 %v5347_v46 }
 0x70c   :  { %v6571_v51 = vpop.eup %6570  ;;  %v8508_v20 = vmax.f32 %v3237_v7, 1e-05 }
 0x70d   :  { %v3249_v15 = vmul.f32 %v6571_v51, %v3244_v53  ;;  %vm3254_vm8 = vweird.f32 %v6571_v51 }
 0x70e   :  { %6572 = vrcp.f32 %v8508_v20  ;;  %vm3255_vm11 = vmor %vm3253_vm10, %vm3254_vm8  ;;  %v3272_v7 = vand.u32 2147483647, %v8508_v20  ;;  %vm3268_vm13 = vweird.f32 %v8508_v20  ;;  %3923 = vmatpush.bf16.msra.mxu2 %v5315_v34 }
 0x70f   :  { %v3250_v25 = vsub.f32 1.0, %v3249_v15  ;;  %v3274_v15 = vand.u32 2147483648, %v8508_v20 }
 0x710   :  { %vm3273_vm14 = vcmp.eq.f32.partialorder %v3272_v7, 8.507059e+37 }
 0x711   :  { %v3251_v3 = vmul.f32 %v6571_v51, %v3250_v25  ;;  %v3275_v38 = vor.u32 1.1754944e-38, %v3274_v15 }
 0x713   :  { %v3252_v1 = vadd.f32 %v6571_v51, %v3251_v3  ;;  %v3240_v16 = vpop.xlane.xlu1 %3239 }
 0x714   :  { %v8515_v48 = vpop.eup %6572  ;;  %v8518_v41 = vmax.f32 %v3240_v16, 1e-05 }
 0x715   :  { %v3256_v18 = vsel %vm3255_vm11, %v6571_v51, %v3252_v1  ;;  %v3264_v61 = vmul.f32 %v8515_v48, %v8508_v20  ;;  %v5568_v51 = vld [vmem:[#allocation11 + $0x2f4] sm:$0xf0]  ;;  %vm3269_vm12 = vweird.f32 %v8515_v48 }
 0x716   :  { %v3261_v43 = vsel %vm8511_vm9, %v3260_v37, %v3256_v18  ;;  %6574 = vrcp.f32 %v8518_v41  ;;  %v3287_v50 = vand.u32 2147483647, %v8518_v41  ;;  %v3289_v60 = vand.u32 2147483648, %v8518_v41  ;;  %vm3270_vm15 = vmor %vm3268_vm13, %vm3269_vm12  ;;  %v5943_v18 = vld [vmem:[#allocation11 + $0x2b8] sm:$0xf0] }
 0x717   :  { %v8525_v62 = vmul.f32 127.0, %v3261_v43  ;;  %v3265_v53 = vsub.f32 1.0, %v3264_v61  ;;  %v5571_v32 = vor.u32 %v5947_v0, %v5568_v51  ;;  %vm3283_vm2 = vweird.f32 %v8518_v41  ;;  %v5880_v0 = vld [vmem:[#allocation11 + $0xc0] sm:$0xf0] }
 0x718   :  { %vm8557_vm0 = vcmp.eq.f32.partialorder %v3287_v50, 8.507059e+37  ;;  %v3290_v20 = vor.u32 1.1754944e-38, %v3289_v60  ;;  %v5510_v50 = vld [vmem:[#allocation11 + $0x268] sm:$0xf]  ;;  %v5936_v60 = vld [vmem:[#allocation11 + $0x280] sm:$0xf0] }
 0x719   :  { %v8531_v39 = vmul.f32 %v8525_v62, %v3083_v13  ;;  %v8536_v6 = vmul.f32 %v8525_v62, %v3084_v54  ;;  %v3266_v59 = vmul.f32 %v8515_v48, %v3265_v53  ;;  %3979 = vmatpush.bf16.msrb.mxu1 %v5571_v32  ;;  %v5940_v53 = vld [vmem:[#allocation11 + $0x2a4] sm:$0xf] }
 0x71b   :  { %v6418_v13 = vcvt.f32.s32 %v8531_v39  ;;  %v3243_v33 = vpop.xlane.xlu2 %3242  ;;  %v6426_v54 = vcvt.f32.s32 %v8536_v6  ;;  %v3267_v27 = vadd.f32 %v8515_v48, %v3266_v59  ;;  %v6416_v1 = vand.u32 2147483647, %v8531_v39 }
 0x71c   :  { %v6575_v28 = vpop.eup %6574  ;;  %v8552_v3 = vmax.f32 %v3243_v33, 1e-05  ;;  %v6421_v44 = vand.u32 2147483648, %v8531_v39  ;;  %v6424_v45 = vand.u32 2147483647, %v8536_v6  ;;  %v6429_v63 = vand.u32 2147483648, %v8536_v6 }
 0x71d   :  { %v8547_v25 = vcvt.s32.f32 %v6418_v13  ;;  %v3279_v23 = vmul.f32 %v6575_v28, %v8518_v41  ;;  %v8554_v21 = vcvt.s32.f32 %v6426_v54  ;;  %v3271_v37 = vsel %vm3270_vm15, %v8515_v48, %v3267_v27  ;;  %v5538_v48 = vld [vmem:[#allocation11 + $0x2a0] sm:$0xf]  ;;  %v5288_v27 = vld [vmem:[#allocation11 + $0xc4] sm:$0xf0] }
 0x71e   :  { %v3276_v16 = vsel %vm3273_vm14, %v3275_v38, %v3271_v37  ;;  %6576 = vrcp.f32 %v8552_v3  ;;  %vm3284_vm1 = vweird.f32 %v6575_v28  ;;  %v3304_v42 = vand.u32 2147483648, %v8552_v3  ;;  %v5933_v37 = vld [vmem:[#allocation11 + $0x26c] sm:$0xf] }
 0x71f   :  { %v3280_v2 = vsub.f32 1.0, %v3279_v23  ;;  %v8565_v55 = vmul.f32 127.0, %v3276_v16  ;;  %v6420_v30 = vand.u32 2147483647, %v8547_v25  ;;  %v6428_v61 = vand.u32 2147483647, %v8554_v21  ;;  %vm3285_vm3 = vmor %vm3283_vm2, %vm3284_vm1 }
 0x720   :  { %v3302_v49 = vand.u32 2147483647, %v8552_v3  ;;  %v5539_v43 = vor.u32 %v5943_v18, %v5538_v48  ;;  %v8585_v26 = vor.u32 1.1754944e-38, %v3304_v42  ;;  %v5319_v38 = vor.u32 %v5884_v4, %v5316_v35  ;;  %v5873_v48 = vld [vmem:[#allocation11 + $0x88] sm:$0xf0] }
 0x721   :  { %v3281_v8 = vmul.f32 %v6575_v28, %v3280_v2  ;;  %v8573_v14 = vmul.f32 %v8565_v55, %v3085_v58  ;;  %v8578_v12 = vmul.f32 %v8565_v55, %v3086_v56  ;;  %v5540_v56 = vld [vmem:[#allocation11 + $0x2bc] sm:$0xf0]  ;;  %v5287_v21 = vor.u32 %v5880_v0, %v5286_v47  ;;  %v5482_v42 = vld [vmem:[#allocation11 + $0x230] sm:$0xf]  ;;  %v5870_v4 = vld [vmem:[#allocation11 + $0x74] sm:$0xf] }
 0x722   :  { %3942 = vmatpush.bf16.msra.mxu3 %v5539_v43  ;;  %v5543_v23 = vor.u32 %v5940_v53, %v5540_v56  ;;  %vm8602_vm4 = vcmp.lt.f32.partialorder %v6416_v1, 8388608.0  ;;  %vm3298_vm5 = vweird.f32 %v8552_v3  ;;  %vm8618_vm6 = vcmp.eq.f32.partialorder %v3302_v49, 8.507059e+37  ;;  %v5258_v1 = vld [vmem:[#allocation11 + $0x70] sm:$0xf]  ;;  %3961 = vmatpush.bf16.msrb.mxu0 %v5319_v38  ;;  %v5965_v49 = vld [vmem:[#allocation11 + $0x368] sm:$0xf0] }
 0x723   :  { %v3282_v57 = vadd.f32 %v6575_v28, %v3281_v8  ;;  %v6434_v58 = vcvt.f32.s32 %v8573_v14  ;;  %v6432_v7 = vand.u32 2147483647, %v8573_v14  ;;  %v6437_v41 = vand.u32 2147483648, %v8573_v14  ;;  %3924 = vmatpush.bf16.msra.mxu2 %v5287_v21  ;;  %v5260_v35 = vld [vmem:[#allocation11 + $0x8c] sm:$0xf0] }
 0x724   :  { %v8587_v24 = vpop.eup %6576  ;;  %v6442_v36 = vcvt.f32.s32 %v8578_v12  ;;  %v6440_v59 = vand.u32 2147483647, %v8578_v12  ;;  %v6445_v13 = vand.u32 2147483648, %v8578_v12  ;;  %3980 = vmatpush.bf16.msrb.mxu1 %v5543_v23  ;;  %v8628_v34 = vor.u32 %v6421_v44, %v6420_v30  ;;  %v5406_v8 = vld [vmem:[#allocation11 + $0x190] sm:$0xf] }
 0x725   :  { %v3286_v46 = vsel %vm3285_vm3, %v6575_v28, %v3282_v57  ;;  %v6435_v51 = vcvt.s32.f32 %v6434_v58  ;;  %v3294_v54 = vmul.f32 %v8587_v24, %v8552_v3  ;;  %v5877_v28 = vld [vmem:[#allocation11 + $0xac] sm:$0xf]  ;;  %vm8622_vm7 = vcmp.lt.f32.partialorder %v6432_v7, 8388608.0  ;;  %v5484_v58 = vld [vmem:[#allocation11 + $0x24c] sm:$0xf0] }
 0x726   :  { %v3291_v15 = vsel %vm8557_vm0, %v3290_v20, %v3286_v46  ;;  %v8595_v32 = vcvt.s32.f32 %v6442_v36  ;;  %v5291_v29 = vor.u32 %v5877_v28, %v5288_v27  ;;  %v8630_v18 = vor.u32 %v6429_v63, %v6428_v61  ;;  %v5926_v63 = vld [vmem:[#allocation11 + $0x234] sm:$0xf]  ;;  %v5230_v36 = vld [vmem:[#allocation11 + $0x38] sm:$0xf]  ;;  %v5863_v27 = vld [vmem:[#allocation11 + $0x3c] sm:$0xf] }
 0x727   :  { %v8598_v33 = vmul.f32 127.0, %v3291_v15  ;;  %v6436_v25 = vand.u32 2147483647, %v6435_v51  ;;  %v3295_v10 = vsub.f32 1.0, %v3294_v54  ;;  %vm8632_vm8 = vcmp.lt.f32.partialorder %v6440_v59, 8388608.0 }
 0x728   :  { %v6444_v40 = vand.u32 2147483647, %v8595_v32  ;;  %vm8640_vm9 = vcmp.lt.f32.partialorder %v6424_v45, 8388608.0  ;;  %vm3299_vm10 = vweird.f32 %v8587_v24  ;;  %v5515_v45 = vor.u32 %v5933_v37, %v5512_v19  ;;  %v5866_v46 = vld [vmem:[#allocation11 + $0x50] sm:$0xf0]  ;;  %3962 = vmatpush.bf16.msrb.mxu0 %v5291_v29 }
 0x729   :  { %v8610_v22 = vmul.f32 %v8598_v33, %v3087_v11  ;;  %v8615_v16 = vmul.f32 %v8598_v33, %v3088_v52  ;;  %v5511_v11 = vor.u32 %v5936_v60, %v5510_v50  ;;  %v5929_v52 = vld [vmem:[#allocation11 + $0x248] sm:$0xf0]  ;;  %v6438_v44 = vor.u32 %v6437_v41, %v6436_v25  ;;  %v5454_v15 = vld [vmem:[#allocation11 + $0x1f8] sm:$0xf]  ;;  %v5922_v50 = vld [vmem:[#allocation11 + $0x210] sm:$0xf0] }
 0x72a   :  { %v3296_v7 = vmul.f32 %v8587_v24, %v3295_v10  ;;  %v5259_v51 = vor.u32 %v5873_v48, %v5258_v1  ;;  %v5483_v59 = vor.u32 %v5929_v52, %v5482_v42  ;;  %3981 = vmatpush.bf16.msrb.mxu1 %v5515_v45  ;;  %v5263_v54 = vor.u32 %v5870_v4, %v5260_v35  ;;  %v5232_v25 = vld [vmem:[#allocation11 + $0x54] sm:$0xf0]  ;;  %vm3300_vm11 = vmor %vm3298_vm5, %vm3299_vm10  ;;  %v5919_v19 = vld [vmem:[#allocation11 + $0x1fc] sm:$0xf] }
 0x72b   :  { %v6448_v57 = vand.u32 2147483647, %v8610_v22  ;;  %v6450_v43 = vcvt.f32.s32 %v8610_v22  ;;  %v6453_v30 = vand.u32 2147483648, %v8610_v22  ;;  %v6458_v61 = vcvt.f32.s32 %v8615_v16  ;;  %3943 = vmatpush.bf16.msra.mxu3 %v5511_v11  ;;  %v5456_v1 = vld [vmem:[#allocation11 + $0x214] sm:$0xf0] }
 0x72c   :  { %v6456_v47 = vand.u32 2147483647, %v8615_v16  ;;  %v6461_v41 = vand.u32 2147483648, %v8615_v16  ;;  %v3297_v32 = vadd.f32 %v8587_v24, %v3296_v7  ;;  %v5487_v28 = vor.u32 %v5926_v63, %v5484_v58  ;;  %3925 = vmatpush.bf16.msra.mxu2 %v5259_v51  ;;  %v5202_v10 = vld [vmem:[#allocation11] sm:$0xf]  ;;  %3963 = vmatpush.bf16.msrb.mxu0 %v5263_v54 }
 0x72d   :  { %v8647_v56 = vcvt.s32.f32 %v6450_v43  ;;  %v8651_v0 = vcvt.s32.f32 %v6458_v61  ;;  %v6446_v38 = vor.u32 %v6445_v13, %v6444_v40  ;;  %v5231_v21 = vor.u32 %v5866_v46, %v5230_v36  ;;  %v5859_v11 = vld [vmem:[#allocation11 + $0x18] sm:$0xf0]  ;;  %v5426_v29 = vld [vmem:[#allocation11 + $0x1c0] sm:$0xf]  ;;  %v5856_v52 = vld [vmem:[#allocation11 + $0x4] sm:$0xf] }
 0x72e   :  { %v5455_v37 = vor.u32 %v5922_v50, %v5454_v15  ;;  %v3301_v48 = vsel %vm3300_vm11, %v8587_v24, %v3297_v32  ;;  %v6423_v13 = vsel %vm8602_vm4, %v8628_v34, %v8531_v39  ;;  %v5235_v40 = vor.u32 %v5863_v27, %v5232_v25  ;;  %v5915_v42 = vld [vmem:[#allocation11 + $0x1d8] sm:$0xf0]  ;;  %v5204_v43 = vld [vmem:[#allocation11 + $0x1c] sm:$0xf0]  ;;  %3982 = vmatpush.bf16.msrb.mxu1 %v5487_v28  ;;  %v5912_v20 = vld [vmem:[#allocation11 + $0x1c4] sm:$0xf] }
 0x72f   :  { %v6452_v60 = vand.u32 2147483647, %v8647_v56  ;;  %v6460_v23 = vand.u32 2147483647, %v8651_v0  ;;  %3944 = vmatpush.bf16.msra.mxu3 %v5483_v59  ;;  %v3306_v3 = vsel %vm8618_vm6, %v8585_v26, %v3301_v48  ;;  %v6439_v24 = vsel %vm8622_vm7, %v6438_v44, %v8573_v14  ;;  %v5428_v39 = vld [vmem:[#allocation11 + $0x1dc] sm:$0xf0] }
 0x730   :  { %v8674_v4 = vmul.f32 127.0, %v3306_v3  ;;  %v5459_v35 = vor.u32 %v5919_v19, %v5456_v1  ;;  %v5203_v61 = vor.u32 %v5859_v11, %v5202_v10  ;;  %v3324_v34 = vmax.f32 %v6423_v13, -128.0  ;;  %3926 = vmatpush.bf16.msra.mxu2 %v5231_v21  ;;  %v5909_v44 = vld [vmem:[#allocation11 + $0x1a8] sm:$0xf0]  ;;  %v5630_v53 = vld [vmem:[#allocation11 + $0x350] sm:$0xf]  ;;  %3964 = vmatpush.bf16.msrb.mxu0 %v5235_v40 }
 0x731   :  { %v5427_v26 = vor.u32 %v5915_v42, %v5426_v29  ;;  %v3326_v2 = vmax.f32 %v6439_v24, -128.0  ;;  %v6431_v63 = vsel %vm8640_vm9, %v8630_v18, %v8536_v6  ;;  %v6447_v14 = vsel %vm8632_vm8, %v6446_v38, %v8578_v12  ;;  %v5906_v59 = vld [vmem:[#allocation11 + $0x194] sm:$0xf]  ;;  %v5408_v28 = vld [vmem:[#allocation11 + $0x1ac] sm:$0xf0] }
 0x732   :  { %v8686_v58 = vmul.f32 %v8674_v4, %v3089_v5  ;;  %v8691_v7 = vmul.f32 %v8674_v4, %v3090_v17  ;;  %v5207_v45 = vor.u32 %v5856_v52, %v5204_v43  ;;  %v3332_v36 = vmin.f32 %v3324_v34, 127.0  ;;  %3983 = vmatpush.bf16.msrb.mxu1 %v5459_v35  ;;  %v5962_v27 = vld [vmem:[#allocation11 + $0x354] sm:$0xf]  ;;  %v5378_v11 = vld [vmem:[#allocation11 + $0x158] sm:$0xf] }
 0x733   :  { %3945 = vmatpush.bf16.msra.mxu3 %v5455_v37  ;;  %vm8695_vm12 = vcmp.lt.f32.partialorder %v6448_v57, 8388608.0  ;;  %v3334_v12 = vmin.f32 %v3326_v2, 127.0  ;;  %v3325_v9 = vmax.f32 %v6431_v63, -128.0  ;;  %v3327_v18 = vmax.f32 %v6447_v14, -128.0  ;;  %v5632_v37 = vld [vmem:[#allocation11 + $0x36c] sm:$0xf0] }
 0x734   :  { %v5407_v5 = vor.u32 %v5909_v44, %v5406_v8  ;;  %v6464_v31 = vand.u32 2147483647, %v8686_v58  ;;  %v6466_v17 = vcvt.f32.s32 %v8686_v58  ;;  %v6472_v46 = vand.u32 2147483647, %v8691_v7  ;;  %3927 = vmatpush.bf16.msra.mxu2 %v5203_v61  ;;  %3965 = vmatpush.bf16.msrb.mxu0 %v5207_v45  ;;  %v5902_v29 = vld [vmem:[#allocation11 + $0x170] sm:$0xf0] }
 0x735   :  { %v5431_v51 = vor.u32 %v5912_v20, %v5428_v39  ;;  %vm8704_vm13 = vcmp.lt.f32.partialorder %v6456_v47, 8388608.0  ;;  %v6469_v15 = vand.u32 2147483648, %v8686_v58  ;;  %v6474_v50 = vcvt.f32.s32 %v8691_v7  ;;  %v5602_v52 = vld [vmem:[#allocation11 + $0x318] sm:$0xf]  ;;  %v5958_v43 = vld [vmem:[#allocation11 + $0x330] sm:$0xf0] }
 0x736   :  { %v6477_v32 = vand.u32 2147483648, %v8691_v7  ;;  %v8711_v54 = vpack.c.bf16 %v3334_v12, %v3332_v36  ;;  %vm8713_vm14 = vcmp.lt.f32.partialorder %v6464_v31, 8388608.0  ;;  %v6467_v47 = vcvt.s32.f32 %v6466_v17  ;;  %v5899_v20 = vld [vmem:[#allocation11 + $0x15c] sm:$0xf]  ;;  %v5380_v39 = vld [vmem:[#allocation11 + $0x174] sm:$0xf0] }
 0x737   :  { %3946 = vmatpush.bf16.msra.mxu3 %v5427_v26  ;;  %vm8717_vm15 = vcmp.lt.f32.partialorder %v6472_v46, 8388608.0  ;;  %v3333_v21 = vmin.f32 %v3325_v9, 127.0  ;;  %v6475_v19 = vcvt.s32.f32 %v6474_v50  ;;  %v3335_v1 = vmin.f32 %v3327_v18, 127.0  ;;  %3984 = vmatpush.bf16.msrb.mxu1 %v5431_v51  ;;  %v5955_v34 = vld [vmem:[#allocation11 + $0x31c] sm:$0xf] }
 0x738   :  { %3996 = vmatpush.bf16.msrb.mxu2 %v5407_v5  ;;  %v5631_v48 = vor.u32 %v5965_v49, %v5630_v53  ;;  %v5411_v10 = vor.u32 %v5906_v59, %v5408_v28  ;;  %v6454_v13 = vor.u32 %v6453_v30, %v6452_v60  ;;  %v6468_v3 = vand.u32 2147483647, %v6467_v47  ;;  %3966 = vmatmul.bf16.vlgmr.msrb.gmra.mxu0 %v8711_v54  ;;  %v5604_v26 = vld [vmem:[#allocation11 + $0x334] sm:$0xf0]  ;;  %v5350_v2 = vld [vmem:[#allocation11 + $0x120] sm:$0xf] }
 0x739   :  { %3928 = vmatmul.bf16.vlgmr.msra.gmra.mxu2 %v8711_v54  ;;  %v5635_v40 = vor.u32 %v5962_v27, %v5632_v37  ;;  %v5379_v42 = vor.u32 %v5902_v29, %v5378_v11  ;;  %v6476_v24 = vand.u32 2147483647, %v6475_v19  ;;  %v8726_v35 = vpack.c.bf16 %v3335_v1, %v3333_v21  ;;  %v5895_v8 = vld [vmem:[#allocation11 + $0x138] sm:$0xf0]  ;;  %v5574_v44 = vld [vmem:[#allocation11 + $0x2e0] sm:$0xf] }
 0x73a   :  { %4034 = vmatpush.bf16.msra.mxu0 %v5411_v10  ;;  %v5603_v61 = vor.u32 %v5958_v43, %v5602_v52  ;;  %v6462_v30 = vor.u32 %v6461_v41, %v6460_v23  ;;  %v6470_v56 = vor.u32 %v6469_v15, %v6468_v3  ;;  %v5383_v60 = vor.u32 %v5899_v20, %v5380_v39  ;;  %v5951_v0 = vld [vmem:[#allocation11 + $0x2f8] sm:$0xf0]  ;;  %v5892_v41 = vld [vmem:[#allocation11 + $0x124] sm:$0xf]  ;;  %v5352_v23 = vld [vmem:[#allocation11 + $0x13c] sm:$0xf0] }
 0x73b   :  { %4015 = vmatpush.bf16.msrb.mxu3 %v5631_v48  ;;  %4053 = vmatpush.bf16.msra.mxu1 %v5635_v40  ;;  %v6478_v63 = vor.u32 %v6477_v32, %v6476_v24  ;;  %v5607_v14 = vor.u32 %v5955_v34, %v5604_v26  ;;  %v5351_v45 = vor.u32 %v5895_v8, %v5350_v2  ;;  %v5948_v36 = vld [vmem:[#allocation11 + $0x2e4] sm:$0xf]  ;;  %v5576_v18 = vld [vmem:[#allocation11 + $0x2fc] sm:$0xf0]  ;;  %v5322_v5 = vld [vmem:[#allocation11 + $0xe8] sm:$0xf] }
 0x73c   :  { %3947 = vmatmul.bf16.vlgmr.msra.gmra.mxu3 %v8726_v35  ;;  %3985 = vmatmul.bf16.vlgmr.msrb.gmra.mxu1 %v8726_v35  ;;  %v6455_v53 = vsel %vm8695_vm12, %v6454_v13, %v8610_v22  ;;  %v5575_v12 = vor.u32 %v5951_v0, %v5574_v44  ;;  %v5355_v9 = vor.u32 %v5892_v41, %v5352_v23  ;;  %v5888_v49 = vld [vmem:[#allocation11 + $0x100] sm:$0xf0]  ;;  %v5546_v46 = vld [vmem:[#allocation11 + $0x2a8] sm:$0xf]  ;;  %v5885_v59 = vld [vmem:[#allocation11 + $0xec] sm:$0xf] }
 0x73d   :  { %3997 = vmatpush.bf16.msrb.mxu2 %v5379_v42  ;;  %v6471_v31 = vsel %vm8713_vm14, %v6470_v56, %v8686_v58  ;;  %v5579_v17 = vor.u32 %v5948_v36, %v5576_v18  ;;  %v5944_v51 = vld [vmem:[#allocation11 + $0x2c0] sm:$0xf0]  ;;  %v6463_v22 = vsel %vm8704_vm13, %v6462_v30, %v8615_v16  ;;  %v6479_v6 = vsel %vm8717_vm15, %v6478_v63, %v8691_v7  ;;  %v5324_v15 = vld [vmem:[#allocation11 + $0x104] sm:$0xf0]  ;;  %v5941_v50 = vld [vmem:[#allocation11 + $0x2ac] sm:$0xf] }
 0x73e   :  { %4035 = vmatpush.bf16.msra.mxu0 %v5383_v60  ;;  %v5548_v32 = vld [vmem:[#allocation11 + $0x2c4] sm:$0xf0]  ;;  %v5323_v28 = vor.u32 %v5888_v49, %v5322_v5  ;;  %v3328_v27 = vmax.f32 %v6455_v53, -128.0  ;;  %v3330_v58 = vmax.f32 %v6471_v31, -128.0  ;;  %v5547_v25 = vor.u32 %v5944_v51, %v5546_v46  ;;  %v5294_v19 = vld [vmem:[#allocation11 + $0xb0] sm:$0xf] }
 0x73f   :  { %4016 = vmatpush.bf16.msrb.mxu3 %v5603_v61  ;;  %4054 = vmatpush.bf16.msra.mxu1 %v5607_v14  ;;  %v5327_v47 = vor.u32 %v5885_v59, %v5324_v15  ;;  %v3329_v21 = vmax.f32 %v6463_v22, -128.0  ;;  %v3331_v37 = vmax.f32 %v6479_v6, -128.0  ;;  %v5881_v57 = vld [vmem:[#allocation11 + $0xc8] sm:$0xf0]  ;;  %v5551_v16 = vor.u32 %v5941_v50, %v5548_v32  ;;  %v5518_v7 = vld [vmem:[#allocation11 + $0x270] sm:$0xf] }
 0x740   :  { %v3336_v1 = vmin.f32 %v3328_v27, 127.0  ;;  %v3338_v38 = vmin.f32 %v3330_v58, 127.0  ;;  %v5937_v48 = vld [vmem:[#allocation11 + $0x288] sm:$0xf0]  ;;  %v5934_v11 = vld [vmem:[#allocation11 + $0x274] sm:$0xf]  ;;  %v5295_v42 = vor.u32 %v5881_v57, %v5294_v19 }
 0x741   :  { %3998 = vmatpush.bf16.msrb.mxu2 %v5351_v45  ;;  %v3339_v10 = vmin.f32 %v3331_v37, 127.0  ;;  %v5520_v29 = vld [vmem:[#allocation11 + $0x28c] sm:$0xf0]  ;;  %v5878_v3 = vld [vmem:[#allocation11 + $0xb4] sm:$0xf]  ;;  %v3337_v40 = vmin.f32 %v3329_v21, 127.0  ;;  %v5519_v52 = vor.u32 %v5937_v48, %v5518_v7 }
 0x742   :  { %4036 = vmatpush.bf16.msra.mxu0 %v5355_v9  ;;  %v8747_v13 = vpack.c.bf16 %v3338_v38, %v3336_v1  ;;  %v5296_v43 = vld [vmem:[#allocation11 + $0xcc] sm:$0xf0]  ;;  %v5266_v24 = vld [vmem:[#allocation11 + $0x78] sm:$0xf]  ;;  %v5523_v61 = vor.u32 %v5934_v11, %v5520_v29  ;;  %v5874_v20 = vld [vmem:[#allocation11 + $0x90] sm:$0xf0] }
 0x743   :  { %4017 = vmatpush.bf16.msrb.mxu3 %v5575_v12  ;;  %4055 = vmatpush.bf16.msra.mxu1 %v5579_v17  ;;  %v5490_v39 = vld [vmem:[#allocation11 + $0x238] sm:$0xf]  ;;  %v5930_v30 = vld [vmem:[#allocation11 + $0x250] sm:$0xf0]  ;;  %v8749_v56 = vpack.c.bf16 %v3339_v10, %v3337_v40  ;;  %v5927_v60 = vld [vmem:[#allocation11 + $0x23c] sm:$0xf]  ;;  %v5299_v26 = vor.u32 %v5878_v3, %v5296_v43  ;;  %v5267_v2 = vor.u32 %v5874_v20, %v5266_v24 }
 0x744   :  { %v5492_v34 = vld [vmem:[#allocation11 + $0x254] sm:$0xf0]  ;;  %v5491_v63 = vor.u32 %v5930_v30, %v5490_v39  ;;  %v5871_v14 = vld [vmem:[#allocation11 + $0x7c] sm:$0xf]  ;;  %v5238_v44 = vld [vmem:[#allocation11 + $0x40] sm:$0xf] }
 0x745   :  { %3999 = vmatpush.bf16.msrb.mxu2 %v5323_v28  ;;  %v5268_v8 = vld [vmem:[#allocation11 + $0x94] sm:$0xf0]  ;;  %v5495_v0 = vor.u32 %v5927_v60, %v5492_v34  ;;  %v5867_v45 = vld [vmem:[#allocation11 + $0x58] sm:$0xf0]  ;;  %v5462_v41 = vld [vmem:[#allocation11 + $0x200] sm:$0xf] }
 0x746   :  { %4037 = vmatpush.bf16.msra.mxu0 %v5327_v47  ;;  %v5923_v23 = vld [vmem:[#allocation11 + $0x218] sm:$0xf0]  ;;  %v5920_v36 = vld [vmem:[#allocation11 + $0x204] sm:$0xf]  ;;  %v5464_v53 = vld [vmem:[#allocation11 + $0x21c] sm:$0xf0]  ;;  %v5271_v12 = vor.u32 %v5871_v14, %v5268_v8  ;;  %v5239_v5 = vor.u32 %v5867_v45, %v5238_v44 }
 0x747   :  { %4018 = vmatpush.bf16.msrb.mxu3 %v5547_v25  ;;  %4056 = vmatpush.bf16.msra.mxu1 %v5551_v16  ;;  %v5864_v9 = vld [vmem:[#allocation11 + $0x44] sm:$0xf]  ;;  %v5240_v18 = vld [vmem:[#allocation11 + $0x5c] sm:$0xf0]  ;;  %v5463_v49 = vor.u32 %v5923_v23, %v5462_v41  ;;  %v5210_v31 = vld [vmem:[#allocation11 + $0x8] sm:$0xf]  ;;  %v5467_v51 = vor.u32 %v5920_v36, %v5464_v53 }
 0x748   :  { %3971 = vmatmul.bf16.gmra.mxu0 %v8747_v13  ;;  %v5860_v17 = vld [vmem:[#allocation11 + $0x20] sm:$0xf0]  ;;  %v5434_v46 = vld [vmem:[#allocation11 + $0x1c8] sm:$0xf]  ;;  %v5913_v22 = vld [vmem:[#allocation11 + $0x1cc] sm:$0xf]  ;;  %v5243_v28 = vor.u32 %v5864_v9, %v5240_v18 }
 0x749   :  { %3933 = vmatmul.bf16.gmra.mxu2 %v8747_v13  ;;  %v5916_v59 = vld [vmem:[#allocation11 + $0x1e0] sm:$0xf0]  ;;  %v5436_v6 = vld [vmem:[#allocation11 + $0x1e4] sm:$0xf0]  ;;  %v5414_v15 = vld [vmem:[#allocation11 + $0x198] sm:$0xf]  ;;  %v5211_v47 = vor.u32 %v5860_v17, %v5210_v31 }
 0x74a   :  { %4000 = vmatpush.bf16.msrb.mxu2 %v5295_v42  ;;  %4038 = vmatpush.bf16.msra.mxu0 %v5299_v26  ;;  %v5910_v50 = vld [vmem:[#allocation11 + $0x1b0] sm:$0xf0]  ;;  %v5638_v32 = vld [vmem:[#allocation11 + $0x358] sm:$0xf]  ;;  %v5963_v58 = vld [vmem:[#allocation11 + $0x35c] sm:$0xf]  ;;  %v5435_v21 = vor.u32 %v5916_v59, %v5434_v46  ;;  %v5439_v57 = vor.u32 %v5913_v22, %v5436_v6 }
 0x74b   :  { %4019 = vmatpush.bf16.msrb.mxu3 %v5519_v52  ;;  %4057 = vmatpush.bf16.msra.mxu1 %v5523_v61  ;;  %v5966_v27 = vld [vmem:[#allocation11 + $0x370] sm:$0xf0]  ;;  %v5640_v25 = vld [vmem:[#allocation11 + $0x374] sm:$0xf0]  ;;  %v5857_v37 = vld [vmem:[#allocation11 + $0xc] sm:$0xf]  ;;  %v5415_v16 = vor.u32 %v5910_v50, %v5414_v15 }
 0x74c   :  { %3952 = vmatmul.bf16.gmra.mxu3 %v8749_v56  ;;  %3990 = vmatmul.bf16.gmra.mxu1 %v8749_v56  ;;  %v5212_v19 = vld [vmem:[#allocation11 + $0x24] sm:$0xf0]  ;;  %v5907_v1 = vld [vmem:[#allocation11 + $0x19c] sm:$0xf]  ;;  %v5416_v38 = vld [vmem:[#allocation11 + $0x1b4] sm:$0xf0]  ;;  %v5639_v7 = vor.u32 %v5966_v27, %v5638_v32  ;;  %v5643_v48 = vor.u32 %v5963_v58, %v5640_v25 }
 0x74d   :  { %v5386_v10 = vld [vmem:[#allocation11 + $0x160] sm:$0xf]  ;;  %v5903_v11 = vld [vmem:[#allocation11 + $0x178] sm:$0xf0]  ;;  %v5215_v29 = vor.u32 %v5857_v37, %v5212_v19  ;;  %v5419_v3 = vor.u32 %v5907_v1, %v5416_v38  ;;  %v5900_v52 = vld [vmem:[#allocation11 + $0x164] sm:$0xf] }
 0x74e   :  { %4001 = vmatpush.bf16.msrb.mxu2 %v5267_v2  ;;  %4039 = vmatpush.bf16.msra.mxu0 %v5271_v12  ;;  %v5610_v40 = vld [vmem:[#allocation11 + $0x320] sm:$0xf]  ;;  %v5959_v42 = vld [vmem:[#allocation11 + $0x338] sm:$0xf0]  ;;  %v5387_v43 = vor.u32 %v5903_v11, %v5386_v10  ;;  %v5956_v61 = vld [vmem:[#allocation11 + $0x324] sm:$0xf] }
 0x74f   :  { %4020 = vmatpush.bf16.msrb.mxu3 %v5491_v63  ;;  %4058 = vmatpush.bf16.msra.mxu1 %v5495_v0  ;;  %v5388_v24 = vld [vmem:[#allocation11 + $0x17c] sm:$0xf0]  ;;  %v5358_v39 = vld [vmem:[#allocation11 + $0x128] sm:$0xf]  ;;  %v5896_v30 = vld [vmem:[#allocation11 + $0x140] sm:$0xf0]  ;;  %v5611_v60 = vor.u32 %v5959_v42, %v5610_v40 }
 0x750   :  { %v5612_v20 = vld [vmem:[#allocation11 + $0x33c] sm:$0xf0]  ;;  %v5391_v34 = vor.u32 %v5900_v52, %v5388_v24  ;;  %v5582_v2 = vld [vmem:[#allocation11 + $0x2e8] sm:$0xf]  ;;  %v5952_v63 = vld [vmem:[#allocation11 + $0x300] sm:$0xf0]  ;;  %v5359_v8 = vor.u32 %v5896_v30, %v5358_v39 }
 0x751   :  { %v5615_v26 = vor.u32 %v5956_v61, %v5612_v20  ;;  %v5893_v14 = vld [vmem:[#allocation11 + $0x12c] sm:$0xf]  ;;  %v5360_v44 = vld [vmem:[#allocation11 + $0x144] sm:$0xf0]  ;;  %v5330_v41 = vld [vmem:[#allocation11 + $0xf0] sm:$0xf]  ;;  %v5583_v36 = vor.u32 %v5952_v63, %v5582_v2 }
 0x752   :  { %4002 = vmatpush.bf16.msrb.mxu2 %v5239_v5  ;;  %4040 = vmatpush.bf16.msra.mxu0 %v5243_v28  ;;  %v5949_v0 = vld [vmem:[#allocation11 + $0x2ec] sm:$0xf]  ;;  %v5584_v45 = vld [vmem:[#allocation11 + $0x304] sm:$0xf0]  ;;  %v5363_v53 = vor.u32 %v5893_v14, %v5360_v44  ;;  %v5554_v9 = vld [vmem:[#allocation11 + $0x2b0] sm:$0xf] }
 0x753   :  { %4021 = vmatpush.bf16.msrb.mxu3 %v5463_v49  ;;  %4059 = vmatpush.bf16.msra.mxu1 %v5467_v51  ;;  %v5889_v23 = vld [vmem:[#allocation11 + $0x108] sm:$0xf0]  ;;  %v5587_v12 = vor.u32 %v5949_v0, %v5584_v45  ;;  %v5886_v5 = vld [vmem:[#allocation11 + $0xf4] sm:$0xf]  ;;  %v5332_v31 = vld [vmem:[#allocation11 + $0x10c] sm:$0xf0] }
 0x754   :  { %v5945_v18 = vld [vmem:[#allocation11 + $0x2c8] sm:$0xf0]  ;;  %v5331_v49 = vor.u32 %v5889_v23, %v5330_v41  ;;  %v5942_v17 = vld [vmem:[#allocation11 + $0x2b4] sm:$0xf]  ;;  %v5556_v46 = vld [vmem:[#allocation11 + $0x2cc] sm:$0xf0]  ;;  %v5335_v6 = vor.u32 %v5886_v5, %v5332_v31 }
 0x755   :  { %v5302_v51 = vld [vmem:[#allocation11 + $0xb8] sm:$0xf]  ;;  %v5882_v59 = vld [vmem:[#allocation11 + $0xd0] sm:$0xf0]  ;;  %v5555_v22 = vor.u32 %v5945_v18, %v5554_v9  ;;  %v5559_v15 = vor.u32 %v5942_v17, %v5556_v46  ;;  %v5879_v28 = vld [vmem:[#allocation11 + $0xbc] sm:$0xf] }
 0x756   :  { %4003 = vmatpush.bf16.msrb.mxu2 %v5211_v47  ;;  %4041 = vmatpush.bf16.msra.mxu0 %v5215_v29  ;;  %v5526_v50 = vld [vmem:[#allocation11 + $0x278] sm:$0xf]  ;;  %v5938_v32 = vld [vmem:[#allocation11 + $0x290] sm:$0xf0]  ;;  %v5303_v27 = vor.u32 %v5882_v59, %v5302_v51  ;;  %v5935_v25 = vld [vmem:[#allocation11 + $0x27c] sm:$0xf] }
 0x757   :  { %4022 = vmatpush.bf16.msrb.mxu3 %v5435_v21  ;;  %4060 = vmatpush.bf16.msra.mxu1 %v5439_v57  ;;  %v5304_v58 = vld [vmem:[#allocation11 + $0xd4] sm:$0xf0]  ;;  %v5274_v21 = vld [vmem:[#allocation11 + $0x80] sm:$0xf]  ;;  %v5875_v37 = vld [vmem:[#allocation11 + $0x98] sm:$0xf0]  ;;  %v5527_v19 = vor.u32 %v5938_v32, %v5526_v50 }
 0x758   :  { %v5528_v47 = vld [vmem:[#allocation11 + $0x294] sm:$0xf0]  ;;  %v5307_v57 = vor.u32 %v5879_v28, %v5304_v58  ;;  %v5498_v1 = vld [vmem:[#allocation11 + $0x240] sm:$0xf]  ;;  %v5931_v38 = vld [vmem:[#allocation11 + $0x258] sm:$0xf0] }
 0x759   :  { %4004 = vmatmul.bf16.vlgmr.msrb.gmra.mxu2 %v8711_v54  ;;  %4042 = vmatmul.bf16.vlgmr.msra.gmra.mxu0 %v8711_v54  ;;  %v5276_v10 = vld [vmem:[#allocation11 + $0x9c] sm:$0xf0]  ;;  %v5928_v11 = vld [vmem:[#allocation11 + $0x244] sm:$0xf]  ;;  %v5499_v42 = vor.u32 %v5931_v38, %v5498_v1  ;;  %v5470_v24 = vld [vmem:[#allocation11 + $0x208] sm:$0xf] }
 0x75a   :  { %4072 = vmatpush.bf16.msra.mxu2 %v5415_v16  ;;  %4110 = vmatpush.bf16.msrb.mxu0 %v5419_v3  ;;  %v5531_v16 = vor.u32 %v5935_v25, %v5528_v47  ;;  %v5500_v29 = vld [vmem:[#allocation11 + $0x25c] sm:$0xf0]  ;;  %v5246_v3 = vld [vmem:[#allocation11 + $0x48] sm:$0xf]  ;;  %v5868_v40 = vld [vmem:[#allocation11 + $0x60] sm:$0xf0] }
 0x75b   :  { %4091 = vmatpush.bf16.msra.mxu3 %v5639_v7  ;;  %4129 = vmatpush.bf16.msrb.mxu1 %v5643_v48  ;;  %v5872_v7 = vld [vmem:[#allocation11 + $0x84] sm:$0xf]  ;;  %v5275_v48 = vor.u32 %v5875_v37, %v5274_v21  ;;  %v5865_v20 = vld [vmem:[#allocation11 + $0x4c] sm:$0xf]  ;;  %v5247_v39 = vor.u32 %v5868_v40, %v5246_v3  ;;  %v5248_v30 = vld [vmem:[#allocation11 + $0x64] sm:$0xf0] }
 0x75c   :  { %4023 = vmatmul.bf16.vlgmr.msrb.gmra.mxu3 %v8726_v35  ;;  %4061 = vmatmul.bf16.vlgmr.msra.gmra.mxu1 %v8726_v35  ;;  %v5279_v52 = vor.u32 %v5872_v7, %v5276_v10  ;;  %v5924_v61 = vld [vmem:[#allocation11 + $0x220] sm:$0xf0]  ;;  %v5861_v2 = vld [vmem:[#allocation11 + $0x28] sm:$0xf0]  ;;  %v5422_v14 = vld [vmem:[#allocation11 + $0x1a0] sm:$0xf]  ;;  %v5251_v44 = vor.u32 %v5865_v20, %v5248_v30 }
 0x75d   :  { %v5471_v63 = vor.u32 %v5924_v61, %v5470_v24  ;;  %v5442_v45 = vld [vmem:[#allocation11 + $0x1d0] sm:$0xf]  ;;  %v5917_v41 = vld [vmem:[#allocation11 + $0x1e8] sm:$0xf0]  ;;  %v5858_v23 = vld [vmem:[#allocation11 + $0x14] sm:$0xf] }
 0x75e   :  { %4073 = vmatpush.bf16.msra.mxu2 %v5387_v43  ;;  %4111 = vmatpush.bf16.msrb.mxu0 %v5391_v34  ;;  %v5503_v43 = vor.u32 %v5928_v11, %v5500_v29  ;;  %v5472_v34 = vld [vmem:[#allocation11 + $0x224] sm:$0xf0]  ;;  %v5444_v9 = vld [vmem:[#allocation11 + $0x1ec] sm:$0xf0]  ;;  %v5646_v5 = vld [vmem:[#allocation11 + $0x360] sm:$0xf]  ;;  %v5443_v31 = vor.u32 %v5917_v41, %v5442_v45  ;;  %v4186_v45 = vstv %s5199_s29 }
 0x75f   :  { %4092 = vmatpush.bf16.msra.mxu3 %v5611_v60  ;;  %4130 = vmatpush.bf16.msrb.mxu1 %v5615_v26  ;;  %v5921_v60 = vld [vmem:[#allocation11 + $0x20c] sm:$0xf]  ;;  %v5218_v26 = vld [vmem:[#allocation11 + $0x10] sm:$0xf]  ;;  %v5394_v17 = vld [vmem:[#allocation11 + $0x168] sm:$0xf]  ;;  %v4187_v41 = vmul.f32 %v4186_v45, %v8525_v62 }
 0x760   :  { %v5475_v0 = vor.u32 %v5921_v60, %v5472_v34  ;;  %v5904_v46 = vld [vmem:[#allocation11 + $0x180] sm:$0xf0]  ;;  %v5366_v32 = vld [vmem:[#allocation11 + $0x130] sm:$0xf]  ;;  %v5897_v28 = vld [vmem:[#allocation11 + $0x148] sm:$0xf0] }
 0x761   :  { %v5960_v50 = vld [vmem:[#allocation11 + $0x340] sm:$0xf0]  ;;  %v5590_v58 = vld [vmem:[#allocation11 + $0x2f0] sm:$0xf]  ;;  %v5953_v25 = vld [vmem:[#allocation11 + $0x308] sm:$0xf0]  ;;  %v5367_v47 = vor.u32 %v5897_v28, %v5366_v32  ;;  %6578 = vrcp.f32 %v4187_v41  ;;  %vm4196_vm1 = vweird.f32 %v4187_v41 }
 0x762   :  { %4074 = vmatpush.bf16.msra.mxu2 %v5359_v8  ;;  %4112 = vmatpush.bf16.msrb.mxu0 %v5363_v53  ;;  %v5911_v8 = vld [vmem:[#allocation11 + $0x1b8] sm:$0xf0]  ;;  %v5220_v53 = vld [vmem:[#allocation11 + $0x2c] sm:$0xf0]  ;;  %v5338_v21 = vld [vmem:[#allocation11 + $0xf8] sm:$0xf] }
 0x763   :  { %4093 = vmatpush.bf16.msra.mxu3 %v5583_v36  ;;  %4131 = vmatpush.bf16.msrb.mxu1 %v5587_v12  ;;  %v5219_v36 = vor.u32 %v5861_v2, %v5218_v26  ;;  %v5914_v12 = vld [vmem:[#allocation11 + $0x1d4] sm:$0xf]  ;;  %v5423_v18 = vor.u32 %v5911_v8, %v5422_v14  ;;  %v5223_v51 = vor.u32 %v5858_v23, %v5220_v53  ;;  %v5310_v38 = vld [vmem:[#allocation11 + $0xc0] sm:$0xf]  ;;  %v5883_v7 = vld [vmem:[#allocation11 + $0xd8] sm:$0xf0] }
 0x764   :  { %v5447_v59 = vor.u32 %v5914_v12, %v5444_v9  ;;  %v5890_v37 = vld [vmem:[#allocation11 + $0x110] sm:$0xf0]  ;;  %v5534_v10 = vld [vmem:[#allocation11 + $0x280] sm:$0xf]  ;;  %v5939_v11 = vld [vmem:[#allocation11 + $0x298] sm:$0xf0]  ;;  %v5311_v29 = vor.u32 %v5883_v7, %v5310_v38  ;;  %v4188_v23 = vmul.f32 %v4186_v45, %v8565_v55  ;;  %v8777_v12 = vmul.f32 %v4186_v45, %v8598_v33 }
 0x765   :  { %v5339_v1 = vor.u32 %v5890_v37, %v5338_v21  ;;  %v5535_v3 = vor.u32 %v5939_v11, %v5534_v10  ;;  %v5282_v40 = vld [vmem:[#allocation11 + $0x88] sm:$0xf]  ;;  %v5254_v20 = vld [vmem:[#allocation11 + $0x50] sm:$0xf]  ;;  %v5925_v60 = vld [vmem:[#allocation11 + $0x228] sm:$0xf0] }
 0x766   :  { %4075 = vmatpush.bf16.msra.mxu2 %v5331_v49  ;;  %4113 = vmatpush.bf16.msrb.mxu0 %v5335_v6  ;;  %v5967_v49 = vld [vmem:[#allocation11 + $0x378] sm:$0xf0]  ;;  %v5395_v6 = vor.u32 %v5904_v46, %v5394_v17  ;;  %v5478_v30 = vld [vmem:[#allocation11 + $0x210] sm:$0xf]  ;;  %v5226_v2 = vld [vmem:[#allocation11 + $0x18] sm:$0xf]  ;;  %6580 = vrcp.f32 %v4188_v23  ;;  %vm4211_vm5 = vweird.f32 %v4188_v23  ;;  %vm4226_vm9 = vweird.f32 %v8777_v12 }
 0x767   :  { %4094 = vmatpush.bf16.msra.mxu3 %v5555_v22  ;;  %4132 = vmatpush.bf16.msrb.mxu1 %v5559_v15  ;;  %v5647_v22 = vor.u32 %v5967_v49, %v5646_v5  ;;  %v5618_v15 = vld [vmem:[#allocation11 + $0x328] sm:$0xf]  ;;  %v5479_v26 = vor.u32 %v5925_v60, %v5478_v30  ;;  %v5450_v14 = vld [vmem:[#allocation11 + $0x1d8] sm:$0xf]  ;;  %v5918_v8 = vld [vmem:[#allocation11 + $0x1f0] sm:$0xf0]  ;;  %6582 = vrcp.f32 %v8777_v12 }
 0x768   :  { %v5197_v55 = vld [vmem:[%s8956_s2 + $0x5] ss:$8 sm:$0xf]  ;;  %v4202_v49 = vand.u32 2147483648, %v4187_v41  ;;  %v4200_v17 = vand.u32 2147483647, %v4187_v41 }
 0x769   :  { %4009 = vmatmul.bf16.gmra.mxu2 %v8747_v13  ;;  %4047 = vmatmul.bf16.gmra.mxu0 %v8747_v13  ;;  %v5198_v33 = vld [vmem:[%s8956_s2 + $0x5] ss:$8 sm:$0xf0]  ;;  %v4217_v21 = vand.u32 2147483648, %v4188_v23  ;;  %v4230_v60 = vand.u32 2147483647, %v8777_v12 }
 0x76a   :  { %4076 = vmatpush.bf16.msra.mxu2 %v5303_v27  ;;  %4114 = vmatpush.bf16.msrb.mxu0 %v5307_v57  ;;  %v5619_v27 = vor.u32 %v5960_v50, %v5618_v15  ;;  %v5562_v57 = vld [vmem:[#allocation11 + $0x2b8] sm:$0xf]  ;;  %vm4201_vm3 = vcmp.eq.f32.partialorder %v4200_v17, 8.507059e+37 }
 0x76b   :  { %4095 = vmatpush.bf16.msra.mxu3 %v5527_v19  ;;  %4133 = vmatpush.bf16.msrb.mxu1 %v5531_v16  ;;  %v5591_v19 = vor.u32 %v5953_v25, %v5590_v58  ;;  %v5946_v16 = vld [vmem:[#allocation11 + $0x2d0] sm:$0xf0]  ;;  %vm4231_vm11 = vcmp.eq.f32.partialorder %v4230_v60, 8.507059e+37 }
 0x76c   :  { %4028 = vmatmul.bf16.gmra.mxu3 %v8749_v56  ;;  %4066 = vmatmul.bf16.gmra.mxu1 %v8749_v56 }
 0x76e   :  { %4077 = vmatpush.bf16.msra.mxu2 %v5275_v48  ;;  %4115 = vmatpush.bf16.msrb.mxu0 %v5279_v52  ;;  %v5563_v48 = vor.u32 %v5946_v16, %v5562_v57  ;;  %v5506_v52 = vld [vmem:[#allocation11 + $0x248] sm:$0xf] }
 0x76f   :  { %4096 = vmatpush.bf16.msra.mxu3 %v5499_v42  ;;  %4134 = vmatpush.bf16.msrb.mxu1 %v5503_v43  ;;  %v5876_v42 = vld [vmem:[#allocation11 + $0xa0] sm:$0xf0] }
 0x770   :  { %v5932_v43 = vld [vmem:[#allocation11 + $0x260] sm:$0xf0]  ;;  %v5283_v24 = vor.u32 %v5876_v42, %v5282_v40 }
 0x771   :  { %v5507_v61 = vor.u32 %v5932_v43, %v5506_v52 }
 0x772   :  { %4078 = vmatpush.bf16.msra.mxu2 %v5247_v39  ;;  %4116 = vmatpush.bf16.msrb.mxu0 %v5251_v44  ;;  %v5869_v39 = vld [vmem:[#allocation11 + $0x68] sm:$0xf0] }
 0x773   :  { %4097 = vmatpush.bf16.msra.mxu3 %v5471_v63  ;;  %4135 = vmatpush.bf16.msrb.mxu1 %v5475_v0  ;;  %v5255_v34 = vor.u32 %v5869_v39, %v5254_v20  ;;  %v5862_v63 = vld [vmem:[#allocation11 + $0x30] sm:$0xf0]  ;;  %v5451_v0 = vor.u32 %v5918_v8, %v5450_v14  ;;  %v4232_v39 = vand.u32 2147483648, %v8777_v12 }
 0x774   :  { %v5227_v44 = vor.u32 %v5862_v63, %v5226_v2 }
 0x776   :  { %4079 = vmatpush.bf16.msra.mxu2 %v5219_v36  ;;  %4117 = vmatpush.bf16.msrb.mxu0 %v5223_v51  ;;  %v6579_v36 = vpop.eup %6578 }
 0x777   :  { %4098 = vmatpush.bf16.msra.mxu3 %v5443_v31  ;;  %4136 = vmatpush.bf16.msrb.mxu1 %v5447_v59  ;;  %v4192_v53 = vmul.f32 %v6579_v36, %v4187_v41  ;;  %vm4197_vm0 = vweird.f32 %v6579_v36  ;;  %v8792_v31 = vor.u32 %v5198_v33, %v5197_v55 }
 0x778   :  { %vm4198_vm2 = vmor %vm4196_vm1, %vm4197_vm0 }
 0x779   :  { %4080 = vmatmul.bf16.vlgmr.msra.gmra.mxu2 %v8711_v54  ;;  %4118 = vmatmul.bf16.vlgmr.msrb.gmra.mxu0 %v8711_v54  ;;  %v4193_v9 = vsub.f32 1.0, %v4192_v53  ;;  %v8798_v50 = vperm.slane %v8792_v31, 1  ;;  %v8811_v38 = vperm.slane %v8792_v31, 0 }
 0x77a   :  { %4148 = vmatpush.bf16.msrb.mxu2 %v5423_v18  ;;  %v6581_v18 = vpop.eup %6580 }
 0x77b   :  { %4167 = vmatpush.bf16.msrb.mxu3 %v5647_v22  ;;  %v4194_v62 = vmul.f32 %v6579_v36, %v4193_v9  ;;  %vm4212_vm4 = vweird.f32 %v6581_v18 }
 0x77c   :  { %4099 = vmatmul.bf16.vlgmr.msra.gmra.mxu3 %v8726_v35  ;;  %4137 = vmatmul.bf16.vlgmr.msrb.gmra.mxu1 %v8726_v35  ;;  %vm4213_vm6 = vmor %vm4211_vm5, %vm4212_vm4 }
 0x77e   :  { %4149 = vmatpush.bf16.msrb.mxu2 %v5395_v6  ;;  %v4203_v6 = vor.u32 1.1754944e-38, %v4202_v49 }
 0x77f   :  { %4168 = vmatpush.bf16.msrb.mxu3 %v5619_v27 }
 0x782   :  { %4150 = vmatpush.bf16.msrb.mxu2 %v5367_v47 }
 0x783   :  { %4169 = vmatpush.bf16.msrb.mxu3 %v5591_v19  ;;  %v4215_v19 = vand.u32 2147483647, %v4188_v23 }
 0x785   :  { %vm4216_vm7 = vcmp.eq.f32.partialorder %v4215_v19, 8.507059e+37 }
 0x786   :  { %4151 = vmatpush.bf16.msrb.mxu2 %v5339_v1 }
 0x787   :  { %4170 = vmatpush.bf16.msrb.mxu3 %v5563_v48 }
 0x789   :  { %4085 = vmatmul.bf16.gmra.mxu2 %v8747_v13  ;;  %4123 = vmatmul.bf16.gmra.mxu0 %v8747_v13 }
 0x78a   :  { %4152 = vmatpush.bf16.msrb.mxu2 %v5311_v29  ;;  %v4218_v29 = vor.u32 1.1754944e-38, %v4217_v21 }
 0x78b   :  { %4171 = vmatpush.bf16.msrb.mxu3 %v5535_v3 }
 0x78c   :  { %4104 = vmatmul.bf16.gmra.mxu3 %v8749_v56  ;;  %4142 = vmatmul.bf16.gmra.mxu1 %v8749_v56 }
 0x78e   :  { %4153 = vmatpush.bf16.msrb.mxu2 %v5283_v24 }
 0x78f   :  { %4172 = vmatpush.bf16.msrb.mxu3 %v5507_v61 }
 0x792   :  { %4154 = vmatpush.bf16.msrb.mxu2 %v5255_v34 }
 0x793   :  { %4173 = vmatpush.bf16.msrb.mxu3 %v5479_v26 }
 0x796   :  { %4155 = vmatpush.bf16.msrb.mxu2 %v5227_v44  ;;  %v4233_v44 = vor.u32 1.1754944e-38, %v4232_v39 }
 0x797   :  { %4174 = vmatpush.bf16.msrb.mxu3 %v5451_v0 }
 0x799   :  { %4156 = vmatmul.bf16.vlgmr.msrb.gmra.mxu2 %v8711_v54  ;;  %v4207_v54 = vmul.f32 %v6581_v18, %v4188_v23 }
 0x79b   :  { %v4208_v5 = vsub.f32 1.0, %v4207_v54 }
 0x79c   :  { %4175 = vmatmul.bf16.vlgmr.msrb.gmra.mxu3 %v8726_v35  ;;  %v8782_v35 = vmul.f32 %v4186_v45, %v8674_v4 }
 0x79d   :  { %v4209_v59 = vmul.f32 %v6581_v18, %v4208_v5 }
 0x79e   :  { %6584 = vrcp.f32 %v8782_v35  ;;  %v4247_v9 = vand.u32 2147483648, %v8782_v35  ;;  %vm4241_vm13 = vweird.f32 %v8782_v35 }
 0x79f   :  { %v4210_v25 = vadd.f32 %v6581_v18, %v4209_v59 }
 0x7a0   :  { %v4248_v5 = vor.u32 1.1754944e-38, %v4247_v9 }
 0x7a1   :  { %v4214_v48 = vsel %vm4213_vm6, %v6581_v18, %v4210_v25  ;;  %v4283_v25 = vperm.slane %v8792_v31, 3 }
 0x7a2   :  { %v8816_v42 = vsel %vm4216_vm7, %v4218_v29, %v4214_v48 }
 0x7a9   :  { %4161 = vmatmul.bf16.gmra.mxu2 %v8747_v13  ;;  %v8790_v13 = vpop.eup %6582 }
 0x7aa   :  { %v4222_v4 = vmul.f32 %v8790_v13, %v8777_v12  ;;  %v8803_v47 = vpop.eup %6584  ;;  %vm4227_vm8 = vweird.f32 %v8790_v13 }
 0x7ab   :  { %v4237_v10 = vmul.f32 %v8803_v47, %v8782_v35  ;;  %vm4228_vm10 = vmor %vm4226_vm9, %vm4227_vm8  ;;  %vm4242_vm12 = vweird.f32 %v8803_v47 }
 0x7ac   :  { %4180 = vmatmul.bf16.gmra.mxu3 %v8749_v56  ;;  %v4195_v56 = vadd.f32 %v6579_v36, %v4194_v62  ;;  %v4223_v28 = vsub.f32 1.0, %v4222_v4  ;;  %v4245_v62 = vand.u32 2147483647, %v8782_v35  ;;  %vm4243_vm14 = vmor %vm4241_vm13, %vm4242_vm12 }
 0x7ad   :  { %v4238_v20 = vsub.f32 1.0, %v4237_v10 }
 0x7ae   :  { %v4199_v51 = vsel %vm4198_vm2, %v6579_v36, %v4195_v56  ;;  %v4224_v16 = vmul.f32 %v8790_v13, %v4223_v28  ;;  %vm4246_vm15 = vcmp.eq.f32.partialorder %v4245_v62, 8.507059e+37 }
 0x7af   :  { %v8800_v32 = vsel %vm4201_vm3, %v4203_v6, %v4199_v51  ;;  %v4239_v14 = vmul.f32 %v8803_v47, %v4238_v20 }
 0x7b0   :  { %v4225_v61 = vadd.f32 %v8790_v13, %v4224_v16  ;;  %v4282_v16 = vperm.slane %v8792_v31, 2 }
 0x7b1   :  { %v4240_v12 = vadd.f32 %v8803_v47, %v4239_v14 }
 0x7b2   :  { %v4229_v63 = vsel %vm4228_vm10, %v8790_v13, %v4225_v61 }
 0x7b3   :  { %v8835_v41 = vsel %vm4231_vm11, %v4233_v44, %v4229_v63  ;;  %v4244_v13 = vsel %vm4243_vm14, %v8803_v47, %v4240_v12 }
 0x7b4   :  { %v8853_v4 = vsel %vm4246_vm15, %v4248_v5, %v4244_v13 }
 0x7b5   :  { %v3967_v46 = vpop.f32.mrf.mxu0 }
 0x7b9   :  { %v3986_v22 = vpop.f32.mrf.mxu1 }
 0x7ba   :  { %v3987_v15 = vadd.f32 %v3986_v22, %v3967_v46 }
 0x7bc   :  { %v4252_v27 = vmul.f32 %v8800_v32, %v3987_v15  ;;  %v3929_v58 = vpop.f32.mrf.mxu2 }
 0x7bd   :  { %v3969_v7 = vpop.f32.mrf.mxu0 }
 0x7be   :  { %v4295_v37 = vadd.f32 %v8798_v50, %v4252_v27 }
 0x7bf   :  { %v3948_v57 = vpop.f32.mrf.mxu3 }
 0x7c0   :  { %4323 = vst [vmem:[%s8963_s9 + $0x8] sm:$0xff] %v4295_v37  ;;  %v3949_v1 = vadd.f32 %v3948_v57, %v3929_v58 }
 0x7c1   :  { %v3988_v11 = vpop.f32.mrf.mxu1 }
 0x7c2   :  { %v4251_v3 = vmul.f32 %v8800_v32, %v3949_v1  ;;  %v3989_v40 = vadd.f32 %v3988_v11, %v3969_v7 }
 0x7c4   :  { %v4294_v52 = vadd.f32 %v8811_v38, %v4251_v3  ;;  %v4259_v43 = vmul.f32 %v8816_v42, %v3989_v40  ;;  %v3931_v24 = vpop.f32.mrf.mxu2 }
 0x7c5   :  { %v3972_v2 = vpop.f32.mrf.mxu0 }
 0x7c6   :  { %4322 = vst [vmem:[%s8963_s9] sm:$0xff] %v4294_v52  ;;  %v4302_v30 = vadd.f32 %v8798_v50, %v4259_v43 }
 0x7c7   :  { %v3950_v34 = vpop.f32.mrf.mxu3 }
 0x7c8   :  { %4330 = vst [vmem:[%s8963_s9 + $0x40] sm:$0xff] %v4302_v30  ;;  %v3951_v26 = vadd.f32 %v3950_v34, %v3931_v24 }
 0x7c9   :  { %v3991_v8 = vpop.f32.mrf.mxu1 }
 0x7ca   :  { %v4258_v0 = vmul.f32 %v8816_v42, %v3951_v26  ;;  %v3992_v45 = vadd.f32 %v3991_v8, %v3972_v2 }
 0x7cc   :  { %v4301_v23 = vadd.f32 %v8811_v38, %v4258_v0  ;;  %v4266_v36 = vmul.f32 %v8835_v41, %v3992_v45  ;;  %v3934_v53 = vpop.f32.mrf.mxu2 }
 0x7cd   :  { %v3974_v33 = vpop.f32.mrf.mxu0 }
 0x7ce   :  { %4329 = vst [vmem:[%s8963_s9 + $0x38] sm:$0xff] %v4301_v23  ;;  %v4309_v18 = vadd.f32 %v8798_v50, %v4266_v36 }
 0x7cf   :  { %v3953_v54 = vpop.f32.mrf.mxu3 }
 0x7d0   :  { %4337 = vst [vmem:[%s8963_s9 + $0x78] sm:$0xff] %v4309_v18  ;;  %v3954_v55 = vadd.f32 %v3953_v54, %v3934_v53 }
 0x7d1   :  { %v3993_v56 = vpop.f32.mrf.mxu1 }
 0x7d2   :  { %v4265_v49 = vmul.f32 %v8835_v41, %v3954_v55  ;;  %v3994_v17 = vadd.f32 %v3993_v56, %v3974_v33  ;;  %v4285_v55 = vperm.slane %v8792_v31, 5 }
 0x7d4   :  { %v4308_v35 = vadd.f32 %v8811_v38, %v4265_v49  ;;  %v4273_v46 = vmul.f32 %v8853_v4, %v3994_v17  ;;  %v3936_v51 = vpop.f32.mrf.mxu2 }
 0x7d6   :  { %4336 = vst [vmem:[%s8963_s9 + $0x70] sm:$0xff] %v4308_v35  ;;  %v4316_v59 = vadd.f32 %v8798_v50, %v4273_v46  ;;  %v4043_v15 = vpop.f32.mrf.mxu0  ;;  %v4284_v35 = vperm.slane %v8792_v31, 4 }
 0x7d7   :  { %v3955_v22 = vpop.f32.mrf.mxu3 }
 0x7d8   :  { %4344 = vst [vmem:[%s8963_s9 + $0xb0] sm:$0xff] %v4316_v59  ;;  %v3956_v6 = vadd.f32 %v3955_v22, %v3936_v51 }
 0x7d9   :  { %v4062_v27 = vpop.f32.mrf.mxu1 }
 0x7da   :  { %v4272_v28 = vmul.f32 %v8853_v4, %v3956_v6  ;;  %v4063_v58 = vadd.f32 %v4062_v27, %v4043_v15 }
 0x7dc   :  { %v4315_v47 = vadd.f32 %v8811_v38, %v4272_v28  ;;  %v4005_v21 = vpop.f32.mrf.mxu2  ;;  %v4254_v37 = vmul.f32 %v8800_v32, %v4063_v58 }
 0x7de   :  { %4343 = vst [vmem:[%s8963_s9 + $0xa8] sm:$0xff] %v4315_v47  ;;  %v4297_v50 = vadd.f32 %v4283_v25, %v4254_v37  ;;  %v4045_v1 = vpop.f32.mrf.mxu0 }
 0x7df   :  { %v4024_v19 = vpop.f32.mrf.mxu3 }
 0x7e0   :  { %v4025_v57 = vadd.f32 %v4024_v19, %v4005_v21  ;;  %4325 = vst [vmem:[%s8963_s9 + $0x18] sm:$0xff] %v4297_v50 }
 0x7e1   :  { %v4064_v38 = vpop.f32.mrf.mxu1 }
 0x7e2   :  { %v4253_v7 = vmul.f32 %v8800_v32, %v4025_v57  ;;  %v4065_v48 = vadd.f32 %v4064_v38, %v4045_v1 }
 0x7e4   :  { %v4296_v10 = vadd.f32 %v4282_v16, %v4253_v7  ;;  %v4007_v11 = vpop.f32.mrf.mxu2  ;;  %v4261_v29 = vmul.f32 %v8816_v42, %v4065_v48 }
 0x7e6   :  { %4324 = vst [vmem:[%s8963_s9 + $0x10] sm:$0xff] %v4296_v10  ;;  %v4304_v3 = vadd.f32 %v4283_v25, %v4261_v29  ;;  %v4048_v43 = vpop.f32.mrf.mxu0 }
 0x7e7   :  { %v4026_v40 = vpop.f32.mrf.mxu3 }
 0x7e8   :  { %v4027_v52 = vadd.f32 %v4026_v40, %v4007_v11  ;;  %4332 = vst [vmem:[%s8963_s9 + $0x50] sm:$0xff] %v4304_v3 }
 0x7e9   :  { %v4067_v61 = vpop.f32.mrf.mxu1 }
 0x7ea   :  { %v4260_v24 = vmul.f32 %v8816_v42, %v4027_v52  ;;  %v4068_v20 = vadd.f32 %v4067_v61, %v4048_v43 }
 0x7ec   :  { %v4303_v39 = vadd.f32 %v4282_v16, %v4260_v24  ;;  %v4010_v30 = vpop.f32.mrf.mxu2  ;;  %v4268_v60 = vmul.f32 %v8835_v41, %v4068_v20 }
 0x7ee   :  { %4331 = vst [vmem:[%s8963_s9 + $0x48] sm:$0xff] %v4303_v39  ;;  %v4311_v34 = vadd.f32 %v4283_v25, %v4268_v60  ;;  %v4050_v63 = vpop.f32.mrf.mxu0 }
 0x7ef   :  { %v4029_v26 = vpop.f32.mrf.mxu3 }
 0x7f0   :  { %v4030_v2 = vadd.f32 %v4029_v26, %v4010_v30  ;;  %4339 = vst [vmem:[%s8963_s9 + $0x88] sm:$0xff] %v4311_v34  ;;  %v4286_v26 = vperm.slane %v8792_v31, 6 }
 0x7f1   :  { %v4069_v8 = vpop.f32.mrf.mxu1 }
 0x7f2   :  { %v4267_v14 = vmul.f32 %v8835_v41, %v4030_v2  ;;  %v4070_v44 = vadd.f32 %v4069_v8, %v4050_v63 }
 0x7f4   :  { %v4310_v0 = vadd.f32 %v4282_v16, %v4267_v14  ;;  %v4012_v45 = vpop.f32.mrf.mxu2  ;;  %v4275_v23 = vmul.f32 %v8853_v4, %v4070_v44 }
 0x7f6   :  { %4338 = vst [vmem:[%s8963_s9 + $0x80] sm:$0xff] %v4310_v0  ;;  %v4318_v36 = vadd.f32 %v4283_v25, %v4275_v23  ;;  %v4119_v9 = vpop.f32.mrf.mxu0 }
 0x7f7   :  { %v4031_v53 = vpop.f32.mrf.mxu3 }
 0x7f8   :  { %v4032_v12 = vadd.f32 %v4031_v53, %v4012_v45  ;;  %4346 = vst [vmem:[%s8963_s9 + $0xc0] sm:$0xff] %v4318_v36 }
 0x7f9   :  { %v4138_v62 = vpop.f32.mrf.mxu1 }
 0x7fa   :  { %v4274_v18 = vmul.f32 %v8853_v4, %v4032_v12  ;;  %v4139_v54 = vadd.f32 %v4138_v62, %v4119_v9 }
 0x7fc   :  { %v4317_v33 = vadd.f32 %v4282_v16, %v4274_v18  ;;  %v4081_v13 = vpop.f32.mrf.mxu2  ;;  %v4256_v56 = vmul.f32 %v8800_v32, %v4139_v54 }
 0x7fe   :  { %4345 = vst [vmem:[%s8963_s9 + $0xb8] sm:$0xff] %v4317_v33  ;;  %v4299_v5 = vadd.f32 %v4285_v55, %v4256_v56  ;;  %v4121_v46 = vpop.f32.mrf.mxu0 }
 0x7ff   :  { %v4100_v49 = vpop.f32.mrf.mxu3 }
 0x800   :  { %v4101_v17 = vadd.f32 %v4100_v49, %v4081_v13  ;;  %4327 = vst [vmem:[%s8963_s9 + $0x28] sm:$0xff] %v4299_v5 }
 0x801   :  { %v4140_v59 = vpop.f32.mrf.mxu1 }
 0x802   :  { %v4255_v51 = vmul.f32 %v8800_v32, %v4101_v17  ;;  %v4141_v22 = vadd.f32 %v4140_v59, %v4121_v46 }
 0x804   :  { %v4298_v6 = vadd.f32 %v4284_v35, %v4255_v51  ;;  %v4083_v15 = vpop.f32.mrf.mxu2  ;;  %v4263_v28 = vmul.f32 %v8816_v42, %v4141_v22 }
 0x806   :  { %4326 = vst [vmem:[%s8963_s9 + $0x20] sm:$0xff] %v4298_v6  ;;  %v4306_v27 = vadd.f32 %v4285_v55, %v4263_v28  ;;  %v4124_v47 = vpop.f32.mrf.mxu0 }
 0x807   :  { %v4102_v58 = vpop.f32.mrf.mxu3 }
 0x808   :  { %v4103_v25 = vadd.f32 %v4102_v58, %v4083_v15  ;;  %4334 = vst [vmem:[%s8963_s9 + $0x60] sm:$0xff] %v4306_v27 }
 0x809   :  { %v4143_v37 = vpop.f32.mrf.mxu1 }
 0x80a   :  { %v4262_v21 = vmul.f32 %v8816_v42, %v4103_v25  ;;  %v4144_v50 = vadd.f32 %v4143_v37, %v4124_v47 }
 0x80c   :  { %v4305_v19 = vadd.f32 %v4284_v35, %v4262_v21  ;;  %v4086_v57 = vpop.f32.mrf.mxu2  ;;  %v4270_v16 = vmul.f32 %v8835_v41, %v4144_v50 }
 0x80e   :  { %4333 = vst [vmem:[%s8963_s9 + $0x58] sm:$0xff] %v4305_v19  ;;  %v4313_v1 = vadd.f32 %v4285_v55, %v4270_v16  ;;  %v4126_v48 = vpop.f32.mrf.mxu0 }
 0x80f   :  { %v4105_v7 = vpop.f32.mrf.mxu3 }
 0x810   :  { %v4106_v38 = vadd.f32 %v4105_v7, %v4086_v57  ;;  %4341 = vst [vmem:[%s8963_s9 + $0x98] sm:$0xff] %v4313_v1 }
 0x811   :  { %v4145_v11 = vpop.f32.mrf.mxu1 }
 0x812   :  { %v4269_v10 = vmul.f32 %v8835_v41, %v4106_v38  ;;  %v4146_v29 = vadd.f32 %v4145_v11, %v4126_v48 }
 0x814   :  { %v4312_v3 = vadd.f32 %v4284_v35, %v4269_v10  ;;  %v4088_v40 = vpop.f32.mrf.mxu2  ;;  %v4277_v52 = vmul.f32 %v8853_v4, %v4146_v29 }
 0x816   :  { %4340 = vst [vmem:[%s8963_s9 + $0x90] sm:$0xff] %v4312_v3  ;;  %v4320_v43 = vadd.f32 %v4285_v55, %v4277_v52 }
 0x817   :  { %v4107_v24 = vpop.f32.mrf.mxu3 }
 0x818   :  { %v4108_v61 = vadd.f32 %v4107_v24, %v4088_v40  ;;  %4348 = vst [vmem:[%s8963_s9 + $0xd0] sm:$0xff] %v4320_v43 }
 0x81a   :  { %v4276_v20 = vmul.f32 %v8853_v4, %v4108_v61 }
 0x81c   :  { %v4319_v39 = vadd.f32 %v4284_v35, %v4276_v20  ;;  %v4157_v30 = vpop.f32.mrf.mxu2 }
 0x81e   :  { %4347 = vst [vmem:[%s8963_s9 + $0xc8] sm:$0xff] %v4319_v39 }
 0x81f   :  { %v4176_v60 = vpop.f32.mrf.mxu3 }
 0x820   :  { %v4177_v34 = vadd.f32 %v4176_v60, %v4157_v30 }
 0x822   :  { %v4257_v2 = vmul.f32 %v8800_v32, %v4177_v34 }
 0x824   :  { %v4300_v63 = vadd.f32 %v4286_v26, %v4257_v2  ;;  %v4159_v14 = vpop.f32.mrf.mxu2 }
 0x826   :  { %4328 = vst [vmem:[%s8963_s9 + $0x30] sm:$0xff] %v4300_v63 }
 0x827   :  { %v4178_v8 = vpop.f32.mrf.mxu3 }
 0x828   :  { %v4179_v44 = vadd.f32 %v4178_v8, %v4159_v14 }
 0x82a   :  { %v4264_v0 = vmul.f32 %v8816_v42, %v4179_v44 }
 0x82c   :  { %v4307_v45 = vadd.f32 %v4286_v26, %v4264_v0  ;;  %v4162_v23 = vpop.f32.mrf.mxu2 }
 0x82e   :  { %4335 = vst [vmem:[%s8963_s9 + $0x68] sm:$0xff] %v4307_v45 }
 0x82f   :  { %v4181_v36 = vpop.f32.mrf.mxu3 }
 0x830   :  { %v4182_v31 = vadd.f32 %v4181_v36, %v4162_v23 }
 0x832   :  { %v4271_v32 = vmul.f32 %v8835_v41, %v4182_v31 }
 0x834   :  { %v4314_v53 = vadd.f32 %v4286_v26, %v4271_v32  ;;  %v4164_v12 = vpop.f32.mrf.mxu2 }
 0x836   :  { %4342 = vst [vmem:[%s8963_s9 + $0xa0] sm:$0xff] %v4314_v53 }
 0x837   :  { %v4183_v9 = vpop.f32.mrf.mxu3 }
 0x838   :  { %v4184_v18 = vadd.f32 %v4183_v9, %v4164_v12 }
 0x83a   :  { %v4278_v42 = vmul.f32 %v8853_v4, %v4184_v18 }
 0x83c   :  { %v4321_v62 = vadd.f32 %v4286_v26, %v4278_v42 }
 0x83e   :  { %4349 = vst [vmem:[%s8963_s9 + $0xd8] sm:$0xff] %v4321_v62 }
 0x83f   :  { %4354 = vsyncpa [#allocation3], 1 }
 0x840   :  { %4355 = vsyncpa [#allocation7], 1 }
 0x841   :  { %4356 = vsyncpa [#allocation10], 1 }
 0x842   :  { %4357 = vsyncpa [#allocation4], 1 }

</bundles_post_ra>
